<compile_context>
chip_gen: v6e
topology: v6e:2x2x1
jax: 0.10.0
libtpu: 0.0.40
codegen_flags: <defaults>
</compile_context>

<pallas_src>
import functools

import jax
import jax.numpy as jnp
from jax.experimental import pallas as pl
from jax.experimental.pallas import tpu as pltpu

LANE = 128
BORDER = 2                       # zero border baked into every canvas (covers pad=1 and pad=2)
TM_MAX = 512                     # lane tile of the flattened-spatial axis
BN_EPS = 1e-5
VMEM_LIMIT = 48 * 1024 * 1024    # stay inside the v7x 64 MiB VMEM budget


def _round_up(x, m):
    return ((x + m - 1) // m) * m


# ----------------------------------------------------------------------------
# Geometry / host-side glue (all 1x-sized rearrangements, no im2col blow-up)
# ----------------------------------------------------------------------------
def _geom(n, h, w):
    hc, wc = h + 2 * BORDER, w + 2 * BORDER
    mcan = n * hc * wc
    reach = wc + 1                       # max |tap offset| for 3x3 s1 and 5x5 s2 phase taps
    tm = min(TM_MAX, _round_up(mcan, LANE))
    # prefer >= 2 tiles so ("parallel",) can use both v7x TensorCores
    if tm > LANE and _round_up(mcan, tm) == tm:
        tm = max(LANE, _round_up((mcan + 1) // 2, LANE))
    lm = _round_up(mcan, tm)
    padl = _round_up(lm + 2 * reach, LANE)
    return dict(n=n, h=h, w=w, hc=hc, wc=wc, mcan=mcan, reach=reach,
                tm=tm, lm=lm, padl=padl, count=float(n * h * w))


def _make_mask(g):
    # 1.0 at valid (interior) canvas positions, 0.0 at border / padding slack.
    m = jnp.zeros((g["n"], g["hc"], g["wc"]), jnp.float32)
    m = m.at[:, BORDER:BORDER + g["h"], BORDER:BORDER + g["w"]].set(1.0)
    m = m.reshape(1, g["mcan"])
    return jnp.pad(m, ((0, 0), (0, g["lm"] - g["mcan"])))


def _groups_s1(k, wc):
    # single phase plane; taps in row-major (i, j) order.
    p = k // 2
    offs = tuple((i - p) * wc + (j - p) for i in range(k) for j in range(k))
    order = tuple((i, j) for i in range(k) for j in range(k))
    return ((0, offs),), order


def _groups_s2(wc_out):
    # 5x5 / stride-2 / pad-2: tap (i, j) reads phase plane (i%2, j%2) at flat
    # offset (i//2 - 1)*Wc_out + (j//2 - 1) in output-canvas coordinates.
    groups, order = [], []
    for pi in range(2):
        for pj in range(2):
            offs = []
            for i in range(pi, 5, 2):
                for j in range(pj, 5, 2):
                    offs.append((i // 2 - 1) * wc_out + (j // 2 - 1))
                    order.append((i, j))
            groups.append((pi * 2 + pj, tuple(offs)))
    return tuple(groups), tuple(order)


def _wmat(w, order):
    # (Cout, Cin, kh, kw) -> (Cout, n_taps*Cin) bf16, columns matching the
    # global tap order used by the in-kernel patch-slab assembly.
    cols = [w[:, :, i, j] for (i, j) in order]          # each (Cout, Cin)
    wt = jnp.stack(cols, axis=1)                        # (Cout, n_taps, Cin)
    return wt.reshape(w.shape[0], -1).astype(jnp.bfloat16)


def _prep_s1(y, g):
    # (C, len<=lm) canvas-flat with zero border -> (C, padl): left guard = reach.
    c, ln = y.shape
    return jnp.pad(y, ((0, 0), (g["reach"], g["padl"] - g["reach"] - ln)))


def _prep_s2(y, gi, go):
    # Build the 2x2 phase planes of the input canvas in the output-canvas
    # coordinate system (same total size as the input: no im2col blow-up).
    assert gi["h"] % 2 == 0 and gi["w"] % 2 == 0
    c = y.shape[0]
    xc = y[:, :gi["mcan"]].reshape(c, gi["n"], gi["hc"], gi["wc"])
    planes = []
    for pi in range(2):
        for pj in range(2):
            src = xc[:, :, pi::2, pj::2]
            ph = jnp.zeros((c, go["n"], go["hc"], go["wc"]), y.dtype)
            ph = ph.at[:, :, 1:1 + src.shape[2], 1:1 + src.shape[3]].set(src)
            planes.append(ph.reshape(c, go["mcan"]))
    xg = jnp.concatenate(planes, axis=0)                 # (4*C, mcan_out)
    return jnp.pad(xg, ((0, 0), (go["reach"], go["padl"] - go["reach"] - go["mcan"])))


# ----------------------------------------------------------------------------
# Pallas kernels
# ----------------------------------------------------------------------------
def _conv_kernel(x_ref, w_ref, z_ref, *, groups, cin, tm, reach):
    """z(Cout, TM) = sum_planes  W_plane(Cout, Kp) @ slab_plane(Kp, TM).

    The patch slab is assembled in-register from lane-shifted slices of the
    per-plane canvas window; taps are folded into the contraction dim K."""
    base = pl.multiple_of(pl.program_id(0) * tm, LANE)
    acc = None
    g = 0
    for plane, offs in groups:
        # one aligned dynamic window load per plane per tile
        win = x_ref[plane * cin:(plane + 1) * cin, pl.ds(base, tm + 2 * reach)]
        parts = [win[:, reach + off:reach + off + tm] for off in offs]
        slab = parts[0] if len(parts) == 1 else jnp.concatenate(parts, axis=0)
        k0 = g * cin
        g += len(offs)
        k1 = g * cin
        part = jnp.dot(w_ref[:, k0:k1], slab, preferred_element_type=jnp.float32)
        acc = part if acc is None else acc + part
    z_ref[...] = acc.astype(z_ref.dtype)


def _affine_relu_kernel(z_ref, scale_ref, shift_ref, mask_ref, h_ref):
    # pure BN-affine + ReLU + mask epilogue (no conv recompute).
    z = z_ref[...].astype(jnp.float32)
    h = jnp.maximum(z * scale_ref[...] + shift_ref[...], 0.0) * mask_ref[...]
    h_ref[...] = h.astype(h_ref.dtype)


def _affine_relu_out1_kernel(z_ref, scale_ref, shift_ref, mask_ref,
                             w2_ref, b2_ref, o_ref):
    # last conv2 layer's BN+ReLU fused with the 1x1 out1 conv (+bias).
    z = z_ref[...].astype(jnp.float32)
    h = jnp.maximum(z * scale_ref[...] + shift_ref[...], 0.0) * mask_ref[...]
    y = jnp.dot(w2_ref[...], h.astype(w2_ref.dtype),
                preferred_element_type=jnp.float32) + b2_ref[...]
    o_ref[...] = (y * mask_ref[...]).astype(o_ref.dtype)


# ----------------------------------------------------------------------------
# pallas_call wrappers
# ----------------------------------------------------------------------------
def _cparams():
    return pltpu.CompilerParams(dimension_semantics=("parallel",),
                                vmem_limit_bytes=VMEM_LIMIT)


def _conv_pass(x_g, wmat, groups, cin, geom):
    cout, K = wmat.shape
    R, padl = x_g.shape
    tm, lm, reach = geom["tm"], geom["lm"], geom["reach"]
    ntiles = lm // tm
    # VMEM budget estimate (double-buffered input/weight/output blocks + slab)
    max_plane_k = max(len(offs) for _, offs in groups) * cin
    est = 2 * (R * padl + cout * K + cout * tm) * 2 + 4 * max_plane_k * tm * 2
    assert est <= VMEM_LIMIT, f"conv pass VMEM estimate {est} > {VMEM_LIMIT}"
    kern = functools.partial(_conv_kernel, groups=groups, cin=cin, tm=tm, reach=reach)
    return pl.pallas_call(
        kern,
        grid=(ntiles,),
        in_specs=[pl.BlockSpec((R, padl), lambda i: (0, 0)),      # resident canvas
                  pl.BlockSpec((cout, K), lambda i: (0, 0))],
        out_specs=pl.BlockSpec((cout, tm), lambda i: (0, i)),
        out_shape=jax.ShapeDtypeStruct((cout, lm), jnp.bfloat16),
        compiler_params=_cparams(),
    )(x_g, wmat)


def _affine_relu_pass(z, scale, shift, mask, geom):
    cout = z.shape[0]
    tm, lm = geom["tm"], geom["lm"]
    return pl.pallas_call(
        _affine_relu_kernel,
        grid=(lm // tm,),
        in_specs=[pl.BlockSpec((cout, tm), lambda i: (0, i)),
                  pl.BlockSpec((cout, 1), lambda i: (0, 0)),
                  pl.BlockSpec((cout, 1), lambda i: (0, 0)),
                  pl.BlockSpec((1, tm), lambda i: (0, i))],
        out_specs=pl.BlockSpec((cout, tm), lambda i: (0, i)),
        out_shape=jax.ShapeDtypeStruct((cout, lm), jnp.bfloat16),
        compiler_params=_cparams(),
    )(z, scale, shift, mask)


def _affine_relu_out1_pass(z, scale, shift, mask, w2, b2, geom):
    cout = z.shape[0]
    oc = w2.shape[0]
    tm, lm = geom["tm"], geom["lm"]
    return pl.pallas_call(
        _affine_relu_out1_kernel,
        grid=(lm // tm,),
        in_specs=[pl.BlockSpec((cout, tm), lambda i: (0, i)),
                  pl.BlockSpec((cout, 1), lambda i: (0, 0)),
                  pl.BlockSpec((cout, 1), lambda i: (0, 0)),
                  pl.BlockSpec((1, tm), lambda i: (0, i)),
                  pl.BlockSpec((oc, cout), lambda i: (0, 0)),
                  pl.BlockSpec((oc, 1), lambda i: (0, 0))],
        out_specs=pl.BlockSpec((oc, tm), lambda i: (0, i)),
        out_shape=jax.ShapeDtypeStruct((oc, lm), jnp.float32),
        compiler_params=_cparams(),
    )(z, scale, shift, mask, w2, b2)


def _bn_scale_shift(z, mask, gamma, beta, count):
    # BatchNorm (training-mode batch statistics), two-pass masked mean/var in f32.
    zf = z.astype(jnp.float32) * mask
    mean = jnp.sum(zf, axis=1) / count
    var = jnp.sum(jnp.square(zf - mean[:, None]) * mask, axis=1) / count
    inv = jax.lax.rsqrt(var + BN_EPS)
    scale = (gamma * inv).reshape(-1, 1).astype(jnp.float32)
    shift = (beta - mean * gamma * inv).reshape(-1, 1).astype(jnp.float32)
    return scale, shift


def _conv_bn_relu_layer(x_prep, p, groups, order, geom, mask):
    cin = p["w"].shape[1]
    wmat = _wmat(p["w"], order)
    z = _conv_pass(x_prep, wmat, groups, cin, geom)                   # raw conv, once
    scale, shift = _bn_scale_shift(z, mask, p["gamma"], p["beta"], geom["count"])
    return _affine_relu_pass(z, scale, shift, mask, geom)             # pure epilogue


def _conv_bn_relu_out1_layer(x_prep, p, po, groups, order, geom, mask):
    cin = p["w"].shape[1]
    wmat = _wmat(p["w"], order)
    z = _conv_pass(x_prep, wmat, groups, cin, geom)
    scale, shift = _bn_scale_shift(z, mask, p["gamma"], p["beta"], geom["count"])
    w2 = po["w"][:, :, 0, 0].astype(jnp.bfloat16)
    b2 = po["b"].reshape(-1, 1).astype(jnp.float32)
    return _affine_relu_out1_pass(z, scale, shift, mask, w2, b2, geom)


# ----------------------------------------------------------------------------
# Parameters (deterministic, synthetic).  Conv biases before BN are dropped
# (cancelled by mean subtraction); only out1 keeps its bias.
# ----------------------------------------------------------------------------
def _init_conv_bn(key, cin, cout, k):
    fan_in = cin * k * k
    w = jax.random.normal(key, (cout, cin, k, k), jnp.float32) / jnp.sqrt(fan_in)
    return dict(w=w,
                gamma=jnp.ones((cout,), jnp.float32),
                beta=jnp.zeros((cout,), jnp.float32))


def init_basic_encoder_params(key, in_channels, c, out_channels):
    ks = iter(jax.random.split(key, 16))
    return {
        "conv0": [_init_conv_bn(next(ks), in_channels, c, 3),
                  _init_conv_bn(next(ks), c, c, 3)],
        "conv1": [_init_conv_bn(next(ks), c, 2 * c, 5),
                  _init_conv_bn(next(ks), 2 * c, 2 * c, 3),
                  _init_conv_bn(next(ks), 2 * c, 2 * c, 3)],
        "conv2": [_init_conv_bn(next(ks), 2 * c, 4 * c, 5),
                  _init_conv_bn(next(ks), 4 * c, 4 * c, 3),
                  _init_conv_bn(next(ks), 4 * c, 4 * c, 3)],
        "out1": dict(
            w=jax.random.normal(next(ks), (out_channels, 4 * c, 1, 1),
                                jnp.float32) / jnp.sqrt(4.0 * c),
            b=jnp.zeros((out_channels,), jnp.float32)),
    }


# ----------------------------------------------------------------------------
# Forward (decode=False path of BasicEncoder), NCHW in / NCHW out
# ----------------------------------------------------------------------------
@jax.jit
def basic_encoder_forward(x_nchw, params):
    n, cin0, h, w = x_nchw.shape
    assert h % 4 == 0 and w % 4 == 0
    g0, g1, g2 = _geom(n, h, w), _geom(n, h // 2, w // 2), _geom(n, h // 4, w // 4)
    m0, m1, m2 = _make_mask(g0), _make_mask(g1), _make_mask(g2)

    grp3_0, ord3 = _groups_s1(3, g0["wc"])
    grp3_1, _ = _groups_s1(3, g1["wc"])
    grp3_2, _ = _groups_s1(3, g2["wc"])
    grp5_1, ord5 = _groups_s2(g1["wc"])
    grp5_2, _ = _groups_s2(g2["wc"])

    # initial canvas: NCHW -> (C, N, Hc, Wc) zero-bordered -> (C, Mcan) bf16
    xc = jnp.transpose(x_nchw, (1, 0, 2, 3)).astype(jnp.bfloat16)
    xc = jnp.pad(xc, ((0, 0), (0, 0), (BORDER, BORDER), (BORDER, BORDER)))
    y = xc.reshape(cin0, g0["mcan"])

    # conv0: two 3x3 / s1 / p1 Conv + BN + ReLU blocks
    for p in params["conv0"]:
        y = _conv_bn_relu_layer(_prep_s1(y, g0), p, grp3_0, ord3, g0, m0)

    # conv1: 5x5 / s2 / p2, then two 3x3 / s1 / p1
    p = params["conv1"][0]
    y = _conv_bn_relu_layer(_prep_s2(y, g0, g1), p, grp5_1, ord5, g1, m1)
    for p in params["conv1"][1:]:
        y = _conv_bn_relu_layer(_prep_s1(y, g1), p, grp3_1, ord3, g1, m1)

    # conv2: 5x5 / s2 / p2, one 3x3, then last 3x3 with BN+ReLU fused with out1
    p = params["conv2"][0]
    y = _conv_bn_relu_layer(_prep_s2(y, g1, g2), p, grp5_2, ord5, g2, m2)
    p = params["conv2"][1]
    y = _conv_bn_relu_layer(_prep_s1(y, g2), p, grp3_2, ord3, g2, m2)
    out_flat = _conv_bn_relu_out1_layer(_prep_s1(y, g2), params["conv2"][2],
                                        params["out1"], grp3_2, ord3, g2, m2)

    # extract the valid region -> (N, out_channels, H/4, W/4) (PyTorch NCHW)
    oc = out_flat.shape[0]
    out = out_flat[:, :g2["mcan"]].reshape(oc, n, g2["hc"], g2["wc"])
    out = out[:, :, BORDER:BORDER + g2["h"], BORDER:BORDER + g2["w"]]
    return jnp.transpose(out, (1, 0, 2, 3))


if __name__ == "__main__":
    key = jax.random.PRNGKey(0)
    k_x, k_p = jax.random.split(key)

    in_channels, c, out_channels = 4, 8, 16
    N, H, W = 2, 16, 16

    x_nchw = jax.random.normal(k_x, (N, in_channels, H, W), jnp.float32)
    params = init_basic_encoder_params(k_p, in_channels, c, out_channels)

    out = basic_encoder_forward(x_nchw, params)
    out = jax.block_until_ready(out)

    assert out.shape == (N, out_channels, H // 4, W // 4), out.shape
    assert bool(jnp.all(jnp.isfinite(out)))
    print("KERNEL_OK")
</pallas_src>

<mosaic_0001>
module attributes {stable_mosaic.version = 11 : i64} {
  func.func @_conv_kernel(%arg0: i32, %arg1: memref<4x1152xbf16, #tpu.memory_space<vmem>>, %arg2: memref<8x36xbf16, #tpu.memory_space<vmem>>, %arg3: memref<8x512xbf16, #tpu.memory_space<vmem>>) attributes {dimension_semantics = [#tpu.dimension_semantics<parallel>], iteration_bounds = array<i64: 2>, scalar_prefetch = 0 : i64, scratch_operands = 0 : i64, tpu.core_type = #tpu.core_type<tc>, window_params = [{pipeline_mode = #tpu.pipeline_mode<synchronous>, transform_indices = @transform_0, window_bounds = array<i64: 4, 1152>}, {pipeline_mode = #tpu.pipeline_mode<synchronous>, transform_indices = @transform_1, window_bounds = array<i64: 8, 36>}, {transform_indices = @transform_2, window_bounds = array<i64: 8, 512>}]} {
    %c512_i32 = arith.constant 512 : i32
    %0 = arith.muli %arg0, %c512_i32 : i32
    %1 = tpu.assume_multiple %0, 128 : i32
    %c0 = arith.constant 0 : index
    %2 = arith.index_cast %1 : i32 to index
    %3 = vector.load %arg1[%c0, %2] : memref<4x1152xbf16, #tpu.memory_space<vmem>>, vector<4x554xbf16>
    %4 = vector.extract_strided_slice %3 {offsets = [0, 0], sizes = [4, 512], strides = [1, 1]} : vector<4x554xbf16> to vector<4x512xbf16>
    %5 = vector.extract_strided_slice %3 {offsets = [0, 1], sizes = [4, 512], strides = [1, 1]} : vector<4x554xbf16> to vector<4x512xbf16>
    %6 = vector.extract_strided_slice %3 {offsets = [0, 2], sizes = [4, 512], strides = [1, 1]} : vector<4x554xbf16> to vector<4x512xbf16>
    %7 = vector.extract_strided_slice %3 {offsets = [0, 20], sizes = [4, 512], strides = [1, 1]} : vector<4x554xbf16> to vector<4x512xbf16>
    %8 = vector.extract_strided_slice %3 {offsets = [0, 21], sizes = [4, 512], strides = [1, 1]} : vector<4x554xbf16> to vector<4x512xbf16>
    %9 = vector.extract_strided_slice %3 {offsets = [0, 22], sizes = [4, 512], strides = [1, 1]} : vector<4x554xbf16> to vector<4x512xbf16>
    %10 = vector.extract_strided_slice %3 {offsets = [0, 40], sizes = [4, 512], strides = [1, 1]} : vector<4x554xbf16> to vector<4x512xbf16>
    %11 = vector.extract_strided_slice %3 {offsets = [0, 41], sizes = [4, 512], strides = [1, 1]} : vector<4x554xbf16> to vector<4x512xbf16>
    %12 = vector.extract_strided_slice %3 {offsets = [0, 42], sizes = [4, 512], strides = [1, 1]} : vector<4x554xbf16> to vector<4x512xbf16>
    %13 = tpu.concatenate %4, %5, %6, %7, %8, %9, %10, %11, %12 in 0 : vector<4x512xbf16>, vector<4x512xbf16>, vector<4x512xbf16>, vector<4x512xbf16>, vector<4x512xbf16>, vector<4x512xbf16>, vector<4x512xbf16>, vector<4x512xbf16>, vector<4x512xbf16> -> vector<36x512xbf16>
    %c0_0 = arith.constant 0 : index
    %c0_1 = arith.constant 0 : index
    %14 = vector.load %arg2[%c0_0, %c0_1] : memref<8x36xbf16, #tpu.memory_space<vmem>>, vector<8x36xbf16>
    %cst = arith.constant dense<0.000000e+00> : vector<8x512xf32>
    %15 = tpu.matmul %14, %13, %cst {dimension_numbers = #tpu.dot_dimension_numbers<[1], [0], [0], [1], [0, 0, 1, 1], [], []>} : vector<8x36xbf16>, vector<36x512xbf16>, vector<8x512xf32> -> vector<8x512xf32>
    %16 = arith.truncf %15 : vector<8x512xf32> to vector<8x512xbf16>
    %c0_2 = arith.constant 0 : index
    %c0_3 = arith.constant 0 : index
    %17 = vector.load %arg3[%c0_2, %c0_3] : memref<8x512xbf16, #tpu.memory_space<vmem>>, vector<8x512xbf16>
    tpu.vector_store %arg3[%c0_2, %c0_3], %16 {strides = array<i32>} : memref<8x512xbf16, #tpu.memory_space<vmem>>, vector<8x512xbf16>,
    return
  }
  func.func @transform_0(%arg0: i32) -> (i32, i32) {
    %c0_i32 = arith.constant 0 : i32
    %c0_i32_0 = arith.constant 0 : i32
    %c0_i32_1 = arith.constant 0 : i32
    return %c0_i32, %c0_i32_0 : i32, i32
  }
  func.func @transform_1(%arg0: i32) -> (i32, i32) {
    %c0_i32 = arith.constant 0 : i32
    %c0_i32_0 = arith.constant 0 : i32
    %c0_i32_1 = arith.constant 0 : i32
    return %c0_i32, %c0_i32_0 : i32, i32
  }
  func.func @transform_2(%arg0: i32) -> (i32, i32) {
    %c0_i32 = arith.constant 0 : i32
    %c0_i32_0 = arith.constant 0 : i32
    return %c0_i32, %arg0 : i32, i32
  }
}

module attributes {stable_mosaic.version = 11 : i64} {
  func.func @_affine_relu_kernel(%arg0: i32, %arg1: memref<8x512xbf16, #tpu.memory_space<vmem>>, %arg2: memref<8x1xf32, #tpu.memory_space<vmem>>, %arg3: memref<8x1xf32, #tpu.memory_space<vmem>>, %arg4: memref<1x512xf32, #tpu.memory_space<vmem>>, %arg5: memref<8x512xbf16, #tpu.memory_space<vmem>>) attributes {dimension_semantics = [#tpu.dimension_semantics<parallel>], iteration_bounds = array<i64: 2>, scalar_prefetch = 0 : i64, scratch_operands = 0 : i64, tpu.core_type = #tpu.core_type<tc>, window_params = [{transform_indices = @transform_0, window_bounds = array<i64: 8, 512>}, {pipeline_mode = #tpu.pipeline_mode<synchronous>, transform_indices = @transform_1, window_bounds = array<i64: 8, 1>}, {pipeline_mode = #tpu.pipeline_mode<synchronous>, transform_indices = @transform_2, window_bounds = array<i64: 8, 1>}, {transform_indices = @transform_3, window_bounds = array<i64: 1, 512>}, {transform_indices = @transform_4, window_bounds = array<i64: 8, 512>}]} {
    %c0 = arith.constant 0 : index
    %c0_0 = arith.constant 0 : index
    %0 = vector.load %arg1[%c0, %c0_0] : memref<8x512xbf16, #tpu.memory_space<vmem>>, vector<8x512xbf16>
    %1 = arith.extf %0 : vector<8x512xbf16> to vector<8x512xf32>
    %c0_1 = arith.constant 0 : index
    %c0_2 = arith.constant 0 : index
    %2 = vector.load %arg2[%c0_1, %c0_2] : memref<8x1xf32, #tpu.memory_space<vmem>>, vector<8x1xf32>
    %3 = vector.broadcast %2 : vector<8x1xf32> to vector<8x512xf32>
    %4 = arith.mulf %1, %3 : vector<8x512xf32>
    %c0_3 = arith.constant 0 : index
    %c0_4 = arith.constant 0 : index
    %5 = vector.load %arg3[%c0_3, %c0_4] : memref<8x1xf32, #tpu.memory_space<vmem>>, vector<8x1xf32>
    %6 = vector.broadcast %5 : vector<8x1xf32> to vector<8x512xf32>
    %7 = arith.addf %4, %6 : vector<8x512xf32>
    %cst = arith.constant 0.000000e+00 : f32
    %8 = vector.broadcast %cst : f32 to vector<8x512xf32>
    %9 = arith.maximumf %7, %8 : vector<8x512xf32>
    %c0_5 = arith.constant 0 : index
    %c0_6 = arith.constant 0 : index
    %10 = vector.load %arg4[%c0_5, %c0_6] : memref<1x512xf32, #tpu.memory_space<vmem>>, vector<1x512xf32>
    %11 = vector.broadcast %10 : vector<1x512xf32> to vector<8x512xf32>
    %12 = arith.mulf %9, %11 : vector<8x512xf32>
    %13 = arith.truncf %12 : vector<8x512xf32> to vector<8x512xbf16>
    %c0_7 = arith.constant 0 : index
    %c0_8 = arith.constant 0 : index
    %14 = vector.load %arg5[%c0_7, %c0_8] : memref<8x512xbf16, #tpu.memory_space<vmem>>, vector<8x512xbf16>
    tpu.vector_store %arg5[%c0_7, %c0_8], %13 {strides = array<i32>} : memref<8x512xbf16, #tpu.memory_space<vmem>>, vector<8x512xbf16>,
    return
  }
  func.func @transform_0(%arg0: i32) -> (i32, i32) {
    %c0_i32 = arith.constant 0 : i32
    %c0_i32_0 = arith.constant 0 : i32
    return %c0_i32, %arg0 : i32, i32
  }
  func.func @transform_1(%arg0: i32) -> (i32, i32) {
    %c0_i32 = arith.constant 0 : i32
    %c0_i32_0 = arith.constant 0 : i32
    %c0_i32_1 = arith.constant 0 : i32
    return %c0_i32, %c0_i32_0 : i32, i32
  }
  func.func @transform_2(%arg0: i32) -> (i32, i32) {
    %c0_i32 = arith.constant 0 : i32
    %c0_i32_0 = arith.constant 0 : i32
    %c0_i32_1 = arith.constant 0 : i32
    return %c0_i32, %c0_i32_0 : i32, i32
  }
  func.func @transform_3(%arg0: i32) -> (i32, i32) {
    %c0_i32 = arith.constant 0 : i32
    %c0_i32_0 = arith.constant 0 : i32
    return %c0_i32, %arg0 : i32, i32
  }
  func.func @transform_4(%arg0: i32) -> (i32, i32) {
    %c0_i32 = arith.constant 0 : i32
    %c0_i32_0 = arith.constant 0 : i32
    return %c0_i32, %arg0 : i32, i32
  }
}

module attributes {stable_mosaic.version = 11 : i64} {
  func.func @_conv_kernel(%arg0: i32, %arg1: memref<8x1152xbf16, #tpu.memory_space<vmem>>, %arg2: memref<8x72xbf16, #tpu.memory_space<vmem>>, %arg3: memref<8x512xbf16, #tpu.memory_space<vmem>>) attributes {dimension_semantics = [#tpu.dimension_semantics<parallel>], iteration_bounds = array<i64: 2>, scalar_prefetch = 0 : i64, scratch_operands = 0 : i64, tpu.core_type = #tpu.core_type<tc>, window_params = [{pipeline_mode = #tpu.pipeline_mode<synchronous>, transform_indices = @transform_0, window_bounds = array<i64: 8, 1152>}, {pipeline_mode = #tpu.pipeline_mode<synchronous>, transform_indices = @transform_1, window_bounds = array<i64: 8, 72>}, {transform_indices = @transform_2, window_bounds = array<i64: 8, 512>}]} {
    %c512_i32 = arith.constant 512 : i32
    %0 = arith.muli %arg0, %c512_i32 : i32
    %1 = tpu.assume_multiple %0, 128 : i32
    %c0 = arith.constant 0 : index
    %2 = arith.index_cast %1 : i32 to index
    %3 = vector.load %arg1[%c0, %2] : memref<8x1152xbf16, #tpu.memory_space<vmem>>, vector<8x554xbf16>
    %4 = vector.extract_strided_slice %3 {offsets = [0, 0], sizes = [8, 512], strides = [1, 1]} : vector<8x554xbf16> to vector<8x512xbf16>
    %5 = vector.extract_strided_slice %3 {offsets = [0, 1], sizes = [8, 512], strides = [1, 1]} : vector<8x554xbf16> to vector<8x512xbf16>
    %6 = vector.extract_strided_slice %3 {offsets = [0, 2], sizes = [8, 512], strides = [1, 1]} : vector<8x554xbf16> to vector<8x512xbf16>
    %7 = vector.extract_strided_slice %3 {offsets = [0, 20], sizes = [8, 512], strides = [1, 1]} : vector<8x554xbf16> to vector<8x512xbf16>
    %8 = vector.extract_strided_slice %3 {offsets = [0, 21], sizes = [8, 512], strides = [1, 1]} : vector<8x554xbf16> to vector<8x512xbf16>
    %9 = vector.extract_strided_slice %3 {offsets = [0, 22], sizes = [8, 512], strides = [1, 1]} : vector<8x554xbf16> to vector<8x512xbf16>
    %10 = vector.extract_strided_slice %3 {offsets = [0, 40], sizes = [8, 512], strides = [1, 1]} : vector<8x554xbf16> to vector<8x512xbf16>
    %11 = vector.extract_strided_slice %3 {offsets = [0, 41], sizes = [8, 512], strides = [1, 1]} : vector<8x554xbf16> to vector<8x512xbf16>
    %12 = vector.extract_strided_slice %3 {offsets = [0, 42], sizes = [8, 512], strides = [1, 1]} : vector<8x554xbf16> to vector<8x512xbf16>
    %13 = tpu.concatenate %4, %5, %6, %7, %8, %9, %10, %11, %12 in 0 : vector<8x512xbf16>, vector<8x512xbf16>, vector<8x512xbf16>, vector<8x512xbf16>, vector<8x512xbf16>, vector<8x512xbf16>, vector<8x512xbf16>, vector<8x512xbf16>, vector<8x512xbf16> -> vector<72x512xbf16>
    %c0_0 = arith.constant 0 : index
    %c0_1 = arith.constant 0 : index
    %14 = vector.load %arg2[%c0_0, %c0_1] : memref<8x72xbf16, #tpu.memory_space<vmem>>, vector<8x72xbf16>
    %cst = arith.constant dense<0.000000e+00> : vector<8x512xf32>
    %15 = tpu.matmul %14, %13, %cst {dimension_numbers = #tpu.dot_dimension_numbers<[1], [0], [0], [1], [0, 0, 1, 1], [], []>} : vector<8x72xbf16>, vector<72x512xbf16>, vector<8x512xf32> -> vector<8x512xf32>
    %16 = arith.truncf %15 : vector<8x512xf32> to vector<8x512xbf16>
    %c0_2 = arith.constant 0 : index
    %c0_3 = arith.constant 0 : index
    %17 = vector.load %arg3[%c0_2, %c0_3] : memref<8x512xbf16, #tpu.memory_space<vmem>>, vector<8x512xbf16>
    tpu.vector_store %arg3[%c0_2, %c0_3], %16 {strides = array<i32>} : memref<8x512xbf16, #tpu.memory_space<vmem>>, vector<8x512xbf16>,
    return
  }
  func.func @transform_0(%arg0: i32) -> (i32, i32) {
    %c0_i32 = arith.constant 0 : i32
    %c0_i32_0 = arith.constant 0 : i32
    %c0_i32_1 = arith.constant 0 : i32
    return %c0_i32, %c0_i32_0 : i32, i32
  }
  func.func @transform_1(%arg0: i32) -> (i32, i32) {
    %c0_i32 = arith.constant 0 : i32
    %c0_i32_0 = arith.constant 0 : i32
    %c0_i32_1 = arith.constant 0 : i32
    return %c0_i32, %c0_i32_0 : i32, i32
  }
  func.func @transform_2(%arg0: i32) -> (i32, i32) {
    %c0_i32 = arith.constant 0 : i32
    %c0_i32_0 = arith.constant 0 : i32
    return %c0_i32, %arg0 : i32, i32
  }
}

module attributes {stable_mosaic.version = 11 : i64} {
  func.func @_conv_kernel(%arg0: i32, %arg1: memref<32x640xbf16, #tpu.memory_space<vmem>>, %arg2: memref<16x200xbf16, #tpu.memory_space<vmem>>, %arg3: memref<16x256xbf16, #tpu.memory_space<vmem>>) attributes {dimension_semantics = [#tpu.dimension_semantics<parallel>], iteration_bounds = array<i64: 2>, scalar_prefetch = 0 : i64, scratch_operands = 0 : i64, tpu.core_type = #tpu.core_type<tc>, window_params = [{pipeline_mode = #tpu.pipeline_mode<synchronous>, transform_indices = @transform_0, window_bounds = array<i64: 32, 640>}, {pipeline_mode = #tpu.pipeline_mode<synchronous>, transform_indices = @transform_1, window_bounds = array<i64: 16, 200>}, {transform_indices = @transform_2, window_bounds = array<i64: 16, 256>}]} {
    %c256_i32 = arith.constant 256 : i32
    %0 = arith.muli %arg0, %c256_i32 : i32
    %1 = tpu.assume_multiple %0, 128 : i32
    %c0 = arith.constant 0 : index
    %2 = arith.index_cast %1 : i32 to index
    %3 = vector.load %arg1[%c0, %2] : memref<32x640xbf16, #tpu.memory_space<vmem>>, vector<8x282xbf16>
    %4 = vector.extract_strided_slice %3 {offsets = [0, 0], sizes = [8, 256], strides = [1, 1]} : vector<8x282xbf16> to vector<8x256xbf16>
    %5 = vector.extract_strided_slice %3 {offsets = [0, 1], sizes = [8, 256], strides = [1, 1]} : vector<8x282xbf16> to vector<8x256xbf16>
    %6 = vector.extract_strided_slice %3 {offsets = [0, 2], sizes = [8, 256], strides = [1, 1]} : vector<8x282xbf16> to vector<8x256xbf16>
    %7 = vector.extract_strided_slice %3 {offsets = [0, 12], sizes = [8, 256], strides = [1, 1]} : vector<8x282xbf16> to vector<8x256xbf16>
    %8 = vector.extract_strided_slice %3 {offsets = [0, 13], sizes = [8, 256], strides = [1, 1]} : vector<8x282xbf16> to vector<8x256xbf16>
    %9 = vector.extract_strided_slice %3 {offsets = [0, 14], sizes = [8, 256], strides = [1, 1]} : vector<8x282xbf16> to vector<8x256xbf16>
    %10 = vector.extract_strided_slice %3 {offsets = [0, 24], sizes = [8, 256], strides = [1, 1]} : vector<8x282xbf16> to vector<8x256xbf16>
    %11 = vector.extract_strided_slice %3 {offsets = [0, 25], sizes = [8, 256], strides = [1, 1]} : vector<8x282xbf16> to vector<8x256xbf16>
    %12 = vector.extract_strided_slice %3 {offsets = [0, 26], sizes = [8, 256], strides = [1, 1]} : vector<8x282xbf16> to vector<8x256xbf16>
    %13 = tpu.concatenate %4, %5, %6, %7, %8, %9, %10, %11, %12 in 0 : vector<8x256xbf16>, vector<8x256xbf16>, vector<8x256xbf16>, vector<8x256xbf16>, vector<8x256xbf16>, vector<8x256xbf16>, vector<8x256xbf16>, vector<8x256xbf16>, vector<8x256xbf16> -> vector<72x256xbf16>
    %c0_0 = arith.constant 0 : index
    %c0_1 = arith.constant 0 : index
    %14 = vector.load %arg2[%c0_0, %c0_1] : memref<16x200xbf16, #tpu.memory_space<vmem>>, vector<16x72xbf16>
    %cst = arith.constant dense<0.000000e+00> : vector<16x256xf32>
    %15 = tpu.matmul %14, %13, %cst {dimension_numbers = #tpu.dot_dimension_numbers<[1], [0], [0], [1], [0, 0, 1, 1], [], []>} : vector<16x72xbf16>, vector<72x256xbf16>, vector<16x256xf32> -> vector<16x256xf32>
    %c8 = arith.constant 8 : index
    %16 = arith.index_cast %1 : i32 to index
    %17 = vector.load %arg1[%c8, %16] : memref<32x640xbf16, #tpu.memory_space<vmem>>, vector<8x282xbf16>
    %18 = vector.extract_strided_slice %17 {offsets = [0, 0], sizes = [8, 256], strides = [1, 1]} : vector<8x282xbf16> to vector<8x256xbf16>
    %19 = vector.extract_strided_slice %17 {offsets = [0, 1], sizes = [8, 256], strides = [1, 1]} : vector<8x282xbf16> to vector<8x256xbf16>
    %20 = vector.extract_strided_slice %17 {offsets = [0, 12], sizes = [8, 256], strides = [1, 1]} : vector<8x282xbf16> to vector<8x256xbf16>
    %21 = vector.extract_strided_slice %17 {offsets = [0, 13], sizes = [8, 256], strides = [1, 1]} : vector<8x282xbf16> to vector<8x256xbf16>
    %22 = vector.extract_strided_slice %17 {offsets = [0, 24], sizes = [8, 256], strides = [1, 1]} : vector<8x282xbf16> to vector<8x256xbf16>
    %23 = vector.extract_strided_slice %17 {offsets = [0, 25], sizes = [8, 256], strides = [1, 1]} : vector<8x282xbf16> to vector<8x256xbf16>
    %24 = tpu.concatenate %18, %19, %20, %21, %22, %23 in 0 : vector<8x256xbf16>, vector<8x256xbf16>, vector<8x256xbf16>, vector<8x256xbf16>, vector<8x256xbf16>, vector<8x256xbf16> -> vector<48x256xbf16>
    %c0_2 = arith.constant 0 : index
    %c72 = arith.constant 72 : index
    %25 = vector.load %arg2[%c0_2, %c72] : memref<16x200xbf16, #tpu.memory_space<vmem>>, vector<16x48xbf16>
    %cst_3 = arith.constant dense<0.000000e+00> : vector<16x256xf32>
    %26 = tpu.matmul %25, %24, %cst_3 {dimension_numbers = #tpu.dot_dimension_numbers<[1], [0], [0], [1], [0, 0, 1, 1], [], []>} : vector<16x48xbf16>, vector<48x256xbf16>, vector<16x256xf32> -> vector<16x256xf32>
    %27 = arith.addf %15, %26 : vector<16x256xf32>
    %c16 = arith.constant 16 : index
    %28 = arith.index_cast %1 : i32 to index
    %29 = vector.load %arg1[%c16, %28] : memref<32x640xbf16, #tpu.memory_space<vmem>>, vector<8x282xbf16>
    %30 = vector.extract_strided_slice %29 {offsets = [0, 0], sizes = [8, 256], strides = [1, 1]} : vector<8x282xbf16> to vector<8x256xbf16>
    %31 = vector.extract_strided_slice %29 {offsets = [0, 1], sizes = [8, 256], strides = [1, 1]} : vector<8x282xbf16> to vector<8x256xbf16>
    %32 = vector.extract_strided_slice %29 {offsets = [0, 2], sizes = [8, 256], strides = [1, 1]} : vector<8x282xbf16> to vector<8x256xbf16>
    %33 = vector.extract_strided_slice %29 {offsets = [0, 12], sizes = [8, 256], strides = [1, 1]} : vector<8x282xbf16> to vector<8x256xbf16>
    %34 = vector.extract_strided_slice %29 {offsets = [0, 13], sizes = [8, 256], strides = [1, 1]} : vector<8x282xbf16> to vector<8x256xbf16>
    %35 = vector.extract_strided_slice %29 {offsets = [0, 14], sizes = [8, 256], strides = [1, 1]} : vector<8x282xbf16> to vector<8x256xbf16>
    %36 = tpu.concatenate %30, %31, %32, %33, %34, %35 in 0 : vector<8x256xbf16>, vector<8x256xbf16>, vector<8x256xbf16>, vector<8x256xbf16>, vector<8x256xbf16>, vector<8x256xbf16> -> vector<48x256xbf16>
    %c0_4 = arith.constant 0 : index
    %c120 = arith.constant 120 : index
    %37 = vector.load %arg2[%c0_4, %c120] : memref<16x200xbf16, #tpu.memory_space<vmem>>, vector<16x48xbf16>
    %cst_5 = arith.constant dense<0.000000e+00> : vector<16x256xf32>
    %38 = tpu.matmul %37, %36, %cst_5 {dimension_numbers = #tpu.dot_dimension_numbers<[1], [0], [0], [1], [0, 0, 1, 1], [], []>} : vector<16x48xbf16>, vector<48x256xbf16>, vector<16x256xf32> -> vector<16x256xf32>
    %39 = arith.addf %27, %38 : vector<16x256xf32>
    %c24 = arith.constant 24 : index
    %40 = arith.index_cast %1 : i32 to index
    %41 = vector.load %arg1[%c24, %40] : memref<32x640xbf16, #tpu.memory_space<vmem>>, vector<8x282xbf16>
    %42 = vector.extract_strided_slice %41 {offsets = [0, 0], sizes = [8, 256], strides = [1, 1]} : vector<8x282xbf16> to vector<8x256xbf16>
    %43 = vector.extract_strided_slice %41 {offsets = [0, 1], sizes = [8, 256], strides = [1, 1]} : vector<8x282xbf16> to vector<8x256xbf16>
    %44 = vector.extract_strided_slice %41 {offsets = [0, 12], sizes = [8, 256], strides = [1, 1]} : vector<8x282xbf16> to vector<8x256xbf16>
    %45 = vector.extract_strided_slice %41 {offsets = [0, 13], sizes = [8, 256], strides = [1, 1]} : vector<8x282xbf16> to vector<8x256xbf16>
    %46 = tpu.concatenate %42, %43, %44, %45 in 0 : vector<8x256xbf16>, vector<8x256xbf16>, vector<8x256xbf16>, vector<8x256xbf16> -> vector<32x256xbf16>
    %c0_6 = arith.constant 0 : index
    %c168 = arith.constant 168 : index
    %47 = vector.load %arg2[%c0_6, %c168] : memref<16x200xbf16, #tpu.memory_space<vmem>>, vector<16x32xbf16>
    %cst_7 = arith.constant dense<0.000000e+00> : vector<16x256xf32>
    %48 = tpu.matmul %47, %46, %cst_7 {dimension_numbers = #tpu.dot_dimension_numbers<[1], [0], [0], [1], [0, 0, 1, 1], [], []>} : vector<16x32xbf16>, vector<32x256xbf16>, vector<16x256xf32> -> vector<16x256xf32>
    %49 = arith.addf %39, %48 : vector<16x256xf32>
    %50 = arith.truncf %49 : vector<16x256xf32> to vector<16x256xbf16>
    %c0_8 = arith.constant 0 : index
    %c0_9 = arith.constant 0 : index
    %51 = vector.load %arg3[%c0_8, %c0_9] : memref<16x256xbf16, #tpu.memory_space<vmem>>, vector<16x256xbf16>
    tpu.vector_store %arg3[%c0_8, %c0_9], %50 {strides = array<i32>} : memref<16x256xbf16, #tpu.memory_space<vmem>>, vector<16x256xbf16>,
    return
  }
  func.func @transform_0(%arg0: i32) -> (i32, i32) {
    %c0_i32 = arith.constant 0 : i32
    %c0_i32_0 = arith.constant 0 : i32
    %c0_i32_1 = arith.constant 0 : i32
    return %c0_i32, %c0_i32_0 : i32, i32
  }
  func.func @transform_1(%arg0: i32) -> (i32, i32) {
    %c0_i32 = arith.constant 0 : i32
    %c0_i32_0 = arith.constant 0 : i32
    %c0_i32_1 = arith.constant 0 : i32
    return %c0_i32, %c0_i32_0 : i32, i32
  }
  func.func @transform_2(%arg0: i32) -> (i32, i32) {
    %c0_i32 = arith.constant 0 : i32
    %c0_i32_0 = arith.constant 0 : i32
    return %c0_i32, %arg0 : i32, i32
  }
}

module attributes {stable_mosaic.version = 11 : i64} {
  func.func @_affine_relu_kernel(%arg0: i32, %arg1: memref<16x256xbf16, #tpu.memory_space<vmem>>, %arg2: memref<16x1xf32, #tpu.memory_space<vmem>>, %arg3: memref<16x1xf32, #tpu.memory_space<vmem>>, %arg4: memref<1x256xf32, #tpu.memory_space<vmem>>, %arg5: memref<16x256xbf16, #tpu.memory_space<vmem>>) attributes {dimension_semantics = [#tpu.dimension_semantics<parallel>], iteration_bounds = array<i64: 2>, scalar_prefetch = 0 : i64, scratch_operands = 0 : i64, tpu.core_type = #tpu.core_type<tc>, window_params = [{transform_indices = @transform_0, window_bounds = array<i64: 16, 256>}, {pipeline_mode = #tpu.pipeline_mode<synchronous>, transform_indices = @transform_1, window_bounds = array<i64: 16, 1>}, {pipeline_mode = #tpu.pipeline_mode<synchronous>, transform_indices = @transform_2, window_bounds = array<i64: 16, 1>}, {transform_indices = @transform_3, window_bounds = array<i64: 1, 256>}, {transform_indices = @transform_4, window_bounds = array<i64: 16, 256>}]} {
    %c0 = arith.constant 0 : index
    %c0_0 = arith.constant 0 : index
    %0 = vector.load %arg1[%c0, %c0_0] : memref<16x256xbf16, #tpu.memory_space<vmem>>, vector<16x256xbf16>
    %1 = arith.extf %0 : vector<16x256xbf16> to vector<16x256xf32>
    %c0_1 = arith.constant 0 : index
    %c0_2 = arith.constant 0 : index
    %2 = vector.load %arg2[%c0_1, %c0_2] : memref<16x1xf32, #tpu.memory_space<vmem>>, vector<16x1xf32>
    %3 = vector.broadcast %2 : vector<16x1xf32> to vector<16x256xf32>
    %4 = arith.mulf %1, %3 : vector<16x256xf32>
    %c0_3 = arith.constant 0 : index
    %c0_4 = arith.constant 0 : index
    %5 = vector.load %arg3[%c0_3, %c0_4] : memref<16x1xf32, #tpu.memory_space<vmem>>, vector<16x1xf32>
    %6 = vector.broadcast %5 : vector<16x1xf32> to vector<16x256xf32>
    %7 = arith.addf %4, %6 : vector<16x256xf32>
    %cst = arith.constant 0.000000e+00 : f32
    %8 = vector.broadcast %cst : f32 to vector<16x256xf32>
    %9 = arith.maximumf %7, %8 : vector<16x256xf32>
    %c0_5 = arith.constant 0 : index
    %c0_6 = arith.constant 0 : index
    %10 = vector.load %arg4[%c0_5, %c0_6] : memref<1x256xf32, #tpu.memory_space<vmem>>, vector<1x256xf32>
    %11 = vector.broadcast %10 : vector<1x256xf32> to vector<16x256xf32>
    %12 = arith.mulf %9, %11 : vector<16x256xf32>
    %13 = arith.truncf %12 : vector<16x256xf32> to vector<16x256xbf16>
    %c0_7 = arith.constant 0 : index
    %c0_8 = arith.constant 0 : index
    %14 = vector.load %arg5[%c0_7, %c0_8] : memref<16x256xbf16, #tpu.memory_space<vmem>>, vector<16x256xbf16>
    tpu.vector_store %arg5[%c0_7, %c0_8], %13 {strides = array<i32>} : memref<16x256xbf16, #tpu.memory_space<vmem>>, vector<16x256xbf16>,
    return
  }
  func.func @transform_0(%arg0: i32) -> (i32, i32) {
    %c0_i32 = arith.constant 0 : i32
    %c0_i32_0 = arith.constant 0 : i32
    return %c0_i32, %arg0 : i32, i32
  }
  func.func @transform_1(%arg0: i32) -> (i32, i32) {
    %c0_i32 = arith.constant 0 : i32
    %c0_i32_0 = arith.constant 0 : i32
    %c0_i32_1 = arith.constant 0 : i32
    return %c0_i32, %c0_i32_0 : i32, i32
  }
  func.func @transform_2(%arg0: i32) -> (i32, i32) {
    %c0_i32 = arith.constant 0 : i32
    %c0_i32_0 = arith.constant 0 : i32
    %c0_i32_1 = arith.constant 0 : i32
    return %c0_i32, %c0_i32_0 : i32, i32
  }
  func.func @transform_3(%arg0: i32) -> (i32, i32) {
    %c0_i32 = arith.constant 0 : i32
    %c0_i32_0 = arith.constant 0 : i32
    return %c0_i32, %arg0 : i32, i32
  }
  func.func @transform_4(%arg0: i32) -> (i32, i32) {
    %c0_i32 = arith.constant 0 : i32
    %c0_i32_0 = arith.constant 0 : i32
    return %c0_i32, %arg0 : i32, i32
  }
}

module attributes {stable_mosaic.version = 11 : i64} {
  func.func @_conv_kernel(%arg0: i32, %arg1: memref<16x640xbf16, #tpu.memory_space<vmem>>, %arg2: memref<16x144xbf16, #tpu.memory_space<vmem>>, %arg3: memref<16x256xbf16, #tpu.memory_space<vmem>>) attributes {dimension_semantics = [#tpu.dimension_semantics<parallel>], iteration_bounds = array<i64: 2>, scalar_prefetch = 0 : i64, scratch_operands = 0 : i64, tpu.core_type = #tpu.core_type<tc>, window_params = [{pipeline_mode = #tpu.pipeline_mode<synchronous>, transform_indices = @transform_0, window_bounds = array<i64: 16, 640>}, {pipeline_mode = #tpu.pipeline_mode<synchronous>, transform_indices = @transform_1, window_bounds = array<i64: 16, 144>}, {transform_indices = @transform_2, window_bounds = array<i64: 16, 256>}]} {
    %c256_i32 = arith.constant 256 : i32
    %0 = arith.muli %arg0, %c256_i32 : i32
    %1 = tpu.assume_multiple %0, 128 : i32
    %c0 = arith.constant 0 : index
    %2 = arith.index_cast %1 : i32 to index
    %3 = vector.load %arg1[%c0, %2] : memref<16x640xbf16, #tpu.memory_space<vmem>>, vector<16x282xbf16>
    %4 = vector.extract_strided_slice %3 {offsets = [0, 0], sizes = [16, 256], strides = [1, 1]} : vector<16x282xbf16> to vector<16x256xbf16>
    %5 = vector.extract_strided_slice %3 {offsets = [0, 1], sizes = [16, 256], strides = [1, 1]} : vector<16x282xbf16> to vector<16x256xbf16>
    %6 = vector.extract_strided_slice %3 {offsets = [0, 2], sizes = [16, 256], strides = [1, 1]} : vector<16x282xbf16> to vector<16x256xbf16>
    %7 = vector.extract_strided_slice %3 {offsets = [0, 12], sizes = [16, 256], strides = [1, 1]} : vector<16x282xbf16> to vector<16x256xbf16>
    %8 = vector.extract_strided_slice %3 {offsets = [0, 13], sizes = [16, 256], strides = [1, 1]} : vector<16x282xbf16> to vector<16x256xbf16>
    %9 = vector.extract_strided_slice %3 {offsets = [0, 14], sizes = [16, 256], strides = [1, 1]} : vector<16x282xbf16> to vector<16x256xbf16>
    %10 = vector.extract_strided_slice %3 {offsets = [0, 24], sizes = [16, 256], strides = [1, 1]} : vector<16x282xbf16> to vector<16x256xbf16>
    %11 = vector.extract_strided_slice %3 {offsets = [0, 25], sizes = [16, 256], strides = [1, 1]} : vector<16x282xbf16> to vector<16x256xbf16>
    %12 = vector.extract_strided_slice %3 {offsets = [0, 26], sizes = [16, 256], strides = [1, 1]} : vector<16x282xbf16> to vector<16x256xbf16>
    %13 = tpu.concatenate %4, %5, %6, %7, %8, %9, %10, %11, %12 in 0 : vector<16x256xbf16>, vector<16x256xbf16>, vector<16x256xbf16>, vector<16x256xbf16>, vector<16x256xbf16>, vector<16x256xbf16>, vector<16x256xbf16>, vector<16x256xbf16>, vector<16x256xbf16> -> vector<144x256xbf16>
    %c0_0 = arith.constant 0 : index
    %c0_1 = arith.constant 0 : index
    %14 = vector.load %arg2[%c0_0, %c0_1] : memref<16x144xbf16, #tpu.memory_space<vmem>>, vector<16x144xbf16>
    %cst = arith.constant dense<0.000000e+00> : vector<16x256xf32>
    %15 = tpu.matmul %14, %13, %cst {dimension_numbers = #tpu.dot_dimension_numbers<[1], [0], [0], [1], [0, 0, 1, 1], [], []>} : vector<16x144xbf16>, vector<144x256xbf16>, vector<16x256xf32> -> vector<16x256xf32>
    %16 = arith.truncf %15 : vector<16x256xf32> to vector<16x256xbf16>
    %c0_2 = arith.constant 0 : index
    %c0_3 = arith.constant 0 : index
    %17 = vector.load %arg3[%c0_2, %c0_3] : memref<16x256xbf16, #tpu.memory_space<vmem>>, vector<16x256xbf16>
    tpu.vector_store %arg3[%c0_2, %c0_3], %16 {strides = array<i32>} : memref<16x256xbf16, #tpu.memory_space<vmem>>, vector<16x256xbf16>,
    return
  }
  func.func @transform_0(%arg0: i32) -> (i32, i32) {
    %c0_i32 = arith.constant 0 : i32
    %c0_i32_0 = arith.constant 0 : i32
    %c0_i32_1 = arith.constant 0 : i32
    return %c0_i32, %c0_i32_0 : i32, i32
  }
  func.func @transform_1(%arg0: i32) -> (i32, i32) {
    %c0_i32 = arith.constant 0 : i32
    %c0_i32_0 = arith.constant 0 : i32
    %c0_i32_1 = arith.constant 0 : i32
    return %c0_i32, %c0_i32_0 : i32, i32
  }
  func.func @transform_2(%arg0: i32) -> (i32, i32) {
    %c0_i32 = arith.constant 0 : i32
    %c0_i32_0 = arith.constant 0 : i32
    return %c0_i32, %arg0 : i32, i32
  }
}

module attributes {stable_mosaic.version = 11 : i64} {
  func.func @_conv_kernel(%arg0: i32, %arg1: memref<64x256xbf16, #tpu.memory_space<vmem>>, %arg2: memref<32x400xbf16, #tpu.memory_space<vmem>>, %arg3: memref<32x128xbf16, #tpu.memory_space<vmem>>) attributes {dimension_semantics = [#tpu.dimension_semantics<parallel>], iteration_bounds = array<i64: 1>, scalar_prefetch = 0 : i64, scratch_operands = 0 : i64, tpu.core_type = #tpu.core_type<tc>, window_params = [{pipeline_mode = #tpu.pipeline_mode<synchronous>, transform_indices = @transform_0, window_bounds = array<i64: 64, 256>}, {pipeline_mode = #tpu.pipeline_mode<synchronous>, transform_indices = @transform_1, window_bounds = array<i64: 32, 400>}, {transform_indices = @transform_2, window_bounds = array<i64: 32, 128>}]} {
    %c128_i32 = arith.constant 128 : i32
    %0 = arith.muli %arg0, %c128_i32 : i32
    %1 = tpu.assume_multiple %0, 128 : i32
    %c0 = arith.constant 0 : index
    %2 = arith.index_cast %1 : i32 to index
    %3 = vector.load %arg1[%c0, %2] : memref<64x256xbf16, #tpu.memory_space<vmem>>, vector<16x146xbf16>
    %4 = vector.extract_strided_slice %3 {offsets = [0, 0], sizes = [16, 128], strides = [1, 1]} : vector<16x146xbf16> to vector<16x128xbf16>
    %5 = vector.extract_strided_slice %3 {offsets = [0, 1], sizes = [16, 128], strides = [1, 1]} : vector<16x146xbf16> to vector<16x128xbf16>
    %6 = vector.extract_strided_slice %3 {offsets = [0, 2], sizes = [16, 128], strides = [1, 1]} : vector<16x146xbf16> to vector<16x128xbf16>
    %7 = vector.extract_strided_slice %3 {offsets = [0, 8], sizes = [16, 128], strides = [1, 1]} : vector<16x146xbf16> to vector<16x128xbf16>
    %8 = vector.extract_strided_slice %3 {offsets = [0, 9], sizes = [16, 128], strides = [1, 1]} : vector<16x146xbf16> to vector<16x128xbf16>
    %9 = vector.extract_strided_slice %3 {offsets = [0, 10], sizes = [16, 128], strides = [1, 1]} : vector<16x146xbf16> to vector<16x128xbf16>
    %10 = vector.extract_strided_slice %3 {offsets = [0, 16], sizes = [16, 128], strides = [1, 1]} : vector<16x146xbf16> to vector<16x128xbf16>
    %11 = vector.extract_strided_slice %3 {offsets = [0, 17], sizes = [16, 128], strides = [1, 1]} : vector<16x146xbf16> to vector<16x128xbf16>
    %12 = vector.extract_strided_slice %3 {offsets = [0, 18], sizes = [16, 128], strides = [1, 1]} : vector<16x146xbf16> to vector<16x128xbf16>
    %13 = tpu.concatenate %4, %5, %6, %7, %8, %9, %10, %11, %12 in 0 : vector<16x128xbf16>, vector<16x128xbf16>, vector<16x128xbf16>, vector<16x128xbf16>, vector<16x128xbf16>, vector<16x128xbf16>, vector<16x128xbf16>, vector<16x128xbf16>, vector<16x128xbf16> -> vector<144x128xbf16>
    %c0_0 = arith.constant 0 : index
    %c0_1 = arith.constant 0 : index
    %14 = vector.load %arg2[%c0_0, %c0_1] : memref<32x400xbf16, #tpu.memory_space<vmem>>, vector<32x144xbf16>
    %cst = arith.constant dense<0.000000e+00> : vector<32x128xf32>
    %15 = tpu.matmul %14, %13, %cst {dimension_numbers = #tpu.dot_dimension_numbers<[1], [0], [0], [1], [0, 0, 1, 1], [], []>} : vector<32x144xbf16>, vector<144x128xbf16>, vector<32x128xf32> -> vector<32x128xf32>
    %c16 = arith.constant 16 : index
    %16 = arith.index_cast %1 : i32 to index
    %17 = vector.load %arg1[%c16, %16] : memref<64x256xbf16, #tpu.memory_space<vmem>>, vector<16x146xbf16>
    %18 = vector.extract_strided_slice %17 {offsets = [0, 0], sizes = [16, 128], strides = [1, 1]} : vector<16x146xbf16> to vector<16x128xbf16>
    %19 = vector.extract_strided_slice %17 {offsets = [0, 1], sizes = [16, 128], strides = [1, 1]} : vector<16x146xbf16> to vector<16x128xbf16>
    %20 = vector.extract_strided_slice %17 {offsets = [0, 8], sizes = [16, 128], strides = [1, 1]} : vector<16x146xbf16> to vector<16x128xbf16>
    %21 = vector.extract_strided_slice %17 {offsets = [0, 9], sizes = [16, 128], strides = [1, 1]} : vector<16x146xbf16> to vector<16x128xbf16>
    %22 = vector.extract_strided_slice %17 {offsets = [0, 16], sizes = [16, 128], strides = [1, 1]} : vector<16x146xbf16> to vector<16x128xbf16>
    %23 = vector.extract_strided_slice %17 {offsets = [0, 17], sizes = [16, 128], strides = [1, 1]} : vector<16x146xbf16> to vector<16x128xbf16>
    %24 = tpu.concatenate %18, %19, %20, %21, %22, %23 in 0 : vector<16x128xbf16>, vector<16x128xbf16>, vector<16x128xbf16>, vector<16x128xbf16>, vector<16x128xbf16>, vector<16x128xbf16> -> vector<96x128xbf16>
    %c0_2 = arith.constant 0 : index
    %c144 = arith.constant 144 : index
    %25 = vector.load %arg2[%c0_2, %c144] : memref<32x400xbf16, #tpu.memory_space<vmem>>, vector<32x96xbf16>
    %cst_3 = arith.constant dense<0.000000e+00> : vector<32x128xf32>
    %26 = tpu.matmul %25, %24, %cst_3 {dimension_numbers = #tpu.dot_dimension_numbers<[1], [0], [0], [1], [0, 0, 1, 1], [], []>} : vector<32x96xbf16>, vector<96x128xbf16>, vector<32x128xf32> -> vector<32x128xf32>
    %27 = arith.addf %15, %26 : vector<32x128xf32>
    %c32 = arith.constant 32 : index
    %28 = arith.index_cast %1 : i32 to index
    %29 = vector.load %arg1[%c32, %28] : memref<64x256xbf16, #tpu.memory_space<vmem>>, vector<16x146xbf16>
    %30 = vector.extract_strided_slice %29 {offsets = [0, 0], sizes = [16, 128], strides = [1, 1]} : vector<16x146xbf16> to vector<16x128xbf16>
    %31 = vector.extract_strided_slice %29 {offsets = [0, 1], sizes = [16, 128], strides = [1, 1]} : vector<16x146xbf16> to vector<16x128xbf16>
    %32 = vector.extract_strided_slice %29 {offsets = [0, 2], sizes = [16, 128], strides = [1, 1]} : vector<16x146xbf16> to vector<16x128xbf16>
    %33 = vector.extract_strided_slice %29 {offsets = [0, 8], sizes = [16, 128], strides = [1, 1]} : vector<16x146xbf16> to vector<16x128xbf16>
    %34 = vector.extract_strided_slice %29 {offsets = [0, 9], sizes = [16, 128], strides = [1, 1]} : vector<16x146xbf16> to vector<16x128xbf16>
    %35 = vector.extract_strided_slice %29 {offsets = [0, 10], sizes = [16, 128], strides = [1, 1]} : vector<16x146xbf16> to vector<16x128xbf16>
    %36 = tpu.concatenate %30, %31, %32, %33, %34, %35 in 0 : vector<16x128xbf16>, vector<16x128xbf16>, vector<16x128xbf16>, vector<16x128xbf16>, vector<16x128xbf16>, vector<16x128xbf16> -> vector<96x128xbf16>
    %c0_4 = arith.constant 0 : index
    %c240 = arith.constant 240 : index
    %37 = vector.load %arg2[%c0_4, %c240] : memref<32x400xbf16, #tpu.memory_space<vmem>>, vector<32x96xbf16>
    %cst_5 = arith.constant dense<0.000000e+00> : vector<32x128xf32>
    %38 = tpu.matmul %37, %36, %cst_5 {dimension_numbers = #tpu.dot_dimension_numbers<[1], [0], [0], [1], [0, 0, 1, 1], [], []>} : vector<32x96xbf16>, vector<96x128xbf16>, vector<32x128xf32> -> vector<32x128xf32>
    %39 = arith.addf %27, %38 : vector<32x128xf32>
    %c48 = arith.constant 48 : index
    %40 = arith.index_cast %1 : i32 to index
    %41 = vector.load %arg1[%c48, %40] : memref<64x256xbf16, #tpu.memory_space<vmem>>, vector<16x146xbf16>
    %42 = vector.extract_strided_slice %41 {offsets = [0, 0], sizes = [16, 128], strides = [1, 1]} : vector<16x146xbf16> to vector<16x128xbf16>
    %43 = vector.extract_strided_slice %41 {offsets = [0, 1], sizes = [16, 128], strides = [1, 1]} : vector<16x146xbf16> to vector<16x128xbf16>
    %44 = vector.extract_strided_slice %41 {offsets = [0, 8], sizes = [16, 128], strides = [1, 1]} : vector<16x146xbf16> to vector<16x128xbf16>
    %45 = vector.extract_strided_slice %41 {offsets = [0, 9], sizes = [16, 128], strides = [1, 1]} : vector<16x146xbf16> to vector<16x128xbf16>
    %46 = tpu.concatenate %42, %43, %44, %45 in 0 : vector<16x128xbf16>, vector<16x128xbf16>, vector<16x128xbf16>, vector<16x128xbf16> -> vector<64x128xbf16>
    %c0_6 = arith.constant 0 : index
    %c336 = arith.constant 336 : index
    %47 = vector.load %arg2[%c0_6, %c336] : memref<32x400xbf16, #tpu.memory_space<vmem>>, vector<32x64xbf16>
    %cst_7 = arith.constant dense<0.000000e+00> : vector<32x128xf32>
    %48 = tpu.matmul %47, %46, %cst_7 {dimension_numbers = #tpu.dot_dimension_numbers<[1], [0], [0], [1], [0, 0, 1, 1], [], []>} : vector<32x64xbf16>, vector<64x128xbf16>, vector<32x128xf32> -> vector<32x128xf32>
    %49 = arith.addf %39, %48 : vector<32x128xf32>
    %50 = arith.truncf %49 : vector<32x128xf32> to vector<32x128xbf16>
    %c0_8 = arith.constant 0 : index
    %c0_9 = arith.constant 0 : index
    %51 = vector.load %arg3[%c0_8, %c0_9] : memref<32x128xbf16, #tpu.memory_space<vmem>>, vector<32x128xbf16>
    tpu.vector_store %arg3[%c0_8, %c0_9], %50 {strides = array<i32>} : memref<32x128xbf16, #tpu.memory_space<vmem>>, vector<32x128xbf16>,
    return
  }
  func.func @transform_0(%arg0: i32) -> (i32, i32) {
    %c0_i32 = arith.constant 0 : i32
    %c0_i32_0 = arith.constant 0 : i32
    %c0_i32_1 = arith.constant 0 : i32
    return %c0_i32, %c0_i32_0 : i32, i32
  }
  func.func @transform_1(%arg0: i32) -> (i32, i32) {
    %c0_i32 = arith.constant 0 : i32
    %c0_i32_0 = arith.constant 0 : i32
    %c0_i32_1 = arith.constant 0 : i32
    return %c0_i32, %c0_i32_0 : i32, i32
  }
  func.func @transform_2(%arg0: i32) -> (i32, i32) {
    %c0_i32 = arith.constant 0 : i32
    %c0_i32_0 = arith.constant 0 : i32
    return %c0_i32, %arg0 : i32, i32
  }
}

module attributes {stable_mosaic.version = 11 : i64} {
  func.func @_affine_relu_kernel(%arg0: i32, %arg1: memref<32x128xbf16, #tpu.memory_space<vmem>>, %arg2: memref<32x1xf32, #tpu.memory_space<vmem>>, %arg3: memref<32x1xf32, #tpu.memory_space<vmem>>, %arg4: memref<1x128xf32, #tpu.memory_space<vmem>>, %arg5: memref<32x128xbf16, #tpu.memory_space<vmem>>) attributes {dimension_semantics = [#tpu.dimension_semantics<parallel>], iteration_bounds = array<i64: 1>, scalar_prefetch = 0 : i64, scratch_operands = 0 : i64, tpu.core_type = #tpu.core_type<tc>, window_params = [{transform_indices = @transform_0, window_bounds = array<i64: 32, 128>}, {pipeline_mode = #tpu.pipeline_mode<synchronous>, transform_indices = @transform_1, window_bounds = array<i64: 32, 1>}, {pipeline_mode = #tpu.pipeline_mode<synchronous>, transform_indices = @transform_2, window_bounds = array<i64: 32, 1>}, {transform_indices = @transform_3, window_bounds = array<i64: 1, 128>}, {transform_indices = @transform_4, window_bounds = array<i64: 32, 128>}]} {
    %c0 = arith.constant 0 : index
    %c0_0 = arith.constant 0 : index
    %0 = vector.load %arg1[%c0, %c0_0] : memref<32x128xbf16, #tpu.memory_space<vmem>>, vector<32x128xbf16>
    %1 = arith.extf %0 : vector<32x128xbf16> to vector<32x128xf32>
    %c0_1 = arith.constant 0 : index
    %c0_2 = arith.constant 0 : index
    %2 = vector.load %arg2[%c0_1, %c0_2] : memref<32x1xf32, #tpu.memory_space<vmem>>, vector<32x1xf32>
    %3 = vector.broadcast %2 : vector<32x1xf32> to vector<32x128xf32>
    %4 = arith.mulf %1, %3 : vector<32x128xf32>
    %c0_3 = arith.constant 0 : index
    %c0_4 = arith.constant 0 : index
    %5 = vector.load %arg3[%c0_3, %c0_4] : memref<32x1xf32, #tpu.memory_space<vmem>>, vector<32x1xf32>
    %6 = vector.broadcast %5 : vector<32x1xf32> to vector<32x128xf32>
    %7 = arith.addf %4, %6 : vector<32x128xf32>
    %cst = arith.constant 0.000000e+00 : f32
    %8 = vector.broadcast %cst : f32 to vector<32x128xf32>
    %9 = arith.maximumf %7, %8 : vector<32x128xf32>
    %c0_5 = arith.constant 0 : index
    %c0_6 = arith.constant 0 : index
    %10 = vector.load %arg4[%c0_5, %c0_6] : memref<1x128xf32, #tpu.memory_space<vmem>>, vector<1x128xf32>
    %11 = vector.broadcast %10 : vector<1x128xf32> to vector<32x128xf32>
    %12 = arith.mulf %9, %11 : vector<32x128xf32>
    %13 = arith.truncf %12 : vector<32x128xf32> to vector<32x128xbf16>
    %c0_7 = arith.constant 0 : index
    %c0_8 = arith.constant 0 : index
    %14 = vector.load %arg5[%c0_7, %c0_8] : memref<32x128xbf16, #tpu.memory_space<vmem>>, vector<32x128xbf16>
    tpu.vector_store %arg5[%c0_7, %c0_8], %13 {strides = array<i32>} : memref<32x128xbf16, #tpu.memory_space<vmem>>, vector<32x128xbf16>,
    return
  }
  func.func @transform_0(%arg0: i32) -> (i32, i32) {
    %c0_i32 = arith.constant 0 : i32
    %c0_i32_0 = arith.constant 0 : i32
    return %c0_i32, %arg0 : i32, i32
  }
  func.func @transform_1(%arg0: i32) -> (i32, i32) {
    %c0_i32 = arith.constant 0 : i32
    %c0_i32_0 = arith.constant 0 : i32
    %c0_i32_1 = arith.constant 0 : i32
    return %c0_i32, %c0_i32_0 : i32, i32
  }
  func.func @transform_2(%arg0: i32) -> (i32, i32) {
    %c0_i32 = arith.constant 0 : i32
    %c0_i32_0 = arith.constant 0 : i32
    %c0_i32_1 = arith.constant 0 : i32
    return %c0_i32, %c0_i32_0 : i32, i32
  }
  func.func @transform_3(%arg0: i32) -> (i32, i32) {
    %c0_i32 = arith.constant 0 : i32
    %c0_i32_0 = arith.constant 0 : i32
    return %c0_i32, %arg0 : i32, i32
  }
  func.func @transform_4(%arg0: i32) -> (i32, i32) {
    %c0_i32 = arith.constant 0 : i32
    %c0_i32_0 = arith.constant 0 : i32
    return %c0_i32, %arg0 : i32, i32
  }
}

module attributes {stable_mosaic.version = 11 : i64} {
  func.func @_conv_kernel(%arg0: i32, %arg1: memref<32x256xbf16, #tpu.memory_space<vmem>>, %arg2: memref<32x288xbf16, #tpu.memory_space<vmem>>, %arg3: memref<32x128xbf16, #tpu.memory_space<vmem>>) attributes {dimension_semantics = [#tpu.dimension_semantics<parallel>], iteration_bounds = array<i64: 1>, scalar_prefetch = 0 : i64, scratch_operands = 0 : i64, tpu.core_type = #tpu.core_type<tc>, window_params = [{pipeline_mode = #tpu.pipeline_mode<synchronous>, transform_indices = @transform_0, window_bounds = array<i64: 32, 256>}, {pipeline_mode = #tpu.pipeline_mode<synchronous>, transform_indices = @transform_1, window_bounds = array<i64: 32, 288>}, {transform_indices = @transform_2, window_bounds = array<i64: 32, 128>}]} {
    %c128_i32 = arith.constant 128 : i32
    %0 = arith.muli %arg0, %c128_i32 : i32
    %1 = tpu.assume_multiple %0, 128 : i32
    %c0 = arith.constant 0 : index
    %2 = arith.index_cast %1 : i32 to index
    %3 = vector.load %arg1[%c0, %2] : memref<32x256xbf16, #tpu.memory_space<vmem>>, vector<32x146xbf16>
    %4 = vector.extract_strided_slice %3 {offsets = [0, 0], sizes = [32, 128], strides = [1, 1]} : vector<32x146xbf16> to vector<32x128xbf16>
    %5 = vector.extract_strided_slice %3 {offsets = [0, 1], sizes = [32, 128], strides = [1, 1]} : vector<32x146xbf16> to vector<32x128xbf16>
    %6 = vector.extract_strided_slice %3 {offsets = [0, 2], sizes = [32, 128], strides = [1, 1]} : vector<32x146xbf16> to vector<32x128xbf16>
    %7 = vector.extract_strided_slice %3 {offsets = [0, 8], sizes = [32, 128], strides = [1, 1]} : vector<32x146xbf16> to vector<32x128xbf16>
    %8 = vector.extract_strided_slice %3 {offsets = [0, 9], sizes = [32, 128], strides = [1, 1]} : vector<32x146xbf16> to vector<32x128xbf16>
    %9 = vector.extract_strided_slice %3 {offsets = [0, 10], sizes = [32, 128], strides = [1, 1]} : vector<32x146xbf16> to vector<32x128xbf16>
    %10 = vector.extract_strided_slice %3 {offsets = [0, 16], sizes = [32, 128], strides = [1, 1]} : vector<32x146xbf16> to vector<32x128xbf16>
    %11 = vector.extract_strided_slice %3 {offsets = [0, 17], sizes = [32, 128], strides = [1, 1]} : vector<32x146xbf16> to vector<32x128xbf16>
    %12 = vector.extract_strided_slice %3 {offsets = [0, 18], sizes = [32, 128], strides = [1, 1]} : vector<32x146xbf16> to vector<32x128xbf16>
    %13 = tpu.concatenate %4, %5, %6, %7, %8, %9, %10, %11, %12 in 0 : vector<32x128xbf16>, vector<32x128xbf16>, vector<32x128xbf16>, vector<32x128xbf16>, vector<32x128xbf16>, vector<32x128xbf16>, vector<32x128xbf16>, vector<32x128xbf16>, vector<32x128xbf16> -> vector<288x128xbf16>
    %c0_0 = arith.constant 0 : index
    %c0_1 = arith.constant 0 : index
    %14 = vector.load %arg2[%c0_0, %c0_1] : memref<32x288xbf16, #tpu.memory_space<vmem>>, vector<32x288xbf16>
    %cst = arith.constant dense<0.000000e+00> : vector<32x128xf32>
    %15 = tpu.matmul %14, %13, %cst {dimension_numbers = #tpu.dot_dimension_numbers<[1], [0], [0], [1], [0, 0, 1, 1], [], []>} : vector<32x288xbf16>, vector<288x128xbf16>, vector<32x128xf32> -> vector<32x128xf32>
    %16 = arith.truncf %15 : vector<32x128xf32> to vector<32x128xbf16>
    %c0_2 = arith.constant 0 : index
    %c0_3 = arith.constant 0 : index
    %17 = vector.load %arg3[%c0_2, %c0_3] : memref<32x128xbf16, #tpu.memory_space<vmem>>, vector<32x128xbf16>
    tpu.vector_store %arg3[%c0_2, %c0_3], %16 {strides = array<i32>} : memref<32x128xbf16, #tpu.memory_space<vmem>>, vector<32x128xbf16>,
    return
  }
  func.func @transform_0(%arg0: i32) -> (i32, i32) {
    %c0_i32 = arith.constant 0 : i32
    %c0_i32_0 = arith.constant 0 : i32
    %c0_i32_1 = arith.constant 0 : i32
    return %c0_i32, %c0_i32_0 : i32, i32
  }
  func.func @transform_1(%arg0: i32) -> (i32, i32) {
    %c0_i32 = arith.constant 0 : i32
    %c0_i32_0 = arith.constant 0 : i32
    %c0_i32_1 = arith.constant 0 : i32
    return %c0_i32, %c0_i32_0 : i32, i32
  }
  func.func @transform_2(%arg0: i32) -> (i32, i32) {
    %c0_i32 = arith.constant 0 : i32
    %c0_i32_0 = arith.constant 0 : i32
    return %c0_i32, %arg0 : i32, i32
  }
}

module attributes {stable_mosaic.version = 11 : i64} {
  func.func @_affine_relu_out1_kernel(%arg0: i32, %arg1: memref<32x128xbf16, #tpu.memory_space<vmem>>, %arg2: memref<32x1xf32, #tpu.memory_space<vmem>>, %arg3: memref<32x1xf32, #tpu.memory_space<vmem>>, %arg4: memref<1x128xf32, #tpu.memory_space<vmem>>, %arg5: memref<16x32xbf16, #tpu.memory_space<vmem>>, %arg6: memref<16x1xf32, #tpu.memory_space<vmem>>, %arg7: memref<16x128xf32, #tpu.memory_space<vmem>>) attributes {dimension_semantics = [#tpu.dimension_semantics<parallel>], iteration_bounds = array<i64: 1>, scalar_prefetch = 0 : i64, scratch_operands = 0 : i64, tpu.core_type = #tpu.core_type<tc>, window_params = [{transform_indices = @transform_0, window_bounds = array<i64: 32, 128>}, {pipeline_mode = #tpu.pipeline_mode<synchronous>, transform_indices = @transform_1, window_bounds = array<i64: 32, 1>}, {pipeline_mode = #tpu.pipeline_mode<synchronous>, transform_indices = @transform_2, window_bounds = array<i64: 32, 1>}, {transform_indices = @transform_3, window_bounds = array<i64: 1, 128>}, {pipeline_mode = #tpu.pipeline_mode<synchronous>, transform_indices = @transform_4, window_bounds = array<i64: 16, 32>}, {pipeline_mode = #tpu.pipeline_mode<synchronous>, transform_indices = @transform_5, window_bounds = array<i64: 16, 1>}, {transform_indices = @transform_6, window_bounds = array<i64: 16, 128>}]} {
    %c0 = arith.constant 0 : index
    %c0_0 = arith.constant 0 : index
    %0 = vector.load %arg1[%c0, %c0_0] : memref<32x128xbf16, #tpu.memory_space<vmem>>, vector<32x128xbf16>
    %1 = arith.extf %0 : vector<32x128xbf16> to vector<32x128xf32>
    %c0_1 = arith.constant 0 : index
    %c0_2 = arith.constant 0 : index
    %2 = vector.load %arg2[%c0_1, %c0_2] : memref<32x1xf32, #tpu.memory_space<vmem>>, vector<32x1xf32>
    %3 = vector.broadcast %2 : vector<32x1xf32> to vector<32x128xf32>
    %4 = arith.mulf %1, %3 : vector<32x128xf32>
    %c0_3 = arith.constant 0 : index
    %c0_4 = arith.constant 0 : index
    %5 = vector.load %arg3[%c0_3, %c0_4] : memref<32x1xf32, #tpu.memory_space<vmem>>, vector<32x1xf32>
    %6 = vector.broadcast %5 : vector<32x1xf32> to vector<32x128xf32>
    %7 = arith.addf %4, %6 : vector<32x128xf32>
    %cst = arith.constant 0.000000e+00 : f32
    %8 = vector.broadcast %cst : f32 to vector<32x128xf32>
    %9 = arith.maximumf %7, %8 : vector<32x128xf32>
    %c0_5 = arith.constant 0 : index
    %c0_6 = arith.constant 0 : index
    %10 = vector.load %arg4[%c0_5, %c0_6] : memref<1x128xf32, #tpu.memory_space<vmem>>, vector<1x128xf32>
    %11 = vector.broadcast %10 : vector<1x128xf32> to vector<32x128xf32>
    %12 = arith.mulf %9, %11 : vector<32x128xf32>
    %c0_7 = arith.constant 0 : index
    %c0_8 = arith.constant 0 : index
    %13 = vector.load %arg5[%c0_7, %c0_8] : memref<16x32xbf16, #tpu.memory_space<vmem>>, vector<16x32xbf16>
    %14 = arith.truncf %12 : vector<32x128xf32> to vector<32x128xbf16>
    %cst_9 = arith.constant dense<0.000000e+00> : vector<16x128xf32>
    %15 = tpu.matmul %13, %14, %cst_9 {dimension_numbers = #tpu.dot_dimension_numbers<[1], [0], [0], [1], [0, 0, 1, 1], [], []>} : vector<16x32xbf16>, vector<32x128xbf16>, vector<16x128xf32> -> vector<16x128xf32>
    %c0_10 = arith.constant 0 : index
    %c0_11 = arith.constant 0 : index
    %16 = vector.load %arg6[%c0_10, %c0_11] : memref<16x1xf32, #tpu.memory_space<vmem>>, vector<16x1xf32>
    %17 = vector.broadcast %16 : vector<16x1xf32> to vector<16x128xf32>
    %18 = arith.addf %15, %17 : vector<16x128xf32>
    %c0_12 = arith.constant 0 : index
    %c0_13 = arith.constant 0 : index
    %19 = vector.load %arg4[%c0_12, %c0_13] : memref<1x128xf32, #tpu.memory_space<vmem>>, vector<1x128xf32>
    %20 = vector.broadcast %19 : vector<1x128xf32> to vector<16x128xf32>
    %21 = arith.mulf %18, %20 : vector<16x128xf32>
    %c0_14 = arith.constant 0 : index
    %c0_15 = arith.constant 0 : index
    %22 = vector.load %arg7[%c0_14, %c0_15] : memref<16x128xf32, #tpu.memory_space<vmem>>, vector<16x128xf32>
    tpu.vector_store %arg7[%c0_14, %c0_15], %21 {strides = array<i32>} : memref<16x128xf32, #tpu.memory_space<vmem>>, vector<16x128xf32>,
    return
  }
  func.func @transform_0(%arg0: i32) -> (i32, i32) {
    %c0_i32 = arith.constant 0 : i32
    %c0_i32_0 = arith.constant 0 : i32
    return %c0_i32, %arg0 : i32, i32
  }
  func.func @transform_1(%arg0: i32) -> (i32, i32) {
    %c0_i32 = arith.constant 0 : i32
    %c0_i32_0 = arith.constant 0 : i32
    %c0_i32_1 = arith.constant 0 : i32
    return %c0_i32, %c0_i32_0 : i32, i32
  }
  func.func @transform_2(%arg0: i32) -> (i32, i32) {
    %c0_i32 = arith.constant 0 : i32
    %c0_i32_0 = arith.constant 0 : i32
    %c0_i32_1 = arith.constant 0 : i32
    return %c0_i32, %c0_i32_0 : i32, i32
  }
  func.func @transform_3(%arg0: i32) -> (i32, i32) {
    %c0_i32 = arith.constant 0 : i32
    %c0_i32_0 = arith.constant 0 : i32
    return %c0_i32, %arg0 : i32, i32
  }
  func.func @transform_4(%arg0: i32) -> (i32, i32) {
    %c0_i32 = arith.constant 0 : i32
    %c0_i32_0 = arith.constant 0 : i32
    %c0_i32_1 = arith.constant 0 : i32
    return %c0_i32, %c0_i32_0 : i32, i32
  }
  func.func @transform_5(%arg0: i32) -> (i32, i32) {
    %c0_i32 = arith.constant 0 : i32
    %c0_i32_0 = arith.constant 0 : i32
    %c0_i32_1 = arith.constant 0 : i32
    return %c0_i32, %c0_i32_0 : i32, i32
  }
  func.func @transform_6(%arg0: i32) -> (i32, i32) {
    %c0_i32 = arith.constant 0 : i32
    %c0_i32_0 = arith.constant 0 : i32
    return %c0_i32, %arg0 : i32, i32
  }
}

</mosaic_0001>

<bundles_post_ra>
// kernel: basic_encoder_forward.17
= control target key start
LH: loop header
LB: loop body
LE: loop exit
PB: predicated region body
PF: predicated region fallthrough
CT: control target
= control target key end

     0   :  { %s419_s15 = smov 0   ;;  %s453_s0 = inlined_call_operand.vmem [shape: bf16[8,1024], index: 0, kind: input, shape index: {}]   ;;  %s454_s1 = inlined_call_operand.vmem [shape: f32[8,1], index: 1, kind: input, shape index: {}]   ;;  %s455_s2 = inlined_call_operand.vmem [shape: f32[8,1], index: 2, kind: input, shape index: {}]   ;;  %s456_s3 = inlined_call_operand.vmem [shape: f32[1,1024], index: 3, kind: input, shape index: {}]   ;;  %s457_s4 = inlined_call_operand.vmem [shape: bf16[8,1024], index: 4, kind: output, shape index: {}]  }
   0x1 LB: > { %s359_s16 = sadd.s32 4294967295, %s391_s15   ;;  %p363_p0 = scmp.ge.s32.totalorder %s391_s15, 1  ;;  %s391_s15 = sphi %s419_s15, %s14_s15  }
   0x2   : > { %p173_p1 = scmp.lt.s32.totalorder %s391_s15, 3 }
   0x4   : > { %p174_p2 = pnand %p363_p0, %p173_p1 }
   0x5   : > { %s364_s21 = sshll.u32 (!%p174_p2), %s359_s16, 2 }
   0x6   : > { %177 = sbr.rel (%p174_p2) target bundleno = 150 (0x96), region = 36  ;;  %p204_p3 = scmp.lt.s32.totalorder (!%p174_p2), %s364_s21, 7 }
   0xb   : > { %v226_v0 = vld [vmem:[%s454_s1] sm:$0xff]  ;;  %v393_v1 = vmov 0   ;;  %s459_s21 = smov (!%p204_p3, %s364_s21), 7  ;;  %v252_v3 = vlaneseq }
   0xc   : > { %384 = vset.pattern.permute.xlu0 %v393_v1  ;;  %v236_v2 = vld [vmem:[%s455_s2] sm:$0xff]  ;;  %s365_s22 = sshll.u32 %s459_s21, 2  ;;  %s212_s28 = scalar_lea.vmem %s456_s3, %s459_s21 }
   0xd   : > { %229 = vperm.xlu0 %384, %v226_v0   ;;  %s207_s25 = scalar_lea.vmem %s453_s0, %s365_s22  ;;  %v253_v4 = vshrl.u32 %v252_v3, 7  ;;  %v250_v16 = vld [vmem:[%s212_s28] sm:$0xf]  ;;  %s218_s5 = scalar_lea.vmem %s457_s4, %s365_s22 }
   0xe   : > { %v220_v5 = vld [vmem:[%s207_s25] sm:$0xff]  ;;  %v221_v6 = vld [vmem:[%s207_s25 + $0x8] sm:$0xff] }
   0xf   : > { %v222_v7 = vunpack.c.l.bf16 %v220_v5  ;;  %v223_v8 = vunpack.c.h.bf16 %v220_v5  ;;  %v224_v9 = vunpack.c.l.bf16 %v221_v6  ;;  %v225_v10 = vunpack.c.h.bf16 %v221_v6 }
  0x10   : > { %v254_v12 = vsub.s32 0, %v253_v4  ;;  %v258_v13 = vsub.s32 1, %v253_v4  ;;  %v262_v14 = vsub.s32 2, %v253_v4  ;;  %v266_v15 = vsub.s32 3, %v253_v4 }
  0x11   : > { %239 = vperm.xlu0 %384, %v236_v2  }
  0x12   : > { %v255_v22 = vrot.slane %v250_v16, %v254_v12  ;;  %v259_v23 = vrot.slane %v250_v16, %v258_v13  ;;  %v263_v24 = vrot.slane %v250_v16, %v262_v14  ;;  %v267_v25 = vrot.slane %v250_v16, %v266_v15 }
  0x88   : > { %v230_v11 = vpop.permute.xlu0 %229 }
  0x89   : > { %v232_v17 = vmul.f32 %v230_v11, %v222_v7  ;;  %v233_v18 = vmul.f32 %v230_v11, %v223_v8  ;;  %v234_v19 = vmul.f32 %v230_v11, %v224_v9  ;;  %v235_v20 = vmul.f32 %v230_v11, %v225_v10 }
  0x8c   : > { %v240_v21 = vpop.permute.xlu0 %239 }
  0x8d   : > { %v242_v26 = vadd.f32 %v240_v21, %v232_v17  ;;  %v243_v27 = vadd.f32 %v240_v21, %v233_v18  ;;  %v244_v28 = vadd.f32 %v240_v21, %v234_v19  ;;  %v245_v29 = vadd.f32 %v240_v21, %v235_v20 }
  0x8f   : > { %v246_v30 = vmax.f32 %v242_v26, 0.0  ;;  %v247_v31 = vmax.f32 %v243_v27, 0.0  ;;  %v248_v32 = vmax.f32 %v244_v28, 0.0  ;;  %v249_v33 = vmax.f32 %v245_v29, 0.0 }
  0x91   : > { %v272_v34 = vmul.f32 %v255_v22, %v246_v30  ;;  %v273_v35 = vmul.f32 %v259_v23, %v247_v31  ;;  %v274_v36 = vmul.f32 %v263_v24, %v248_v32  ;;  %v275_v37 = vmul.f32 %v267_v25, %v249_v33 }
  0x93   : > { %v373_v38 = vpack.c.bf16 %v273_v35, %v272_v34  ;;  %v374_v39 = vpack.c.bf16 %v275_v37, %v274_v36 }
  0x95   : > { %292 = vst [vmem:[%s218_s5] sm:$0xff] %v373_v38  ;;  %293 = vst [vmem:[%s218_s5 + $0x8] sm:$0xff] %v374_v39 }
  0x96 PF: > { %s14_s15 = sadd.s32 1, %s391_s15  }
  0x97   : > { %p11_p4 = scmp.ge.s32.totalorder %s14_s15, 4  }
  0x99   :  { %13 = sbr.rel (!%p11_p4) target bundleno = 1 (0x1), region = 69 }

// kernel: basic_encoder_forward.16
= control target key start
LH: loop header
LB: loop body
LE: loop exit
PB: predicated region body
PF: predicated region fallthrough
CT: control target
= control target key end

     0   :  { %s603_s9 = smov 0   ;;  %s717_s0 = inlined_call_operand.vmem [shape: bf16[4,1152], index: 0, kind: input, shape index: {}]   ;;  %s718_s1 = inlined_call_operand.vmem [shape: bf16[8,36], index: 1, kind: input, shape index: {}]   ;;  %s719_s2 = inlined_call_operand.vmem [shape: bf16[8,1024], index: 2, kind: output, shape index: {}]  }
   0x1 LB: > { %s531_s10 = sadd.s32 4294967295, %s576_s9   ;;  %p534_p0 = scmp.ge.s32.totalorder %s576_s9, 1  ;;  %s576_s9 = sphi %s603_s9, %s12_s9  }
   0x2   : > { %p102_p1 = scmp.lt.s32.totalorder %s576_s9, 3 }
   0x4   : > { %p103_p2 = pnand %p534_p0, %p102_p1 }
   0x5   : > { %s537_s11 = sshll.u32 (!%p103_p2), %s531_s10, 9  ;;  %s579_s17 = smov (!%p103_p2), 86  }
   0x6   : > { %106 = sbr.rel (%p103_p2) target bundleno = 416 (0x1a0), region = 28  ;;  %s127_s12 = sshra.s32 (!%p103_p2), %s537_s11, 7 }
   0x7   : > { %s538_s13 = sshll.u32 (!%p103_p2), %s127_s12, 1  ;;  %s580_s18 = smov (!%p103_p2), 107  }
   0x8   : > { %s130_s16 = scalar_lea.vmem (!%p103_p2), %s717_s0, %s538_s13  ;;  %s581_s19 = smov (!%p103_p2), 106  }
   0x9   : > { %s582_s20 = smov (!%p103_p2), 88   ;;  %s583_s21 = smov (!%p103_p2), 87  }
   0xa   : > { %s584_s22 = smov (!%p103_p2), 127   ;;  %s585_s23 = smov (!%p103_p2), 126  }
   0xb   : > { %v138_v0 = vlaneseq  ;;  %v578_v1 = vmov 1983009808   ;;  %v131_v5 = vld [vmem:[%s130_s16] sm:$0xff]  ;;  %v132_v8 = vld [vmem:[%s130_s16 + $0x8] sm:$0x3]  ;;  %v586_v24 = vmov 0  }
   0xc   : > { %v136_v2 = vunpack.c.l.s4 %v578_v1  ;;  %v134_v7 = vcombine.high %v131_v5, %v131_v5  ;;  %v152_v14 = vcombine.low %v131_v5, %v131_v5  ;;  %v161_v17 = vcombine.low %v132_v8, %v132_v8  ;;  %417 = vmatprep.mubr.bf16.mxu0 %v586_v24  ;;  %458 = vmatprep.mubr.bf16.mxu1 %v586_v24  ;;  %s587_s24 = smov 108   ;;  %s535_s27 = sshll.u32 %s531_s10, 2 }
   0xd   : > { %v139_v3 = vshrl.u32 %v138_v0, 7  ;;  %vm296_vm0 = vcmask 703488   ;;  %vm301_vm1 = vcmask 1041408   ;;  %vm251_vm2 = vcmask 867328   ;;  %p120_p3 = scmp.lt.s32.totalorder %s535_s27, 7 }
   0xe   : > { %v137_v4 = vunpack.c.0.s8 %v136_v2  ;;  %vm266_vm3 = vcmask 719872   ;;  %vm236_vm4 = vcmask 875520   ;;  %vm281_vm5 = vcmask 711680  }
   0xf   : > { %vm314_vm6 = vcmask 1043456   ;;  %vm323_vm7 = vcmask 1045504   ;;  %vm186_vm8 = vcmask 1039360   ;;  %vm204_vm9 = vcmask 1031168   ;;  %s721_s27 = smov (!%p120_p3, %s535_s27), 7 }
  0x10   : > { %v140_v6 = vsub.s32 %v137_v4, %v139_v3  ;;  %vm221_vm10 = vcmask 883712   ;;  %vm369_vm11 = vcmask 293888   ;;  %s536_s28 = sshll.u32 %s721_s27, 2 }
  0x11   : > { %s123_s3 = scalar_lea.vmem %s719_s2, %s536_s28 }
  0x12   : > { %v616_v9 = vrot.slane %v131_v5, %v140_v6  ;;  %v618_v10 = vrot.slane %v134_v7, %v140_v6  ;;  %v175_v11 = vrot.slane %v132_v8, %v140_v6  ;;  %v159_v15 = vrot.slane %v152_v14, %v140_v6 }
  0x13   : > { %v168_v18 = vrot.slane %v161_v17, %v140_v6 }
  0x14   : > { %286 = vrot.lane.b32.xlu0 %v616_v9, %s579_s17  ;;  %290 = vrot.lane.b32.xlu1 %v618_v10, %s579_s17  ;;  %v624_v12 = vcombine.high %v618_v10, %v618_v10  ;;  %v629_v13 = vcombine.high %v616_v9, %v616_v9  ;;  %v160_v16 = vcombine.high %v159_v15, %v159_v15 }
  0x15   : > { %v192_v19 = vcombine.low %v618_v10, %v618_v10  ;;  %v193_v20 = vcombine.low %v175_v11, %v175_v11  ;;  %v191_v21 = vcombine.low %v616_v9, %v616_v9  ;;  %v210_v22 = vcombine.low %v168_v18, %v168_v18 }
  0x16   : > { %v209_v23 = vcombine.low %v159_v15, %v159_v15 }
  0x18   : > { %294 = vrot.lane.b32.xlu0 %v175_v11, %s579_s17  ;;  %292 = vrot.lane.b32.xlu1 %v624_v12, %s579_s17 }
  0x1c   : > { %288 = vrot.lane.b32.xlu0 %v629_v13, %s579_s17  ;;  %228 = vrot.lane.b32.xlu1 %v629_v13, %s580_s18 }
  0x20   : > { %230 = vrot.lane.b32.xlu0 %v618_v10, %s580_s18  ;;  %232 = vrot.lane.b32.xlu1 %v624_v12, %s580_s18 }
  0x24   : > { %234 = vrot.lane.b32.xlu0 %v175_v11, %s580_s18  ;;  %243 = vrot.lane.b32.xlu1 %v160_v16, %s581_s19 }
  0x28   : > { %245 = vrot.lane.b32.xlu0 %v616_v9, %s581_s19  ;;  %247 = vrot.lane.b32.xlu1 %v629_v13, %s581_s19 }
  0x2c   : > { %249 = vrot.lane.b32.xlu0 %v168_v18, %s581_s19  ;;  %226 = vrot.lane.b32.xlu1 %v616_v9, %s580_s18 }
  0x30   : > { %241 = vrot.lane.b32.xlu0 %v159_v15, %s581_s19  ;;  %258 = vrot.lane.b32.xlu1 %v616_v9, %s582_s20 }
  0x34   : > { %260 = vrot.lane.b32.xlu0 %v192_v19, %s582_s20  ;;  %262 = vrot.lane.b32.xlu1 %v618_v10, %s582_s20 }
  0x38   : > { %264 = vrot.lane.b32.xlu0 %v193_v20, %s582_s20  ;;  %256 = vrot.lane.b32.xlu1 %v191_v21, %s582_s20 }
  0x3c   : > { %273 = vrot.lane.b32.xlu0 %v159_v15, %s583_s21  ;;  %275 = vrot.lane.b32.xlu1 %v191_v21, %s583_s21 }
  0x40   : > { %277 = vrot.lane.b32.xlu0 %v616_v9, %s583_s21  ;;  %279 = vrot.lane.b32.xlu1 %v210_v22, %s583_s21 }
  0x44   : > { %271 = vrot.lane.b32.xlu0 %v209_v23, %s583_s21  ;;  %178 = vrot.lane.b32.xlu1 %v160_v16, %s584_s22 }
  0x48   : > { %180 = vrot.lane.b32.xlu0 %v616_v9, %s584_s22  ;;  %182 = vrot.lane.b32.xlu1 %v629_v13, %s584_s22 }
  0x4c   : > { %184 = vrot.lane.b32.xlu0 %v168_v18, %s584_s22  ;;  %176 = vrot.lane.b32.xlu1 %v159_v15, %s584_s22 }
  0x50   : > { %196 = vrot.lane.b32.xlu0 %v616_v9, %s585_s23  ;;  %198 = vrot.lane.b32.xlu1 %v192_v19, %s585_s23 }
  0x54   : > { %200 = vrot.lane.b32.xlu0 %v618_v10, %s585_s23  ;;  %202 = vrot.lane.b32.xlu1 %v193_v20, %s585_s23 }
  0x58   : > { %194 = vrot.lane.b32.xlu0 %v191_v21, %s585_s23  ;;  %213 = vrot.lane.b32.xlu1 %v159_v15, %s587_s24 }
  0x5c   : > { %215 = vrot.lane.b32.xlu0 %v191_v21, %s587_s24  ;;  %217 = vrot.lane.b32.xlu1 %v616_v9, %s587_s24 }
  0x60   : > { %219 = vrot.lane.b32.xlu0 %v210_v22, %s587_s24  ;;  %211 = vrot.lane.b32.xlu1 %v209_v23, %s587_s24 }
  0x86   : > { %v287_v25 = vpop.permute.xlu0 %286  ;;  %v291_v26 = vpop.permute.xlu1 %290 }
  0x8a   : > { %v295_v27 = vpop.permute.xlu0 %294  ;;  %v293_v28 = vpop.permute.xlu1 %292 }
  0x8b   : > { %v300_v29 = vsel %vm296_vm0, %v293_v28, %v295_v27  ;;  %v299_v30 = vsel %vm296_vm0, %v291_v26, %v293_v28 }
  0x8c   : > { %541 = vmatprep.subr.msk.bf16.mxu1 %vm301_vm1, %v300_v29  ;;  %v380_v31 = vsel %vm301_vm1, %v299_v30, 0 }
  0x8d   : > { %437 = vmatpush1.bf16.msra.mxu1 %v380_v31 }
  0x8e   : > { %v289_v32 = vpop.permute.xlu0 %288  ;;  %v229_v33 = vpop.permute.xlu1 %228 }
  0x8f   : > { %v298_v34 = vsel %vm296_vm0, %v289_v32, %v291_v26  ;;  %v297_v35 = vsel %vm296_vm0, %v287_v25, %v289_v32 }
  0x90   : > { %539 = vmatprep.subr.msk.bf16.mxu0 %vm301_vm1, %v298_v34  ;;  %v374_v36 = vsel %vm301_vm1, %v297_v35, 0 }
  0x91   : > { %396 = vmatpush1.bf16.msra.mxu0 %v374_v36 }
  0x92   : > { %v231_v37 = vpop.permute.xlu0 %230  ;;  %v233_v38 = vpop.permute.xlu1 %232 }
  0x93   : > { %v238_v53 = vsel %vm236_vm4, %v229_v33, %v231_v37  ;;  %v239_v0 = vsel %vm236_vm4, %v231_v37, %v233_v38 }
  0x96   : > { %v235_v39 = vpop.permute.xlu0 %234  ;;  %v244_v40 = vpop.permute.xlu1 %243 }
  0x97   : > { %v240_v1 = vsel %vm236_vm4, %v233_v38, %v235_v39 }
  0x9a   : > { %v246_v41 = vpop.permute.xlu0 %245  ;;  %v248_v42 = vpop.permute.xlu1 %247 }
  0x9b   : > { %v253_v51 = vsel %vm251_vm2, %v244_v40, %v246_v41  ;;  %v254_v57 = vsel %vm251_vm2, %v246_v41, %v248_v42 }
  0x9c   : > { %v341_v54 = vsel %vm301_vm1, %v238_v53, %v253_v51  ;;  %v344_v2 = vsel %vm301_vm1, %v239_v0, %v254_v57 }
  0x9e   : > { %v250_v43 = vpop.permute.xlu0 %249  ;;  %v227_v44 = vpop.permute.xlu1 %226 }
  0x9f   : > { %v255_v58 = vsel %vm251_vm2, %v248_v42, %v250_v43  ;;  %v237_v18 = vsel %vm236_vm4, %v227_v44, %v229_v33 }
  0xa0   : > { %v347_v3 = vsel %vm301_vm1, %v240_v1, %v255_v58 }
  0xa2   : > { %v242_v45 = vpop.permute.xlu0 %241  ;;  %v259_v46 = vpop.permute.xlu1 %258 }
  0xa3   : > { %v252_v4 = vsel %vm251_vm2, %v242_v45, %v244_v40 }
  0xa4   : > { %v338_v19 = vsel %vm301_vm1, %v237_v18, %v252_v4 }
  0xa6   : > { %v261_v47 = vpop.permute.xlu0 %260  ;;  %v263_v48 = vpop.permute.xlu1 %262 }
  0xa7   : > { %v268_v52 = vsel %vm266_vm3, %v259_v46, %v261_v47  ;;  %v269_v61 = vsel %vm266_vm3, %v261_v47, %v263_v48 }
  0xa8   : > { %v351_v60 = vsel %vm314_vm6, %v341_v54, %v268_v52  ;;  %v353_v14 = vsel %vm314_vm6, %v344_v2, %v269_v61 }
  0xaa   : > { %v265_v49 = vpop.permute.xlu0 %264  ;;  %v257_v50 = vpop.permute.xlu1 %256 }
  0xab   : > { %v270_v62 = vsel %vm266_vm3, %v263_v48, %v265_v49  ;;  %v267_v15 = vsel %vm266_vm3, %v257_v50, %v259_v46 }
  0xac   : > { %v355_v11 = vsel %vm314_vm6, %v347_v3, %v270_v62  ;;  %v349_v23 = vsel %vm314_vm6, %v338_v19, %v267_v15 }
  0xae   : > { %v274_v55 = vpop.permute.xlu0 %273  ;;  %v276_v56 = vpop.permute.xlu1 %275 }
  0xaf   : > { %v283_v59 = vsel %vm281_vm5, %v274_v55, %v276_v56 }
  0xb0   : > { %v360_v63 = vsel %vm323_vm7, %v351_v60, %v283_v59  ;;  %v368_v59 = vld [vmem:[%s718_s1] sm:$0xf] }
  0xb1   : > { %397 = vmatprep.subr.bf16.mxu0 %v360_v63 }
  0xb2   : > { %v278_v5 = vpop.permute.xlu0 %277  ;;  %v280_v6 = vpop.permute.xlu1 %279 }
  0xb3   : > { %v284_v7 = vsel %vm281_vm5, %v276_v56, %v278_v5  ;;  %v285_v8 = vsel %vm281_vm5, %v278_v5, %v280_v6 }
  0xb4   : > { %v366_v16 = vsel %vm323_vm7, %v355_v11, %v285_v8  ;;  %v363_v17 = vsel %vm323_vm7, %v353_v14, %v284_v7 }
  0xb5   : > { %438 = vmatprep.subr.bf16.mxu1 %v366_v16 }
  0xb6   : > { %v272_v20 = vpop.permute.xlu0 %271  ;;  %439 = vmatpush1.bf16.msra.mxu1 %v363_v17  ;;  %v179_v21 = vpop.permute.xlu1 %178 }
  0xb7   : > { %v282_v22 = vsel %vm281_vm5, %v272_v20, %v274_v55 }
  0xb8   : > { %v357_v24 = vsel %vm323_vm7, %v349_v23, %v282_v22 }
  0xb9   : > { %398 = vmatpush1.bf16.msra.mxu0 %v357_v24 }
  0xba   : > { %v181_v25 = vpop.permute.xlu0 %180  ;;  %v183_v26 = vpop.permute.xlu1 %182 }
  0xbb   : > { %v188_v35 = vsel %vm186_vm8, %v179_v21, %v181_v25  ;;  %v189_v38 = vsel %vm186_vm8, %v181_v25, %v183_v26 }
  0xbc   : > { %v307_v37 = vsel %vm301_vm1, %v629_v13, %v188_v35  ;;  %v310_v13 = vsel %vm301_vm1, %v618_v10, %v189_v38 }
  0xbe   : > { %v185_v27 = vpop.permute.xlu0 %184  ;;  %v177_v28 = vpop.permute.xlu1 %176 }
  0xbf   : > { %v190_v41 = vsel %vm186_vm8, %v183_v26, %v185_v27  ;;  %v187_v42 = vsel %vm186_vm8, %v177_v28, %v179_v21 }
  0xc0   : > { %v313_v49 = vsel %vm301_vm1, %v624_v12, %v190_v41  ;;  %v304_v50 = vsel %vm301_vm1, %v616_v9, %v187_v42 }
  0xc2   : > { %v197_v29 = vpop.permute.xlu0 %196  ;;  %v199_v30 = vpop.permute.xlu1 %198 }
  0xc3   : > { %v206_v36 = vsel %vm204_vm9, %v197_v29, %v199_v30 }
  0xc4   : > { %v318_v44 = vsel %vm314_vm6, %v307_v37, %v206_v36 }
  0xc6   : > { %v201_v31 = vpop.permute.xlu0 %200  ;;  %v203_v32 = vpop.permute.xlu1 %202 }
  0xc7   : > { %v208_v45 = vsel %vm204_vm9, %v201_v31, %v203_v32  ;;  %v207_v48 = vsel %vm204_vm9, %v199_v30, %v201_v31 }
  0xc8   : > { %v322_v57 = vsel %vm314_vm6, %v313_v49, %v208_v45  ;;  %v320_v58 = vsel %vm314_vm6, %v310_v13, %v207_v48 }
  0xca   : > { %v195_v33 = vpop.permute.xlu0 %194  ;;  %v214_v34 = vpop.permute.xlu1 %213 }
  0xcb   : > { %v205_v46 = vsel %vm204_vm9, %v195_v33, %v197_v29 }
  0xcc   : > { %v316_v56 = vsel %vm314_vm6, %v304_v50, %v205_v46 }
  0xce   : > { %v216_v39 = vpop.permute.xlu0 %215  ;;  %v218_v40 = vpop.permute.xlu1 %217 }
  0xcf   : > { %v223_v43 = vsel %vm221_vm10, %v214_v34, %v216_v39  ;;  %v224_v51 = vsel %vm221_vm10, %v216_v39, %v218_v40 }
  0xd0   : > { %v328_v47 = vsel %vm323_vm7, %v318_v44, %v223_v43  ;;  %v331_v9 = vsel %vm323_vm7, %v320_v58, %v224_v51 }
  0xd1   : > { %399 = vmatprep.subr.bf16.mxu0 %v328_v47 }
  0xd2   : > { %v220_v52 = vpop.permute.xlu0 %219  ;;  %v212_v53 = vpop.permute.xlu1 %211 }
  0xd3   : > { %v225_v54 = vsel %vm221_vm10, %v218_v40, %v220_v52  ;;  %v222_v55 = vsel %vm221_vm10, %v212_v53, %v214_v34 }
  0xd4   : > { %v325_v10 = vsel %vm323_vm7, %v316_v56, %v222_v55  ;;  %v334_v12 = vsel %vm323_vm7, %v322_v57, %v225_v54 }
  0xd5   : > { %400 = vmatpush1.bf16.msra.mxu0 %v325_v10  ;;  %440 = vmatprep.subr.bf16.mxu1 %v334_v12 }
  0xd6   : > { %441 = vmatpush1.bf16.msra.mxu1 %v331_v9 }
  0xd8   : > { %540 = vmatmul.mubr.msk.bf16.vlgmr.msra.gmra.mxu0 %vm369_vm11, %v368_v59 }
  0xd9   : > { %542 = vmatmul.mubr.msk.bf16.vlgmr.msra.gmra.mxu1 %vm369_vm11, %v368_v59 }
 0x198   : > { %v419_v60 = vpop.f32.mrf.mxu0 }
 0x199   : > { %v460_v61 = vpop.f32.mrf.mxu1 }
 0x19a   : > { %v421_v62 = vpop.f32.mrf.mxu0 }
 0x19b   : > { %v547_v63 = vpack.c.bf16 %v421_v62, %v419_v60  ;;  %v462_v0 = vpop.f32.mrf.mxu1 }
 0x19c   : > { %v548_v1 = vpack.c.bf16 %v462_v0, %v460_v61  ;;  %v423_v2 = vpop.f32.mrf.mxu0 }
 0x19d   : > { %483 = vst [vmem:[%s123_s3] sm:$0xff] %v547_v63  ;;  %v464_v3 = vpop.f32.mrf.mxu1 }
 0x19e   : > { %484 = vst [vmem:[%s123_s3 + $0x8] sm:$0xff] %v548_v1  ;;  %v424_v4 = vpop.f32.mrf.mxu0 }
 0x19f   : > { %v465_v5 = vpop.f32.mrf.mxu1 }
 0x1a0 PF: > { %s12_s9 = sadd.s32 1, %s576_s9  }
 0x1a1   : > { %p9_p4 = scmp.ge.s32.totalorder %s12_s9, 4  }
 0x1a3   :  { %11 = sbr.rel (!%p9_p4) target bundleno = 1 (0x1), region = 56 }

// kernel: basic_encoder_forward.18
= control target key start
LH: loop header
LB: loop body
LE: loop exit
PB: predicated region body
PF: predicated region fallthrough
CT: control target
= control target key end

     0   :  { %s572_s9 = smov 0   ;;  %s684_s0 = inlined_call_operand.vmem [shape: bf16[8,1152], index: 0, kind: input, shape index: {}]   ;;  %s685_s1 = inlined_call_operand.vmem [shape: bf16[8,72], index: 1, kind: input, shape index: {}]   ;;  %s686_s2 = inlined_call_operand.vmem [shape: bf16[8,1024], index: 2, kind: output, shape index: {}]  }
   0x1 LB: > { %s495_s10 = sadd.s32 4294967295, %s546_s9   ;;  %p498_p0 = scmp.ge.s32.totalorder %s546_s9, 1  ;;  %s546_s9 = sphi %s572_s9, %s12_s9  }
   0x2   : > { %p102_p1 = scmp.lt.s32.totalorder %s546_s9, 3 }
   0x4   : > { %p103_p2 = pnand %p498_p0, %p102_p1 }
   0x5   : > { %s501_s11 = sshll.u32 (!%p103_p2), %s495_s10, 9  ;;  %s548_s17 = smov (!%p103_p2), 86  }
   0x6   : > { %106 = sbr.rel (%p103_p2) target bundleno = 410 (0x19a), region = 28  ;;  %s127_s12 = sshra.s32 (!%p103_p2), %s501_s11, 7 }
   0x7   : > { %s502_s13 = sshll.u32 (!%p103_p2), %s127_s12, 2  ;;  %s549_s18 = smov (!%p103_p2), 88  }
   0x8   : > { %s130_s16 = scalar_lea.vmem (!%p103_p2), %s684_s0, %s502_s13  ;;  %s550_s19 = smov (!%p103_p2), 87  }
   0x9   : > { %s551_s20 = smov (!%p103_p2), 107   ;;  %s552_s21 = smov (!%p103_p2), 106  }
   0xa   : > { %s553_s22 = smov (!%p103_p2), 126   ;;  %s554_s23 = smov (!%p103_p2), 108  }
   0xb   : > { %v132_v0 = vld [vmem:[%s130_s16 + $0x8] sm:$0xff]  ;;  %v131_v1 = vld [vmem:[%s130_s16] sm:$0xff]  ;;  %v539_v6 = vld [vmem:[%s130_s16 + $0x10] ss:$0 sps:$4 sm:$0xff]   ;;  %v555_v7 = vmov 0   ;;  %s556_s24 = smov 127  }
   0xc   : > { %v585_v2 = vcombine.low %v132_v0, %v132_v0  ;;  %v587_v3 = vcombine.low %v131_v1, %v131_v1  ;;  %v591_v4 = vcombine.high %v132_v0, %v132_v0  ;;  %v593_v5 = vcombine.high %v131_v1, %v131_v1  ;;  %381 = vmatprep.mubr.bf16.mxu0 %v555_v7  ;;  %s499_s27 = sshll.u32 %s495_s10, 2 }
   0xd   : > { %422 = vmatprep.mubr.bf16.mxu1 %v555_v7  ;;  %vm262_vm0 = vcmask 703488   ;;  %vm267_vm1 = vcmask 1043456   ;;  %vm232_vm2 = vcmask 719872   ;;  %vm247_vm3 = vcmask 711680   ;;  %p120_p3 = scmp.lt.s32.totalorder %s499_s27, 7 }
   0xe   : > { %256 = vrot.lane.b32.xlu1 %v585_v2, %s548_s17  ;;  %252 = vrot.lane.b32.xlu0 %v587_v3, %s548_s17  ;;  %vm202_vm4 = vcmask 875520   ;;  %vm217_vm5 = vcmask 867328   ;;  %vm172_vm6 = vcmask 1031168   ;;  %vm187_vm7 = vcmask 883712  }
   0xf   : > { %vm157_vm8 = vcmask 1039360   ;;  %vm333_vm9 = vcmask 588800   ;;  %s688_s27 = smov (!%p120_p3, %s499_s27), 7 }
  0x10   : > { %s500_s28 = sshll.u32 %s688_s27, 2 }
  0x11   : > { %s123_s3 = scalar_lea.vmem %s686_s2, %s500_s28 }
  0x12   : > { %258 = vrot.lane.b32.xlu1 %v591_v4, %s548_s17  ;;  %254 = vrot.lane.b32.xlu0 %v593_v5, %s548_s17 }
  0x16   : > { %224 = vrot.lane.b32.xlu1 %v593_v5, %s549_s18  ;;  %260 = vrot.lane.b32.xlu0 %v539_v6, %s548_s17 }
  0x1a   : > { %228 = vrot.lane.b32.xlu1 %v591_v4, %s549_s18  ;;  %226 = vrot.lane.b32.xlu0 %v585_v2, %s549_s18 }
  0x1e   : > { %239 = vrot.lane.b32.xlu1 %v593_v5, %s550_s19  ;;  %230 = vrot.lane.b32.xlu0 %v539_v6, %s549_s18 }
  0x22   : > { %243 = vrot.lane.b32.xlu1 %v591_v4, %s550_s19  ;;  %241 = vrot.lane.b32.xlu0 %v585_v2, %s550_s19 }
  0x26   : > { %222 = vrot.lane.b32.xlu1 %v587_v3, %s549_s18  ;;  %245 = vrot.lane.b32.xlu0 %v539_v6, %s550_s19 }
  0x2a   : > { %194 = vrot.lane.b32.xlu1 %v593_v5, %s551_s20  ;;  %237 = vrot.lane.b32.xlu0 %v587_v3, %s550_s19 }
  0x2e   : > { %198 = vrot.lane.b32.xlu1 %v591_v4, %s551_s20  ;;  %196 = vrot.lane.b32.xlu0 %v585_v2, %s551_s20 }
  0x32   : > { %209 = vrot.lane.b32.xlu1 %v593_v5, %s552_s21  ;;  %200 = vrot.lane.b32.xlu0 %v539_v6, %s551_s20 }
  0x36   : > { %213 = vrot.lane.b32.xlu1 %v591_v4, %s552_s21  ;;  %211 = vrot.lane.b32.xlu0 %v585_v2, %s552_s21 }
  0x3a   : > { %192 = vrot.lane.b32.xlu1 %v587_v3, %s551_s20  ;;  %215 = vrot.lane.b32.xlu0 %v539_v6, %s552_s21 }
  0x3e   : > { %164 = vrot.lane.b32.xlu1 %v593_v5, %s553_s22  ;;  %207 = vrot.lane.b32.xlu0 %v587_v3, %s552_s21 }
  0x42   : > { %168 = vrot.lane.b32.xlu1 %v591_v4, %s553_s22  ;;  %166 = vrot.lane.b32.xlu0 %v585_v2, %s553_s22 }
  0x46   : > { %179 = vrot.lane.b32.xlu1 %v593_v5, %s554_s23  ;;  %170 = vrot.lane.b32.xlu0 %v539_v6, %s553_s22 }
  0x4a   : > { %183 = vrot.lane.b32.xlu1 %v591_v4, %s554_s23  ;;  %181 = vrot.lane.b32.xlu0 %v585_v2, %s554_s23 }
  0x4e   : > { %162 = vrot.lane.b32.xlu1 %v587_v3, %s553_s22  ;;  %185 = vrot.lane.b32.xlu0 %v539_v6, %s554_s23 }
  0x52   : > { %149 = vrot.lane.b32.xlu1 %v593_v5, %s556_s24  ;;  %177 = vrot.lane.b32.xlu0 %v587_v3, %s554_s23 }
  0x56   : > { %153 = vrot.lane.b32.xlu1 %v591_v4, %s556_s24  ;;  %151 = vrot.lane.b32.xlu0 %v585_v2, %s556_s24 }
  0x5a   : > { %147 = vrot.lane.b32.xlu1 %v587_v3, %s556_s24  ;;  %155 = vrot.lane.b32.xlu0 %v539_v6, %s556_s24 }
  0x80   : > { %v257_v8 = vpop.permute.xlu1 %256  ;;  %v253_v9 = vpop.permute.xlu0 %252 }
  0x84   : > { %v259_v10 = vpop.permute.xlu1 %258  ;;  %v255_v11 = vpop.permute.xlu0 %254 }
  0x85   : > { %v264_v12 = vsel %vm262_vm0, %v255_v11, %v257_v8  ;;  %v263_v13 = vsel %vm262_vm0, %v253_v9, %v255_v11  ;;  %v265_v15 = vsel %vm262_vm0, %v257_v8, %v259_v10 }
  0x86   : > { %508 = vmatprep.subr.msk.bf16.mxu0 %vm267_vm1, %v264_v12  ;;  %v338_v14 = vsel %vm267_vm1, %v263_v13, 0  ;;  %v344_v19 = vsel %vm267_vm1, %v265_v15, 0 }
  0x87   : > { %356 = vmatpush1.bf16.msra.mxu0 %v338_v14 }
  0x88   : > { %v225_v16 = vpop.permute.xlu1 %224  ;;  %v261_v17 = vpop.permute.xlu0 %260 }
  0x89   : > { %v266_v18 = vsel %vm262_vm0, %v259_v10, %v261_v17 }
  0x8a   : > { %510 = vmatprep.subr.msk.bf16.mxu1 %vm267_vm1, %v266_v18 }
  0x8b   : > { %397 = vmatpush1.bf16.msra.mxu1 %v344_v19 }
  0x8c   : > { %v229_v20 = vpop.permute.xlu1 %228  ;;  %v227_v21 = vpop.permute.xlu0 %226 }
  0x8d   : > { %v234_v26 = vsel %vm232_vm2, %v225_v16, %v227_v21  ;;  %v235_v34 = vsel %vm232_vm2, %v227_v21, %v229_v20 }
  0x90   : > { %v240_v22 = vpop.permute.xlu1 %239  ;;  %v231_v23 = vpop.permute.xlu0 %230 }
  0x91   : > { %v236_v32 = vsel %vm232_vm2, %v229_v20, %v231_v23 }
  0x94   : > { %v244_v24 = vpop.permute.xlu1 %243  ;;  %v242_v25 = vpop.permute.xlu0 %241 }
  0x95   : > { %v249_v27 = vsel %vm247_vm3, %v240_v22, %v242_v25  ;;  %v250_v29 = vsel %vm247_vm3, %v242_v25, %v244_v24 }
  0x96   : > { %v322_v28 = vsel %vm267_vm1, %v234_v26, %v249_v27  ;;  %v326_v36 = vsel %vm267_vm1, %v235_v34, %v250_v29 }
  0x97   : > { %357 = vmatprep.subr.bf16.mxu0 %v322_v28 }
  0x98   : > { %v223_v30 = vpop.permute.xlu1 %222  ;;  %v246_v31 = vpop.permute.xlu0 %245 }
  0x99   : > { %v251_v33 = vsel %vm247_vm3, %v244_v24, %v246_v31  ;;  %v233_v39 = vsel %vm232_vm2, %v223_v30, %v225_v16 }
  0x9a   : > { %v330_v35 = vsel %vm267_vm1, %v236_v32, %v251_v33 }
  0x9b   : > { %398 = vmatprep.subr.bf16.mxu1 %v330_v35 }
  0x9c   : > { %v195_v37 = vpop.permute.xlu1 %194  ;;  %399 = vmatpush1.bf16.msra.mxu1 %v326_v36  ;;  %v238_v38 = vpop.permute.xlu0 %237 }
  0x9d   : > { %v248_v40 = vsel %vm247_vm3, %v238_v38, %v240_v22 }
  0x9e   : > { %v318_v41 = vsel %vm267_vm1, %v233_v39, %v248_v40 }
  0x9f   : > { %358 = vmatpush1.bf16.msra.mxu0 %v318_v41 }
  0xa0   : > { %v199_v42 = vpop.permute.xlu1 %198  ;;  %v197_v43 = vpop.permute.xlu0 %196 }
  0xa1   : > { %v204_v48 = vsel %vm202_vm4, %v195_v37, %v197_v43  ;;  %v205_v56 = vsel %vm202_vm4, %v197_v43, %v199_v42 }
  0xa4   : > { %v210_v44 = vpop.permute.xlu1 %209  ;;  %v201_v45 = vpop.permute.xlu0 %200 }
  0xa5   : > { %v206_v54 = vsel %vm202_vm4, %v199_v42, %v201_v45 }
  0xa8   : > { %v214_v46 = vpop.permute.xlu1 %213  ;;  %v212_v47 = vpop.permute.xlu0 %211 }
  0xa9   : > { %v219_v49 = vsel %vm217_vm5, %v210_v44, %v212_v47  ;;  %v220_v51 = vsel %vm217_vm5, %v212_v47, %v214_v46 }
  0xaa   : > { %v306_v50 = vsel %vm267_vm1, %v204_v48, %v219_v49  ;;  %v310_v58 = vsel %vm267_vm1, %v205_v56, %v220_v51 }
  0xab   : > { %359 = vmatprep.subr.bf16.mxu0 %v306_v50 }
  0xac   : > { %v193_v52 = vpop.permute.xlu1 %192  ;;  %v216_v53 = vpop.permute.xlu0 %215 }
  0xad   : > { %v221_v55 = vsel %vm217_vm5, %v214_v46, %v216_v53  ;;  %v203_v61 = vsel %vm202_vm4, %v193_v52, %v195_v37 }
  0xae   : > { %v314_v57 = vsel %vm267_vm1, %v206_v54, %v221_v55 }
  0xaf   : > { %400 = vmatprep.subr.bf16.mxu1 %v314_v57 }
  0xb0   : > { %v165_v59 = vpop.permute.xlu1 %164  ;;  %401 = vmatpush1.bf16.msra.mxu1 %v310_v58  ;;  %v208_v60 = vpop.permute.xlu0 %207 }
  0xb1   : > { %v218_v62 = vsel %vm217_vm5, %v208_v60, %v210_v44 }
  0xb2   : > { %v302_v63 = vsel %vm267_vm1, %v203_v61, %v218_v62 }
  0xb3   : > { %360 = vmatpush1.bf16.msra.mxu0 %v302_v63 }
  0xb4   : > { %v169_v0 = vpop.permute.xlu1 %168  ;;  %v167_v1 = vpop.permute.xlu0 %166 }
  0xb5   : > { %v174_v10 = vsel %vm172_vm6, %v165_v59, %v167_v1  ;;  %v175_v18 = vsel %vm172_vm6, %v167_v1, %v169_v0 }
  0xb8   : > { %v180_v6 = vpop.permute.xlu1 %179  ;;  %v171_v7 = vpop.permute.xlu0 %170 }
  0xb9   : > { %v176_v16 = vsel %vm172_vm6, %v169_v0, %v171_v7 }
  0xbc   : > { %v184_v8 = vpop.permute.xlu1 %183  ;;  %v182_v9 = vpop.permute.xlu0 %181 }
  0xbd   : > { %v189_v11 = vsel %vm187_vm7, %v180_v6, %v182_v9  ;;  %v190_v13 = vsel %vm187_vm7, %v182_v9, %v184_v8 }
  0xbe   : > { %v290_v12 = vsel %vm267_vm1, %v174_v10, %v189_v11  ;;  %v294_v20 = vsel %vm267_vm1, %v175_v18, %v190_v13 }
  0xbf   : > { %361 = vmatprep.subr.bf16.mxu0 %v290_v12 }
  0xc0   : > { %v163_v14 = vpop.permute.xlu1 %162  ;;  %v186_v15 = vpop.permute.xlu0 %185 }
  0xc1   : > { %v191_v17 = vsel %vm187_vm7, %v184_v8, %v186_v15  ;;  %v173_v23 = vsel %vm172_vm6, %v163_v14, %v165_v59 }
  0xc2   : > { %v298_v19 = vsel %vm267_vm1, %v176_v16, %v191_v17 }
  0xc3   : > { %402 = vmatprep.subr.bf16.mxu1 %v298_v19 }
  0xc4   : > { %v150_v21 = vpop.permute.xlu1 %149  ;;  %403 = vmatpush1.bf16.msra.mxu1 %v294_v20  ;;  %v178_v22 = vpop.permute.xlu0 %177 }
  0xc5   : > { %v188_v24 = vsel %vm187_vm7, %v178_v22, %v180_v6 }
  0xc6   : > { %v286_v25 = vsel %vm267_vm1, %v173_v23, %v188_v24 }
  0xc7   : > { %362 = vmatpush1.bf16.msra.mxu0 %v286_v25 }
  0xc8   : > { %v154_v26 = vpop.permute.xlu1 %153  ;;  %v152_v27 = vpop.permute.xlu0 %151 }
  0xc9   : > { %v159_v28 = vsel %vm157_vm8, %v150_v21, %v152_v27  ;;  %v160_v30 = vsel %vm157_vm8, %v152_v27, %v154_v26 }
  0xca   : > { %v274_v29 = vsel %vm267_vm1, %v593_v5, %v159_v28  ;;  %v278_v37 = vsel %vm267_vm1, %v585_v2, %v160_v30  ;;  %v332_v5 = vld [vmem:[%s685_s1] sm:$0xf] }
  0xcb   : > { %363 = vmatprep.subr.bf16.mxu0 %v274_v29 }
  0xcc   : > { %v148_v31 = vpop.permute.xlu1 %147  ;;  %v156_v32 = vpop.permute.xlu0 %155 }
  0xcd   : > { %v158_v33 = vsel %vm157_vm8, %v148_v31, %v150_v21  ;;  %v161_v34 = vsel %vm157_vm8, %v154_v26, %v156_v32 }
  0xce   : > { %v270_v35 = vsel %vm267_vm1, %v587_v3, %v158_v33  ;;  %v282_v36 = vsel %vm267_vm1, %v591_v4, %v161_v34 }
  0xcf   : > { %364 = vmatpush1.bf16.msra.mxu0 %v270_v35  ;;  %404 = vmatprep.subr.bf16.mxu1 %v282_v36 }
  0xd0   : > { %405 = vmatpush1.bf16.msra.mxu1 %v278_v37 }
  0xd2   : > { %509 = vmatmul.mubr.msk.bf16.vlgmr.msra.gmra.mxu0 %vm333_vm9, %v332_v5 }
  0xd3   : > { %511 = vmatmul.mubr.msk.bf16.vlgmr.msra.gmra.mxu1 %vm333_vm9, %v332_v5 }
 0x192   : > { %v383_v3 = vpop.f32.mrf.mxu0 }
 0x193   : > { %v424_v4 = vpop.f32.mrf.mxu1 }
 0x194   : > { %v385_v2 = vpop.f32.mrf.mxu0 }
 0x195   : > { %v516_v38 = vpack.c.bf16 %v385_v2, %v383_v3  ;;  %v426_v39 = vpop.f32.mrf.mxu1 }
 0x196   : > { %v517_v40 = vpack.c.bf16 %v426_v39, %v424_v4  ;;  %v387_v41 = vpop.f32.mrf.mxu0 }
 0x197   : > { %447 = vst [vmem:[%s123_s3] sm:$0xff] %v516_v38  ;;  %v428_v42 = vpop.f32.mrf.mxu1 }
 0x198   : > { %448 = vst [vmem:[%s123_s3 + $0x8] sm:$0xff] %v517_v40  ;;  %v388_v43 = vpop.f32.mrf.mxu0 }
 0x199   : > { %v429_v44 = vpop.f32.mrf.mxu1 }
 0x19a PF: > { %s12_s9 = sadd.s32 1, %s546_s9  }
 0x19b   : > { %p9_p4 = scmp.ge.s32.totalorder %s12_s9, 4  }
 0x19d   :  { %11 = sbr.rel (!%p9_p4) target bundleno = 1 (0x1), region = 56 }

// kernel: basic_encoder_forward.21
= control target key start
LH: loop header
LB: loop body
LE: loop exit
PB: predicated region body
PF: predicated region fallthrough
CT: control target
= control target key end

     0   :  { %s536_s15 = smov 0   ;;  %s538_s16 = smov 0   ;;  %s606_s0 = inlined_call_operand.vmem [shape: bf16[16,512], index: 0, kind: input, shape index: {}]   ;;  %s607_s1 = inlined_call_operand.vmem [shape: f32[16,1], index: 1, kind: input, shape index: {}]   ;;  %s608_s2 = inlined_call_operand.vmem [shape: f32[16,1], index: 2, kind: input, shape index: {}]   ;;  %s609_s3 = inlined_call_operand.vmem [shape: f32[1,512], index: 3, kind: input, shape index: {}]   ;;  %s610_s4 = inlined_call_operand.vmem [shape: bf16[16,512], index: 4, kind: output, shape index: {}]  }
   0x1   :  { %s540_s17 = smov 0  }
   0x2 LB: > { %s549_s18 = sadd.s32 4294967295, %s508_s17   ;;  %s551_s19 = sadd.s32 1, %s508_s17   ;;  %s508_s17 = sphi %s540_s17, %s614_s17   ;;  %s504_s16 = sphi %s538_s16, %s613_s16   ;;  %s500_s15 = sphi %s536_s15, %s612_s15  }
   0x3   : > { %s18_s20 = ssub.s32 %s508_s17, %s551_s19  ;;  %s21_s21 = sadd.s32 1, %s504_s16 }
   0x4   : > { %p19_p0 = scmp.eq.s32.totalorder %s18_s20, 0  ;;  %p28_p1 = scmp.ne.s32.totalorder %s504_s16, %s500_s15 }
   0x5   : > { %p29_p2 = scmp.eq.s32.totalorder %s508_s17, 0  ;;  %p126_p3 = scmp.eq.s32.totalorder %s549_s18, 1 }
   0x6   : > { %s559_s22 = scalar_select %p19_p0, %s504_s16, %s21_s21  }
   0x7   : > { %p30_p4 = por %p29_p2, %p28_p1  ;;  %p561_p5 = por %p126_p3, %p28_p1 }
   0x8   : > { %p440_p6 = scmp.ge.s32.totalorder %s508_s17, 2 }
   0xa   : > { %154 = sbr.rel (%p440_p6) target bundleno = 20 (0x14), region = 24 }
   0xf   : > { %157 = sbr.rel (!%p30_p4) target bundleno = 20 (0x14), region = 28  ;;  %s159_s24 = sand.u32 (%p30_p4), 1, %s504_s16  }
  0x10   : > { %s455_s25 = sshll.u32 (%p30_p4), %s508_s17, 3  ;;  %s441_s26 = sshll.u32 (%p30_p4), %s159_s24, 4 }
  0x11   : > { %s164_s29 = scalar_lea.vmem (%p30_p4), %s606_s0, %s455_s25  ;;  %s161_s30 = scalar_lea.vmem (%p30_p4), [#allocation2], %s441_s26 }
  0x12   : > { %v195_v0 = vld [vmem:[%s164_s29] sm:$0xff] (%p30_p4)  ;;  %v197_v1 = vld [vmem:[%s164_s29 + $0x10] sm:$0xff] (%p30_p4) }
  0x13   : > { %196 = vst [vmem:[%s161_s30] sm:$0xff] (%p30_p4), %v195_v0  ;;  %198 = vst [vmem:[%s161_s30 + $0x8] sm:$0xff] (%p30_p4), %v197_v1 }
  0x14 PF: > { %p444_p7 = scmp.ge.s32.totalorder %s508_s17, 1  ;;  %p211_p8 = scmp.lt.s32.totalorder %s508_s17, 3 }
  0x16   : > { %p212_p9 = pnand %p444_p7, %p211_p8 }
  0x17   : > { %s218_s13 = sand.u32 (!%p212_p9), 1, %s500_s15   ;;  %s447_s14 = sshll.u32 (!%p212_p9), %s549_s18, 1 }
  0x18   : > { %215 = sbr.rel (%p212_p9) target bundleno = 178 (0xb2), region = 70  ;;  %s583_s17 = sshll.u32 (!%p212_p9), %s218_s13, 4 }
  0x19   : > { %p248_p10 = scmp.lt.s32.totalorder (!%p212_p9), %s447_s14, 3  ;;  %s220_s20 = scalar_lea.vmem (!%p212_p9), [#allocation2], %s583_s17 }
  0x1a   : > { %s245_s15 = scalar_lea.vmem (!%p212_p9), [#allocation3], %s583_s17 }
  0x1d   : > { %v275_v2 = vld [vmem:[%s608_s2] sm:$0xff]  ;;  %v510_v4 = vmov 0   ;;  %v276_v5 = vld [vmem:[%s608_s2 + $0x8] sm:$0xff]  ;;  %v297_v7 = vlaneseq  ;;  %s616_s14 = smov (!%p248_p10, %s447_s14), 3  ;;  %s458_s26 = sshll.u32 (%p561_p5), %s549_s18, 3 }
  0x1e   : > { %v259_v3 = vld [vmem:[%s607_s1] sm:$0xff]  ;;  %485 = vset.pattern.permute.xlu1 %v510_v4  ;;  %484 = vset.pattern.permute.xlu0 %v510_v4  ;;  %v260_v6 = vld [vmem:[%s607_s1 + $0x8] sm:$0xff]  ;;  %s250_s25 = scalar_lea.vmem %s609_s3, %s616_s14  ;;  %s334_s29 = scalar_lea.vmem (%p561_p5), %s610_s4, %s458_s26 }
  0x1f   : > { %279 = vperm.xlu1 %485, %v275_v2   ;;  %263 = vperm.xlu0 %484, %v259_v3   ;;  %v253_v8 = vld [vmem:[%s220_s20] sm:$0xff]  ;;  %v298_v9 = vshrl.u32 %v297_v7, 7  ;;  %v254_v12 = vld [vmem:[%s220_s20 + $0x8] sm:$0xff] }
  0x20   : > { %v255_v10 = vunpack.c.l.bf16 %v253_v8  ;;  %v256_v11 = vunpack.c.h.bf16 %v253_v8  ;;  %v295_v17 = vld [vmem:[%s250_s25] sm:$0x3]  ;;  %v257_v20 = vunpack.c.l.bf16 %v254_v12  ;;  %v258_v21 = vunpack.c.h.bf16 %v254_v12 }
  0x21   : > { %v299_v13 = vsub.s32 0, %v298_v9  ;;  %v303_v14 = vsub.s32 1, %v298_v9 }
  0x23   : > { %284 = vperm.xlu1 %485, %v276_v5   ;;  %268 = vperm.xlu0 %484, %v260_v6   ;;  %v300_v24 = vrot.slane %v295_v17, %v299_v13  ;;  %v304_v25 = vrot.slane %v295_v17, %v303_v14 }
  0x9a   : > { %v280_v15 = vpop.permute.xlu1 %279  ;;  %v264_v16 = vpop.permute.xlu0 %263 }
  0x9b   : > { %v271_v18 = vmul.f32 %v264_v16, %v255_v10  ;;  %v272_v19 = vmul.f32 %v264_v16, %v256_v11 }
  0x9d   : > { %v287_v22 = vadd.f32 %v280_v15, %v271_v18  ;;  %v288_v23 = vadd.f32 %v280_v15, %v272_v19 }
  0x9e   : > { %v269_v26 = vpop.permute.xlu0 %268  ;;  %v285_v31 = vpop.permute.xlu1 %284 }
  0x9f   : > { %v291_v27 = vmax.f32 %v287_v22, 0.0  ;;  %v292_v28 = vmax.f32 %v288_v23, 0.0  ;;  %v273_v29 = vmul.f32 %v269_v26, %v257_v20  ;;  %v274_v30 = vmul.f32 %v269_v26, %v258_v21 }
  0xa1   : > { %v307_v32 = vmul.f32 %v300_v24, %v291_v27  ;;  %v308_v33 = vmul.f32 %v304_v25, %v292_v28  ;;  %v289_v34 = vadd.f32 %v285_v31, %v273_v29  ;;  %v290_v35 = vadd.f32 %v285_v31, %v274_v30 }
  0xa3   : > { %v456_v36 = vpack.c.bf16 %v308_v33, %v307_v32  ;;  %v293_v37 = vmax.f32 %v289_v34, 0.0  ;;  %v294_v38 = vmax.f32 %v290_v35, 0.0 }
  0xa5   : > { %323 = vst [vmem:[%s245_s15] sm:$0xff] %v456_v36  ;;  %v309_v39 = vmul.f32 %v300_v24, %v293_v37  ;;  %v310_v40 = vmul.f32 %v304_v25, %v294_v38  ;;  %331 = sbr.rel (!%p561_p5) target bundleno = 178 (0xb2), region = 78 }
  0xa7   : > { %v457_v41 = vpack.c.bf16 %v310_v40, %v309_v39 }
  0xa9   : > { %324 = vst [vmem:[%s245_s15 + $0x8] sm:$0xff] %v457_v41 }
  0xac   : > { %v365_v42 = vld [vmem:[%s245_s15] sm:$0xff] }
  0xad   : > { %366 = vst [vmem:[%s334_s29] sm:$0xff] %v365_v42 }
  0xb0   : > { %v367_v43 = vld [vmem:[%s245_s15 + $0x8] sm:$0xff] }
  0xb1   : > { %368 = vst [vmem:[%s334_s29 + $0x10] sm:$0xff] %v367_v43 }
  0xb2 PF: > { %p11_p11 = scmp.ge.s32.totalorder %s551_s19, 4   ;;  %s612_s15 = smov %s504_s16 }
  0xb3   : > { %s613_s16 = smov %s559_s22  ;;  %s614_s17 = smov %s551_s19 }
  0xb4   :  { %13 = sbr.rel (!%p11_p11) target bundleno = 2 (0x2), region = 150 }

// kernel: basic_encoder_forward.20
= control target key start
LH: loop header
LB: loop body
LE: loop exit
PB: predicated region body
PF: predicated region fallthrough
CT: control target
= control target key end

     0   :  { %s916_s9 = smov 0   ;;  %s918_s10 = smov 0   ;;  %s1182_s0 = inlined_call_operand.vmem [shape: bf16[32,640], index: 0, kind: input, shape index: {}]   ;;  %s1183_s1 = inlined_call_operand.vmem [shape: bf16[16,200], index: 1, kind: input, shape index: {}]   ;;  %s1184_s2 = inlined_call_operand.vmem [shape: bf16[16,512], index: 2, kind: output, shape index: {}]  }
   0x1   :  { %s920_s11 = smov 0  }
   0x2 LB: > { %s929_s12 = sadd.s32 4294967295, %s887_s11   ;;  %s931_s13 = sadd.s32 1, %s887_s11   ;;  %s887_s11 = sphi %s920_s11, %s1188_s11   ;;  %s883_s10 = sphi %s918_s10, %s1187_s10   ;;  %s879_s9 = sphi %s916_s9, %s1186_s9  }
   0x3   : > { %s58_s14 = ssub.s32 %s887_s11, %s931_s13  ;;  %s61_s15 = sadd.s32 1, %s883_s10 }
   0x4   : > { %p59_p0 = scmp.eq.s32.totalorder %s58_s14, 0  ;;  %p71_p1 = scmp.ne.s32.totalorder %s883_s10, %s879_s9 }
   0x5   : > { %p72_p2 = scmp.eq.s32.totalorder %s929_s12, 1  ;;  %p777_p3 = scmp.ge.s32.totalorder %s887_s11, 1 }
   0x6   : > { %s939_s16 = scalar_select %p59_p0, %s883_s10, %s61_s15  }
   0x7   : > { %p941_p4 = por %p72_p2, %p71_p1  ;;  %p102_p5 = scmp.lt.s32.totalorder %s887_s11, 3 }
   0x9   : > { %p103_p6 = pnand %p777_p3, %p102_p5 }
   0xa   : > { %s779_s18 = sshll.u32 (!%p103_p6), %s929_s12, 8  ;;  %s889_s24 = smov (!%p103_p6), 102  }
   0xb   : > { %106 = sbr.rel (%p103_p6) target bundleno = 478 (0x1de), region = 28  ;;  %s121_s19 = sshra.s32 (!%p103_p6), %s779_s18, 7 }
   0xc   : > { %s780_s20 = sshll.u32 (!%p103_p6), %s121_s19, 2  ;;  %s890_s25 = smov (!%p103_p6), 104  }
   0xd   : > { %s949_s23 = scalar_lea.vmem (!%p103_p6), %s1182_s0, %s780_s20  ;;  %s891_s26 = smov (!%p103_p6), 103  }
   0xe   : > { %s892_s27 = smov (!%p103_p6), 116   ;;  %s893_s28 = smov (!%p103_p6), 115  }
   0xf   : > { %s894_s29 = smov (!%p103_p6), 114   ;;  %s895_s30 = smov (!%p103_p6), 127  }
  0x10   : > { %v952_v0 = vld [vmem:[%s949_s23 + $0x8] ss:$0 sps:$4 sm:$0xff]   ;;  %v125_v1 = vld [vmem:[%s949_s23] sm:$0xff]  ;;  %v242_v3 = vld [vmem:[%s949_s23 + $0x14] sm:$0xff]  ;;  %s896_s3 = smov 126   ;;  %v897_v11 = vmov 0  }
  0x11   : > { %v955_v2 = vcombine.low %v125_v1, %v125_v1  ;;  %202 = vrot.lane.b32.xlu1 %v952_v0, %s889_s24  ;;  %v959_v4 = vcombine.high %v242_v3, %v242_v3  ;;  %v962_v5 = vcombine.high %v125_v1, %v125_v1  ;;  %v852_v6 = vld [vmem:[%s949_s23 + $0x1c] ss:$0 sps:$4 sm:$0xff]   ;;  %v968_v7 = vcombine.low %v242_v3, %v242_v3  ;;  %v423_v8 = vld [vmem:[%s949_s23 + $0x28] sm:$0xff]  ;;  %v854_v9 = vld [vmem:[%s949_s23 + $0x30] ss:$0 sps:$4 sm:$0xff]   ;;  %s898_s6 = smov 56  }
  0x12   : > { %v1016_v10 = vcombine.high %v423_v8, %v423_v8  ;;  %359 = vmatprep.mubr.bf16.mxu0 %v897_v11  ;;  %412 = vmatprep.mubr.bf16.mxu1 %v897_v11  ;;  %v1023_v12 = vcombine.low %v423_v8, %v423_v8  ;;  %v1034_v13 = vld [vmem:[%s1183_s1] ss:$8 sps:$4 sm:$0xff]   ;;  %v858_v15 = vld [vmem:[%s949_s23 + $0x44] ss:$0 sps:$4 sm:$0xff]   ;;  %vm204_vm0 = vcmask 834560   ;;  %vm207_vm1 = vcmask 1043456  }
  0x13   : > { %198 = vrot.lane.b32.xlu0 %v955_v2, %s889_s24  ;;  %v563_v14 = vld [vmem:[%s949_s23 + $0x3c] sm:$0xff]  ;;  %v861_v27 = vld [vmem:[%s1183_s1 + $0x4] ss:$8 sps:$4 sm:$0xff]   ;;  %vm186_vm2 = vcmask 850944   ;;  %vm195_vm3 = vcmask 842752   ;;  %s899_s15 = smov 8  }
  0x14   : > { %v1053_v16 = vcombine.high %v563_v14, %v563_v14  ;;  %v1059_v17 = vcombine.low %v563_v14, %v563_v14  ;;  %v863_v28 = vld [vmem:[%s1183_s1] ss:$8 sps:$4 sm:$0xff]   ;;  %v864_v34 = vld [vmem:[%s1183_s1 + $0x4] ss:$8 sps:$4 sm:$0xff]   ;;  %s900_s20 = smov 88   ;;  %vm159_vm4 = vcmask 949248  }
  0x15   : > { %278 = vrot.lane.b32.xlu1 %v959_v4, %s890_s25  ;;  %vm168_vm5 = vcmask 941056   ;;  %vm177_vm6 = vcmask 932864   ;;  %vm141_vm7 = vcmask 1039360   ;;  %vm150_vm8 = vcmask 1031168   ;;  %s115_s21 = sand.u32 1, %s879_s9   ;;  %s811_s9 = sshll.u32 (%p941_p4), %s929_s12, 3 }
  0x16   : > { %vm323_vm9 = vcmask 392192   ;;  %vm370_vm10 = vcmask 588800   ;;  %vm511_vm11 = vcmask 64512   ;;  %vm622_vm12 = vcmask 261120   ;;  %s778_s22 = sshll.u32 %s115_s21, 4 }
  0x17   : > { %200 = vrot.lane.b32.xlu0 %v962_v5, %s889_s24  ;;  %s117_s23 = scalar_lea.vmem [#allocation2], %s778_s22 }
  0x19   : > { %286 = vrot.lane.b32.xlu1 %v959_v4, %s891_s26 }
  0x1b   : > { %280 = vrot.lane.b32.xlu0 %v852_v6, %s890_s25 }
  0x1d   : > { %276 = vrot.lane.b32.xlu1 %v968_v7, %s890_s25 }
  0x1f   : > { %288 = vrot.lane.b32.xlu0 %v852_v6, %s891_s26 }
  0x21   : > { %182 = vrot.lane.b32.xlu1 %v962_v5, %s890_s25 }
  0x23   : > { %284 = vrot.lane.b32.xlu0 %v968_v7, %s891_s26 }
  0x25   : > { %191 = vrot.lane.b32.xlu1 %v962_v5, %s891_s26 }
  0x27   : > { %184 = vrot.lane.b32.xlu0 %v952_v0, %s890_s25 }
  0x29   : > { %180 = vrot.lane.b32.xlu1 %v955_v2, %s890_s25 }
  0x2b   : > { %193 = vrot.lane.b32.xlu0 %v952_v0, %s891_s26 }
  0x2d   : > { %262 = vrot.lane.b32.xlu1 %v959_v4, %s892_s27 }
  0x2f   : > { %189 = vrot.lane.b32.xlu0 %v955_v2, %s891_s26  ;;  %s696_s26 = scalar_lea.vmem (%p941_p4), %s1184_s2, %s811_s9 }
  0x31   : > { %270 = vrot.lane.b32.xlu1 %v959_v4, %s893_s28 }
  0x33   : > { %264 = vrot.lane.b32.xlu0 %v852_v6, %s892_s27 }
  0x35   : > { %260 = vrot.lane.b32.xlu1 %v968_v7, %s892_s27 }
  0x37   : > { %272 = vrot.lane.b32.xlu0 %v852_v6, %s893_s28 }
  0x39   : > { %164 = vrot.lane.b32.xlu1 %v962_v5, %s893_s28 }
  0x3b   : > { %268 = vrot.lane.b32.xlu0 %v968_v7, %s893_s28 }
  0x3d   : > { %173 = vrot.lane.b32.xlu1 %v962_v5, %s894_s29 }
  0x3f   : > { %166 = vrot.lane.b32.xlu0 %v952_v0, %s893_s28 }
  0x41   : > { %162 = vrot.lane.b32.xlu1 %v955_v2, %s893_s28 }
  0x43   : > { %175 = vrot.lane.b32.xlu0 %v952_v0, %s894_s29 }
  0x45   : > { %254 = vrot.lane.b32.xlu1 %v959_v4, %s895_s30 }
  0x47   : > { %171 = vrot.lane.b32.xlu0 %v955_v2, %s894_s29 }
  0x49   : > { %252 = vrot.lane.b32.xlu1 %v968_v7, %s895_s30 }
  0x4b   : > { %256 = vrot.lane.b32.xlu0 %v852_v6, %s895_s30 }
  0x4d   : > { %148 = vrot.lane.b32.xlu1 %v952_v0, %s896_s3 }
  0x4f   : > { %146 = vrot.lane.b32.xlu0 %v962_v5, %s896_s3 }
  0x51   : > { %157 = vrot.lane.b32.xlu1 %v952_v0, %s892_s27 }
  0x53   : > { %155 = vrot.lane.b32.xlu0 %v962_v5, %s892_s27 }
  0x55   : > { %153 = vrot.lane.b32.xlu1 %v955_v2, %s892_s27 }
  0x57   : > { %144 = vrot.lane.b32.xlu0 %v955_v2, %s896_s3 }
  0x59   : > { %461 = vrot.lane.b32.xlu1 %v854_v9, %s893_s28 }
  0x5b   : > { %459 = vrot.lane.b32.xlu0 %v1016_v10, %s893_s28 }
  0x5d   : > { %469 = vrot.lane.b32.xlu1 %v854_v9, %s894_s29 }
  0x5f   : > { %467 = vrot.lane.b32.xlu0 %v1016_v10, %s894_s29 }
  0x61   : > { %465 = vrot.lane.b32.xlu1 %v1023_v12, %s894_s29 }
  0x63   : > { %457 = vrot.lane.b32.xlu0 %v1023_v12, %s893_s28 }
  0x65   : > { %139 = vrot.lane.b32.xlu1 %v952_v0, %s895_s30 }
  0x67   : > { %137 = vrot.lane.b32.xlu0 %v962_v5, %s895_s30 }
  0x69   : > { %321 = vrot.lane.b32.xlu1 %v1034_v13, %s898_s6 }
  0x6b   : > { %135 = vrot.lane.b32.xlu0 %v955_v2, %s895_s30 }
  0x6d   : > { %445 = vrot.lane.b32.xlu1 %v854_v9, %s896_s3 }
  0x6f   : > { %443 = vrot.lane.b32.xlu0 %v1016_v10, %s896_s3 }
  0x71   : > { %453 = vrot.lane.b32.xlu1 %v854_v9, %s892_s27 }
  0x73   : > { %451 = vrot.lane.b32.xlu0 %v1016_v10, %s892_s27 }
  0x75   : > { %449 = vrot.lane.b32.xlu1 %v1023_v12, %s892_s27 }
  0x77   : > { %441 = vrot.lane.b32.xlu0 %v1023_v12, %s896_s3 }
  0x79   : > { %585 = vrot.lane.b32.xlu1 %v858_v15, %s892_s27 }
  0x7b   : > { %583 = vrot.lane.b32.xlu0 %v1053_v16, %s892_s27 }
  0x7d   : > { %593 = vrot.lane.b32.xlu1 %v858_v15, %s893_s28 }
  0x7f   : > { %591 = vrot.lane.b32.xlu0 %v1053_v16, %s893_s28 }
  0x81   : > { %589 = vrot.lane.b32.xlu1 %v1059_v17, %s893_s28 }
  0x83   : > { %581 = vrot.lane.b32.xlu0 %v1059_v17, %s892_s27  ;;  %v203_v18 = vpop.permute.xlu1 %202 }
  0x85   : > { %v199_v19 = vpop.permute.xlu0 %198  ;;  %437 = vrot.lane.b32.xlu1 %v854_v9, %s895_s30 }
  0x87   : > { %435 = vrot.lane.b32.xlu0 %v1016_v10, %s895_s30  ;;  %v279_v20 = vpop.permute.xlu1 %278 }
  0x89   : > { %v201_v21 = vpop.permute.xlu0 %200  ;;  %575 = vrot.lane.b32.xlu1 %v1053_v16, %s895_s30 }
  0x8a   : > { %v206_v22 = vsel %vm204_vm0, %v201_v21, %v203_v18  ;;  %v205_v23 = vsel %vm204_vm0, %v199_v19, %v201_v21 }
  0x8b   : > { %433 = vrot.lane.b32.xlu0 %v1023_v12, %s895_s30  ;;  %789 = vmatprep.subr.msk.bf16.mxu1 %vm207_vm1, %v206_v22  ;;  %v375_v24 = vsel %vm207_vm1, %v205_v23, 0  ;;  %v287_v25 = vpop.permute.xlu1 %286 }
  0x8c   : > { %387 = vmatpush1.bf16.msra.mxu1 %v375_v24 }
  0x8d   : > { %v281_v26 = vpop.permute.xlu0 %280  ;;  %573 = vrot.lane.b32.xlu1 %v1059_v17, %s895_s30 }
  0x8e   : > { %v283_v31 = vsel %vm186_vm2, %v279_v20, %v281_v26 }
  0x8f   : > { %577 = vrot.lane.b32.xlu0 %v858_v15, %s895_s30  ;;  %v277_v29 = vpop.permute.xlu1 %276 }
  0x90   : > { %v282_v37 = vsel %vm186_vm2, %v277_v29, %v279_v20 }
  0x91   : > { %v289_v30 = vpop.permute.xlu0 %288  ;;  %509 = vrot.lane.b32.xlu1 %v861_v27, %s899_s15 }
  0x92   : > { %v291_v32 = vsel %vm195_vm3, %v287_v25, %v289_v30 }
  0x93   : > { %507 = vrot.lane.b32.xlu0 %v863_v28, %s899_s15  ;;  %v314_v33 = vsel %vm207_vm1, %v283_v31, %v291_v32  ;;  %v183_v35 = vpop.permute.xlu1 %182 }
  0x94   : > { %337 = vmatprep.subr.bf16.mxu0 %v314_v33 }
  0x95   : > { %v285_v36 = vpop.permute.xlu0 %284 }
  0x96   : > { %v290_v38 = vsel %vm195_vm3, %v285_v36, %v287_v25 }
  0x97   : > { %620 = vrot.lane.b32.xlu0 %v864_v34, %s900_s20  ;;  %v310_v39 = vsel %vm207_vm1, %v282_v37, %v290_v38  ;;  %v192_v40 = vpop.permute.xlu1 %191 }
  0x98   : > { %338 = vmatpush1.bf16.msra.mxu0 %v310_v39 }
  0x99   : > { %v185_v41 = vpop.permute.xlu0 %184 }
  0x9a   : > { %v188_v44 = vsel %vm186_vm2, %v183_v35, %v185_v41 }
  0x9b   : > { %v181_v42 = vpop.permute.xlu1 %180 }
  0x9c   : > { %v187_v49 = vsel %vm186_vm2, %v181_v42, %v183_v35 }
  0x9d   : > { %v194_v43 = vpop.permute.xlu0 %193 }
  0x9e   : > { %v197_v45 = vsel %vm195_vm3, %v192_v40, %v194_v43 }
  0x9f   : > { %v238_v46 = vsel %vm207_vm1, %v188_v44, %v197_v45  ;;  %v263_v47 = vpop.permute.xlu1 %262 }
  0xa0   : > { %388 = vmatprep.subr.bf16.mxu1 %v238_v46 }
  0xa1   : > { %v190_v48 = vpop.permute.xlu0 %189 }
  0xa2   : > { %v196_v50 = vsel %vm195_vm3, %v190_v48, %v192_v40 }
  0xa3   : > { %v234_v51 = vsel %vm207_vm1, %v187_v49, %v196_v50  ;;  %v271_v52 = vpop.permute.xlu1 %270 }
  0xa4   : > { %389 = vmatpush1.bf16.msra.mxu1 %v234_v51 }
  0xa5   : > { %v265_v53 = vpop.permute.xlu0 %264 }
  0xa6   : > { %v267_v56 = vsel %vm159_vm4, %v263_v47, %v265_v53 }
  0xa7   : > { %v261_v54 = vpop.permute.xlu1 %260 }
  0xa8   : > { %v266_v61 = vsel %vm159_vm4, %v261_v54, %v263_v47 }
  0xa9   : > { %v273_v55 = vpop.permute.xlu0 %272 }
  0xaa   : > { %v275_v57 = vsel %vm168_vm5, %v271_v52, %v273_v55 }
  0xab   : > { %v306_v58 = vsel %vm207_vm1, %v267_v56, %v275_v57  ;;  %v165_v59 = vpop.permute.xlu1 %164 }
  0xac   : > { %339 = vmatprep.subr.bf16.mxu0 %v306_v58 }
  0xad   : > { %v269_v60 = vpop.permute.xlu0 %268 }
  0xae   : > { %v274_v62 = vsel %vm168_vm5, %v269_v60, %v271_v52 }
  0xaf   : > { %v302_v63 = vsel %vm207_vm1, %v266_v61, %v274_v62  ;;  %v174_v0 = vpop.permute.xlu1 %173 }
  0xb0   : > { %340 = vmatpush1.bf16.msra.mxu0 %v302_v63 }
  0xb1   : > { %v167_v1 = vpop.permute.xlu0 %166 }
  0xb2   : > { %v170_v8 = vsel %vm168_vm5, %v165_v59, %v167_v1 }
  0xb3   : > { %v163_v3 = vpop.permute.xlu1 %162 }
  0xb4   : > { %v169_v19 = vsel %vm168_vm5, %v163_v3, %v165_v59 }
  0xb5   : > { %v176_v6 = vpop.permute.xlu0 %175 }
  0xb6   : > { %v179_v9 = vsel %vm177_vm6, %v174_v0, %v176_v6 }
  0xb7   : > { %v230_v14 = vsel %vm207_vm1, %v170_v8, %v179_v9  ;;  %v255_v15 = vpop.permute.xlu1 %254 }
  0xb8   : > { %390 = vmatprep.subr.bf16.mxu1 %v230_v14 }
  0xb9   : > { %v172_v18 = vpop.permute.xlu0 %171 }
  0xba   : > { %v178_v20 = vsel %vm177_vm6, %v172_v18, %v174_v0 }
  0xbb   : > { %v226_v21 = vsel %vm207_vm1, %v169_v19, %v178_v20  ;;  %v253_v22 = vpop.permute.xlu1 %252 }
  0xbc   : > { %391 = vmatpush1.bf16.msra.mxu1 %v226_v21  ;;  %v258_v23 = vsel %vm141_vm7, %v253_v22, %v255_v15 }
  0xbd   : > { %v257_v24 = vpop.permute.xlu0 %256  ;;  %v294_v28 = vsel %vm207_vm1, %v968_v7, %v258_v23 }
  0xbe   : > { %v259_v25 = vsel %vm141_vm7, %v255_v15, %v257_v24 }
  0xbf   : > { %v298_v26 = vsel %vm207_vm1, %v959_v4, %v259_v25  ;;  %v149_v27 = vpop.permute.xlu1 %148 }
  0xc0   : > { %341 = vmatprep.subr.bf16.mxu0 %v298_v26 }
  0xc1   : > { %342 = vmatpush1.bf16.msra.mxu0 %v294_v28  ;;  %v147_v29 = vpop.permute.xlu0 %146 }
  0xc2   : > { %v152_v32 = vsel %vm150_vm8, %v147_v29, %v149_v27 }
  0xc3   : > { %v158_v30 = vpop.permute.xlu1 %157 }
  0xc5   : > { %v156_v31 = vpop.permute.xlu0 %155 }
  0xc6   : > { %v161_v33 = vsel %vm159_vm4, %v156_v31, %v158_v30 }
  0xc7   : > { %v222_v34 = vsel %vm207_vm1, %v152_v32, %v161_v33  ;;  %v154_v35 = vpop.permute.xlu1 %153 }
  0xc8   : > { %392 = vmatprep.subr.bf16.mxu1 %v222_v34  ;;  %v160_v4 = vsel %vm159_vm4, %v154_v35, %v156_v31 }
  0xc9   : > { %v145_v36 = vpop.permute.xlu0 %144 }
  0xca   : > { %v151_v37 = vsel %vm150_vm8, %v145_v36, %v147_v29 }
  0xcb   : > { %v218_v7 = vsel %vm207_vm1, %v151_v37, %v160_v4  ;;  %v462_v38 = vpop.permute.xlu1 %461 }
  0xcc   : > { %393 = vmatpush1.bf16.msra.mxu1 %v218_v7 }
  0xcd   : > { %v460_v39 = vpop.permute.xlu0 %459 }
  0xce   : > { %v464_v42 = vsel %vm168_vm5, %v460_v39, %v462_v38 }
  0xcf   : > { %v470_v40 = vpop.permute.xlu1 %469 }
  0xd1   : > { %v468_v41 = vpop.permute.xlu0 %467 }
  0xd2   : > { %v472_v43 = vsel %vm177_vm6, %v468_v41, %v470_v40 }
  0xd3   : > { %v495_v44 = vsel %vm207_vm1, %v464_v42, %v472_v43  ;;  %v466_v45 = vpop.permute.xlu1 %465 }
  0xd4   : > { %526 = vmatprep.subr.bf16.mxu0 %v495_v44  ;;  %v471_v49 = vsel %vm177_vm6, %v466_v45, %v468_v41 }
  0xd5   : > { %v458_v46 = vpop.permute.xlu0 %457 }
  0xd6   : > { %v463_v50 = vsel %vm168_vm5, %v458_v46, %v460_v39 }
  0xd7   : > { %v140_v47 = vpop.permute.xlu1 %139  ;;  %v491_v55 = vsel %vm207_vm1, %v463_v50, %v471_v49 }
  0xd9   : > { %v138_v48 = vpop.permute.xlu0 %137 }
  0xda   : > { %v143_v51 = vsel %vm141_vm7, %v138_v48, %v140_v47 }
  0xdb   : > { %v214_v52 = vsel %vm207_vm1, %v962_v5, %v143_v51  ;;  %v322_v53 = vpop.permute.xlu1 %321 }
  0xdc   : > { %394 = vmatprep.subr.bf16.mxu1 %v214_v52  ;;  %788 = vmatmul.mubr.msk.bf16.vlgmr.msra.gmra.mxu0 %vm323_vm9, %v322_v53 }
  0xdd   : > { %v136_v54 = vpop.permute.xlu0 %135  ;;  %527 = vmatpush1.bf16.msra.mxu0 %v491_v55  ;;  %548 = vmatprep.mubr.bf16.mxu0 %v897_v11 }
  0xde   : > { %v142_v56 = vsel %vm141_vm7, %v136_v54, %v138_v48 }
  0xdf   : > { %v210_v57 = vsel %vm207_vm1, %v955_v2, %v142_v56  ;;  %v446_v58 = vpop.permute.xlu1 %445 }
  0xe0   : > { %395 = vmatpush1.bf16.msra.mxu1 %v210_v57 }
  0xe1   : > { %v444_v59 = vpop.permute.xlu0 %443 }
  0xe2   : > { %v448_v61 = vsel %vm150_vm8, %v444_v59, %v446_v58 }
  0xe3   : > { %790 = vmatmul.mubr.msk.bf16.vlgmr.msra.gmra.mxu1 %vm370_vm10, %v1034_v13  ;;  %v454_v5 = vpop.permute.xlu1 %453 }
  0xe4   : > { %658 = vmatprep.mubr.bf16.mxu1 %v897_v11 }
  0xe5   : > { %v452_v60 = vpop.permute.xlu0 %451 }
  0xe6   : > { %v456_v62 = vsel %vm159_vm4, %v452_v60, %v454_v5 }
  0xe7   : > { %v487_v63 = vsel %vm207_vm1, %v448_v61, %v456_v62  ;;  %v450_v0 = vpop.permute.xlu1 %449 }
  0xe8   : > { %528 = vmatprep.subr.bf16.mxu0 %v487_v63  ;;  %v455_v2 = vsel %vm159_vm4, %v450_v0, %v452_v60 }
  0xe9   : > { %v442_v1 = vpop.permute.xlu0 %441 }
  0xea   : > { %v447_v3 = vsel %vm150_vm8, %v442_v1, %v444_v59 }
  0xeb   : > { %v483_v6 = vsel %vm207_vm1, %v447_v3, %v455_v2  ;;  %v586_v13 = vpop.permute.xlu1 %585 }
  0xec   : > { %529 = vmatpush1.bf16.msra.mxu0 %v483_v6 }
  0xed   : > { %v584_v8 = vpop.permute.xlu0 %583 }
  0xee   : > { %v588_v14 = vsel %vm159_vm4, %v584_v8, %v586_v13 }
  0xef   : > { %v594_v11 = vpop.permute.xlu1 %593 }
  0xf1   : > { %v592_v9 = vpop.permute.xlu0 %591 }
  0xf2   : > { %v596_v15 = vsel %vm168_vm5, %v592_v9, %v594_v11 }
  0xf3   : > { %v611_v18 = vsel %vm207_vm1, %v588_v14, %v596_v15  ;;  %v590_v19 = vpop.permute.xlu1 %589 }
  0xf4   : > { %638 = vmatprep.subr.bf16.mxu1 %v611_v18  ;;  %v595_v20 = vsel %vm168_vm5, %v590_v19, %v592_v9 }
  0xf5   : > { %v582_v21 = vpop.permute.xlu0 %581 }
  0xf6   : > { %v587_v22 = vsel %vm159_vm4, %v582_v21, %v584_v8 }
  0xf7   : > { %v607_v23 = vsel %vm207_vm1, %v587_v22, %v595_v20  ;;  %v438_v24 = vpop.permute.xlu1 %437 }
  0xf8   : > { %639 = vmatpush1.bf16.msra.mxu1 %v607_v23 }
  0xf9   : > { %v436_v25 = vpop.permute.xlu0 %435 }
  0xfa   : > { %v440_v26 = vsel %vm141_vm7, %v436_v25, %v438_v24 }
  0xfb   : > { %v479_v27 = vsel %vm207_vm1, %v1016_v10, %v440_v26  ;;  %v576_v28 = vpop.permute.xlu1 %575 }
  0xfc   : > { %530 = vmatprep.subr.bf16.mxu0 %v479_v27 }
  0xfd   : > { %v434_v29 = vpop.permute.xlu0 %433 }
  0xfe   : > { %v439_v30 = vsel %vm141_vm7, %v434_v29, %v436_v25 }
  0xff   : > { %v475_v31 = vsel %vm207_vm1, %v1023_v12, %v439_v30  ;;  %v574_v32 = vpop.permute.xlu1 %573 }
 0x100   : > { %531 = vmatpush1.bf16.msra.mxu0 %v475_v31  ;;  %v579_v33 = vsel %vm141_vm7, %v574_v32, %v576_v28 }
 0x101   : > { %v578_v34 = vpop.permute.xlu0 %577  ;;  %v599_v36 = vsel %vm207_vm1, %v1059_v17, %v579_v33 }
 0x102   : > { %v580_v35 = vsel %vm141_vm7, %v576_v28, %v578_v34 }
 0x103   : > { %v603_v4 = vsel %vm207_vm1, %v1053_v16, %v580_v35  ;;  %v510_v10 = vpop.permute.xlu1 %509 }
 0x104   : > { %640 = vmatprep.subr.bf16.mxu1 %v603_v4 }
 0x105   : > { %641 = vmatpush1.bf16.msra.mxu1 %v599_v36  ;;  %v508_v37 = vpop.permute.xlu0 %507 }
 0x106   : > { %v512_v7 = vsel %vm511_vm11, %v508_v37, %v510_v10 }
 0x107   : > { %796 = vmatmul.mubr.msk.bf16.vlgmr.msra.gmra.mxu0 %vm323_vm9, %v512_v7 }
 0x109   : > { %v621_v12 = vpop.permute.xlu0 %620 }
 0x10a   : > { %801 = vmatmul.mubr.msk.bf16.vlgmr.msra.gmra.mxu1 %vm622_vm12, %v621_v12 }
 0x19c   : > { %v361_v38 = vpop.f32.mrf.mxu0 }
 0x19e   : > { %v363_v40 = vpop.f32.mrf.mxu0 }
 0x1a0   : > { %v365_v16 = vpop.f32.mrf.mxu0 }
 0x1a2   : > { %v367_v43 = vpop.f32.mrf.mxu0 }
 0x1a3   : > { %v414_v39 = vpop.f32.mrf.mxu1 }
 0x1a4   : > { %v415_v44 = vadd.f32 %v414_v39, %v361_v38 }
 0x1a5   : > { %v416_v41 = vpop.f32.mrf.mxu1 }
 0x1a6   : > { %v417_v46 = vadd.f32 %v416_v41, %v363_v40 }
 0x1a7   : > { %v418_v42 = vpop.f32.mrf.mxu1 }
 0x1a8   : > { %v419_v51 = vadd.f32 %v418_v42, %v365_v16 }
 0x1a9   : > { %v420_v17 = vpop.f32.mrf.mxu1 }
 0x1aa   : > { %v421_v53 = vadd.f32 %v420_v17, %v367_v43 }
 0x1c7   : > { %v550_v45 = vpop.f32.mrf.mxu0 }
 0x1c8   : > { %v559_v47 = vadd.f32 %v550_v45, %v415_v44 }
 0x1c9   : > { %v552_v48 = vpop.f32.mrf.mxu0 }
 0x1ca   : > { %v560_v49 = vadd.f32 %v552_v48, %v417_v46  ;;  %v660_v50 = vpop.f32.mrf.mxu1 }
 0x1cb   : > { %v554_v52 = vpop.f32.mrf.mxu0  ;;  %v669_v55 = vadd.f32 %v660_v50, %v559_v47 }
 0x1cc   : > { %v662_v54 = vpop.f32.mrf.mxu1  ;;  %v561_v56 = vadd.f32 %v554_v52, %v419_v51 }
 0x1cd   : > { %v670_v57 = vadd.f32 %v662_v54, %v560_v49  ;;  %v556_v58 = vpop.f32.mrf.mxu0 }
 0x1ce   : > { %v562_v59 = vadd.f32 %v556_v58, %v421_v53  ;;  %v664_v5 = vpop.f32.mrf.mxu1 }
 0x1cf   : > { %v809_v60 = vpack.c.bf16 %v670_v57, %v669_v55  ;;  %v671_v62 = vadd.f32 %v664_v5, %v561_v56 }
 0x1d0   : > { %v666_v61 = vpop.f32.mrf.mxu1 }
 0x1d1   : > { %685 = vst [vmem:[%s117_s23] sm:$0xff] %v809_v60  ;;  %v672_v63 = vadd.f32 %v666_v61, %v562_v59  ;;  %693 = sbr.rel (!%p941_p4) target bundleno = 478 (0x1de), region = 32 }
 0x1d3   : > { %v810_v0 = vpack.c.bf16 %v672_v63, %v671_v62 }
 0x1d5   : > { %686 = vst [vmem:[%s117_s23 + $0x8] sm:$0xff] %v810_v0 }
 0x1d8   : > { %v727_v2 = vld [vmem:[%s117_s23] sm:$0xff] }
 0x1d9   : > { %728 = vst [vmem:[%s696_s26] sm:$0xff] %v727_v2 }
 0x1dc   : > { %v729_v1 = vld [vmem:[%s117_s23 + $0x8] sm:$0xff] }
 0x1dd   : > { %730 = vst [vmem:[%s696_s26 + $0x10] sm:$0xff] %v729_v1 }
 0x1de PF: > { %p9_p7 = scmp.ge.s32.totalorder %s931_s13, 4   ;;  %s1186_s9 = smov %s883_s10 }
 0x1df   : > { %s1187_s10 = smov %s939_s16  ;;  %s1188_s11 = smov %s931_s13 }
 0x1e0   :  { %11 = sbr.rel (!%p9_p7) target bundleno = 2 (0x2), region = 94 }

// kernel: basic_encoder_forward.22
= control target key start
LH: loop header
LB: loop body
LE: loop exit
PB: predicated region body
PF: predicated region fallthrough
CT: control target
= control target key end

     0   :  { %s500_s9 = smov 0   ;;  %s502_s10 = smov 0   ;;  %s578_s0 = inlined_call_operand.vmem [shape: bf16[16,640], index: 0, kind: input, shape index: {}]   ;;  %s579_s1 = inlined_call_operand.vmem [shape: bf16[16,144], index: 1, kind: input, shape index: {}]   ;;  %s580_s2 = inlined_call_operand.vmem [shape: bf16[16,512], index: 2, kind: output, shape index: {}]  }
   0x1   :  { %s504_s11 = smov 0  }
   0x2 LB: > { %s513_s12 = sadd.s32 4294967295, %s475_s11   ;;  %s515_s13 = sadd.s32 1, %s475_s11   ;;  %s475_s11 = sphi %s504_s11, %s584_s11   ;;  %s471_s10 = sphi %s502_s10, %s583_s10   ;;  %s467_s9 = sphi %s500_s9, %s582_s9  }
   0x3   : > { %s58_s14 = ssub.s32 %s475_s11, %s515_s13  ;;  %s61_s15 = sadd.s32 1, %s471_s10 }
   0x4   : > { %p59_p0 = scmp.eq.s32.totalorder %s58_s14, 0  ;;  %p71_p1 = scmp.ne.s32.totalorder %s471_s10, %s467_s9 }
   0x5   : > { %p72_p2 = scmp.eq.s32.totalorder %s513_s12, 1  ;;  %p394_p3 = scmp.ge.s32.totalorder %s475_s11, 1 }
   0x6   : > { %s523_s16 = scalar_select %p59_p0, %s471_s10, %s61_s15  }
   0x7   : > { %p525_p4 = por %p72_p2, %p71_p1  ;;  %p102_p5 = scmp.lt.s32.totalorder %s475_s11, 3 }
   0x9   : > { %p103_p6 = pnand %p394_p3, %p102_p5 }
   0xa   : > { %s396_s18 = sshll.u32 (!%p103_p6), %s513_s12, 8  ;;  %s477_s24 = smov (!%p103_p6), 103  }
   0xb   : > { %106 = sbr.rel (%p103_p6) target bundleno = 394 (0x18a), region = 28  ;;  %s121_s19 = sshra.s32 (!%p103_p6), %s396_s18, 7 }
   0xc   : > { %s397_s20 = sshll.u32 (!%p103_p6), %s121_s19, 2  ;;  %s478_s25 = smov (!%p103_p6), 104  }
   0xd   : > { %s124_s23 = scalar_lea.vmem (!%p103_p6), %s578_s0, %s397_s20  ;;  %s479_s26 = smov (!%p103_p6), 114  }
   0xe   : > { %s480_s27 = smov (!%p103_p6), 115   ;;  %s481_s28 = smov (!%p103_p6), 116  }
   0xf   : > { %s482_s29 = smov (!%p103_p6), 126   ;;  %s483_s30 = smov (!%p103_p6), 127  }
  0x10   : > { %v533_v0 = vld [vmem:[%s124_s23 + $0x4] ss:$20 sps:$4 sm:$0xff]   ;;  %v535_v1 = vld [vmem:[%s124_s23] ss:$20 sps:$4 sm:$0xff]   ;;  %v449_v2 = vld [vmem:[%s124_s23 + $0x8] ss:$20 sps:$4 sm:$0xff]  }
  0x11   : > { %212 = vrot.lane.b32.xlu0 %v533_v0, %s477_s24  ;;  %210 = vrot.lane.b32.xlu1 %v535_v1, %s477_s24  ;;  %v452_v3 = vld [vmem:[%s579_s1 + $0x4] ss:$8 sps:$4 sm:$0xff]   ;;  %vm243_vm0 = vcmask 130048   ;;  %s484_s5 = smov 102   ;;  %vm216_vm1 = vcmask 842752   ;;  %vm205_vm2 = vcmask 850944  }
  0x12   : > { %403 = vmatprep.mubr.msk.bf16.mxu0 %vm243_vm0, %v452_v3  ;;  %vm194_vm3 = vcmask 932864   ;;  %vm183_vm4 = vcmask 941056   ;;  %vm172_vm5 = vcmask 949248   ;;  %vm161_vm6 = vcmask 1031168   ;;  %v450_v44 = vld [vmem:[%s579_s1] ss:$8 sps:$4 sm:$0xff]  }
  0x13   : > { %vm150_vm7 = vcmask 1039360   ;;  %vm227_vm8 = vcmask 834560   ;;  %s115_s8 = sand.u32 1, %s467_s9   ;;  %s413_s15 = sshll.u32 (%p525_p4), %s513_s12, 3 }
  0x14   : > { %s395_s11 = sshll.u32 %s115_s8, 4  ;;  %s313_s9 = scalar_lea.vmem (%p525_p4), %s580_s2, %s413_s15 }
  0x15   : > { %214 = vrot.lane.b32.xlu0 %v449_v2, %s477_s24  ;;  %201 = vrot.lane.b32.xlu1 %v533_v0, %s478_s25  ;;  %s117_s14 = scalar_lea.vmem [#allocation2], %s395_s11 }
  0x19   : > { %203 = vrot.lane.b32.xlu0 %v449_v2, %s478_s25  ;;  %199 = vrot.lane.b32.xlu1 %v535_v1, %s478_s25 }
  0x1d   : > { %190 = vrot.lane.b32.xlu0 %v533_v0, %s479_s26  ;;  %192 = vrot.lane.b32.xlu1 %v449_v2, %s479_s26 }
  0x21   : > { %188 = vrot.lane.b32.xlu0 %v535_v1, %s479_s26  ;;  %179 = vrot.lane.b32.xlu1 %v533_v0, %s480_s27 }
  0x25   : > { %181 = vrot.lane.b32.xlu0 %v449_v2, %s480_s27  ;;  %177 = vrot.lane.b32.xlu1 %v535_v1, %s480_s27 }
  0x29   : > { %168 = vrot.lane.b32.xlu0 %v533_v0, %s481_s28  ;;  %170 = vrot.lane.b32.xlu1 %v449_v2, %s481_s28 }
  0x2d   : > { %166 = vrot.lane.b32.xlu0 %v535_v1, %s481_s28  ;;  %157 = vrot.lane.b32.xlu1 %v533_v0, %s482_s29 }
  0x31   : > { %159 = vrot.lane.b32.xlu0 %v449_v2, %s482_s29  ;;  %155 = vrot.lane.b32.xlu1 %v535_v1, %s482_s29 }
  0x35   : > { %146 = vrot.lane.b32.xlu0 %v533_v0, %s483_s30  ;;  %148 = vrot.lane.b32.xlu1 %v449_v2, %s483_s30 }
  0x39   : > { %144 = vrot.lane.b32.xlu0 %v535_v1, %s483_s30  ;;  %223 = vrot.lane.b32.xlu1 %v533_v0, %s484_s5 }
  0x3d   : > { %225 = vrot.lane.b32.xlu0 %v449_v2, %s484_s5  ;;  %221 = vrot.lane.b32.xlu1 %v535_v1, %s484_s5 }
  0x83   : > { %v213_v4 = vpop.permute.xlu0 %212  ;;  %v211_v5 = vpop.permute.xlu1 %210 }
  0x84   : > { %v217_v9 = vsel %vm216_vm1, %v211_v5, %v213_v4 }
  0x87   : > { %v215_v6 = vpop.permute.xlu0 %214  ;;  %v202_v7 = vpop.permute.xlu1 %201 }
  0x88   : > { %v218_v8 = vsel %vm216_vm1, %v213_v4, %v215_v6 }
  0x89   : > { %247 = vmatprep.subr.bf16.mxu0 %v218_v8 }
  0x8a   : > { %248 = vmatpush1.bf16.msra.mxu0 %v217_v9 }
  0x8b   : > { %v204_v10 = vpop.permute.xlu0 %203  ;;  %v200_v11 = vpop.permute.xlu1 %199 }
  0x8c   : > { %v207_v12 = vsel %vm205_vm2, %v202_v7, %v204_v10  ;;  %v206_v13 = vsel %vm205_vm2, %v200_v11, %v202_v7 }
  0x8d   : > { %249 = vmatprep.subr.bf16.mxu0 %v207_v12 }
  0x8e   : > { %250 = vmatpush1.bf16.msra.mxu0 %v206_v13 }
  0x8f   : > { %v191_v14 = vpop.permute.xlu0 %190  ;;  %v193_v15 = vpop.permute.xlu1 %192 }
  0x90   : > { %v196_v16 = vsel %vm194_vm3, %v191_v14, %v193_v15 }
  0x91   : > { %251 = vmatprep.subr.bf16.mxu0 %v196_v16 }
  0x93   : > { %v189_v17 = vpop.permute.xlu0 %188  ;;  %v180_v18 = vpop.permute.xlu1 %179 }
  0x94   : > { %v195_v19 = vsel %vm194_vm3, %v189_v17, %v191_v14 }
  0x95   : > { %252 = vmatpush1.bf16.msra.mxu0 %v195_v19 }
  0x97   : > { %v182_v20 = vpop.permute.xlu0 %181  ;;  %v178_v21 = vpop.permute.xlu1 %177 }
  0x98   : > { %v185_v22 = vsel %vm183_vm4, %v180_v18, %v182_v20  ;;  %v184_v23 = vsel %vm183_vm4, %v178_v21, %v180_v18 }
  0x99   : > { %253 = vmatprep.subr.bf16.mxu0 %v185_v22 }
  0x9a   : > { %254 = vmatpush1.bf16.msra.mxu0 %v184_v23 }
  0x9b   : > { %v169_v24 = vpop.permute.xlu0 %168  ;;  %v171_v25 = vpop.permute.xlu1 %170 }
  0x9c   : > { %v174_v26 = vsel %vm172_vm5, %v169_v24, %v171_v25 }
  0x9d   : > { %255 = vmatprep.subr.bf16.mxu0 %v174_v26 }
  0x9f   : > { %v167_v27 = vpop.permute.xlu0 %166  ;;  %v158_v28 = vpop.permute.xlu1 %157 }
  0xa0   : > { %v173_v29 = vsel %vm172_vm5, %v167_v27, %v169_v24 }
  0xa1   : > { %256 = vmatpush1.bf16.msra.mxu0 %v173_v29 }
  0xa3   : > { %v160_v30 = vpop.permute.xlu0 %159  ;;  %v156_v31 = vpop.permute.xlu1 %155 }
  0xa4   : > { %v163_v32 = vsel %vm161_vm6, %v158_v28, %v160_v30  ;;  %v162_v33 = vsel %vm161_vm6, %v156_v31, %v158_v28 }
  0xa5   : > { %257 = vmatprep.subr.bf16.mxu0 %v163_v32 }
  0xa6   : > { %258 = vmatpush1.bf16.msra.mxu0 %v162_v33 }
  0xa7   : > { %v147_v34 = vpop.permute.xlu0 %146  ;;  %v149_v35 = vpop.permute.xlu1 %148 }
  0xa8   : > { %v152_v36 = vsel %vm150_vm7, %v147_v34, %v149_v35 }
  0xa9   : > { %259 = vmatprep.subr.bf16.mxu0 %v152_v36 }
  0xab   : > { %v145_v37 = vpop.permute.xlu0 %144  ;;  %v224_v38 = vpop.permute.xlu1 %223 }
  0xac   : > { %v151_v39 = vsel %vm150_vm7, %v145_v37, %v147_v34 }
  0xad   : > { %260 = vmatpush1.bf16.msra.mxu0 %v151_v39 }
  0xae   : > { %261 = vmatprep.subr.bf16.mxu0 %v533_v0 }
  0xaf   : > { %v226_v40 = vpop.permute.xlu0 %225  ;;  %v222_v42 = vpop.permute.xlu1 %221 }
  0xb0   : > { %v229_v41 = vsel %vm227_vm8, %v224_v38, %v226_v40  ;;  %v228_v43 = vsel %vm227_vm8, %v222_v42, %v224_v38 }
  0xb1   : > { %262 = vmatpush1.bf16.msra.mxu0 %v535_v1 }
  0xb2   : > { %277 = vmatprep.subr.bf16.mxu0 %v229_v41 }
  0xb5   : > { %278 = vmatpush2.bf16.msra.mxu0 %v228_v43 }
  0xb8   : > { %280 = vmatmul.mubr.bf16.vlgmr.msra.gmra.mxu0 %v450_v44 }
 0x178   : > { %v281_v45 = vpop.f32.mrf.mxu0 }
 0x17a   : > { %v283_v46 = vpop.f32.mrf.mxu0 }
 0x17b   : > { %v411_v47 = vpack.c.bf16 %v283_v46, %v281_v45 }
 0x17c   : > { %v285_v48 = vpop.f32.mrf.mxu0 }
 0x17d   : > { %302 = vst [vmem:[%s117_s14] sm:$0xff] %v411_v47  ;;  %310 = sbr.rel (!%p525_p4) target bundleno = 394 (0x18a), region = 32 }
 0x17e   : > { %v287_v49 = vpop.f32.mrf.mxu0 }
 0x17f   : > { %v412_v50 = vpack.c.bf16 %v287_v49, %v285_v48 }
 0x181   : > { %303 = vst [vmem:[%s117_s14 + $0x8] sm:$0xff] %v412_v50 }
 0x184   : > { %v344_v51 = vld [vmem:[%s117_s14] sm:$0xff] }
 0x185   : > { %345 = vst [vmem:[%s313_s9] sm:$0xff] %v344_v51 }
 0x188   : > { %v346_v52 = vld [vmem:[%s117_s14 + $0x8] sm:$0xff] }
 0x189   : > { %347 = vst [vmem:[%s313_s9 + $0x10] sm:$0xff] %v346_v52 }
 0x18a PF: > { %p9_p7 = scmp.ge.s32.totalorder %s515_s13, 4   ;;  %s582_s9 = smov %s471_s10 }
 0x18b   : > { %s583_s10 = smov %s523_s16  ;;  %s584_s11 = smov %s515_s13 }
 0x18c   :  { %11 = sbr.rel (!%p9_p7) target bundleno = 2 (0x2), region = 94 }

// kernel: mul.144
= control target key start
LH: loop header
LB: loop body
LE: loop exit
PB: predicated region body
PF: predicated region fallthrough
CT: control target
= control target key end

     0   :  { %s133_s10 = smov 120   ;;  %s134_s11 = smov 104   ;;  %vm3_vm0 = vcmask 64512   ;;  %vm9_vm1 = vcmask 1048512   ;;  %vm15_vm2 = vcmask 982912   ;;  %vm21_vm3 = vcmask 917312   ;;  %s209_s0 = inlined_call_operand.vmem [shape: f32[2,8,8], index: 0, kind: input, shape index: {}]   ;;  %s210_s1 = inlined_call_operand.vmem [shape: f32[128], index: 1, kind: output, shape index: {}]  }
   0x1   :  { %v103_v0 = vld [vmem:[%s209_s0 + $0xf] sm:$0x1]   ;;  %v105_v1 = vld [vmem:[%s209_s0 + $0xd] sm:$0x1]   ;;  %v104_v2 = vld [vmem:[%s209_s0 + $0xe] sm:$0x1]  }
   0x2   :  { %7 = vrot.lane.b32.xlu0 %v103_v0, %s133_s10  ;;  %19 = vrot.lane.b32.xlu1 %v105_v1, %s134_s11  ;;  %v106_v3 = vld [vmem:[%s209_s0 + $0xc] sm:$0x1]   ;;  %s135_s16 = smov 112   ;;  %s136_s17 = smov 96   ;;  %v107_v4 = vld [vmem:[%s209_s0 + $0xb] sm:$0x1]  }
   0x3   :  { %v108_v5 = vld [vmem:[%s209_s0 + $0xa] sm:$0x1]   ;;  %v2_v6 = vld [vmem:[%s209_s0] sm:$0x1]   ;;  %s137_s24 = smov 88   ;;  %s138_s25 = smov 80  }
   0x4   :  { %4 = vst.msk [vmem:[#allocation0] sm:$0x1] %vm3_vm0, %v2_v6   ;;  %v109_v7 = vld [vmem:[%s209_s0 + $0x9] sm:$0x1]   ;;  %v110_v8 = vld [vmem:[%s209_s0 + $0x8] sm:$0x1]  }
   0x5   :  { %s139_s30 = smov 72   ;;  %s140_s2 = smov 64   ;;  %v111_v9 = vld [vmem:[%s209_s0 + $0x7] sm:$0x1]   ;;  %v112_v10 = vld [vmem:[%s209_s0 + $0x6] sm:$0x1]  }
   0x6   :  { %13 = vrot.lane.b32.xlu0 %v104_v2, %s135_s16  ;;  %25 = vrot.lane.b32.xlu1 %v106_v3, %s136_s17  ;;  %s141_s7 = smov 56   ;;  %s142_s8 = smov 48   ;;  %v113_v11 = vld [vmem:[%s209_s0 + $0x5] sm:$0x1]   ;;  %v114_v12 = vld [vmem:[%s209_s0 + $0x4] sm:$0x1]  }
   0x7   :  { %s143_s13 = smov 40   ;;  %s144_s14 = smov 32   ;;  %v115_v13 = vld [vmem:[%s209_s0 + $0x3] sm:$0x1]   ;;  %v116_v14 = vld [vmem:[%s209_s0 + $0x2] sm:$0x1]  }
   0x8   :  { %s145_s19 = smov 24   ;;  %s146_s20 = smov 16   ;;  %v117_v15 = vld [vmem:[%s209_s0 + $0x1] sm:$0x1]   ;;  %vm27_vm4 = vcmask 851712   ;;  %vm33_vm5 = vcmask 786112  }
   0x9   :  { %s147_s0 = smov 8   ;;  %vm39_vm6 = vcmask 720512   ;;  %vm45_vm7 = vcmask 654912   ;;  %vm51_vm8 = vcmask 589312   ;;  %vm57_vm9 = vcmask 523712  }
   0xa   :  { %31 = vrot.lane.b32.xlu0 %v107_v4, %s137_s24  ;;  %37 = vrot.lane.b32.xlu1 %v108_v5, %s138_s25  ;;  %vm63_vm10 = vcmask 458112   ;;  %vm69_vm11 = vcmask 392512   ;;  %vm75_vm12 = vcmask 326912   ;;  %vm81_vm13 = vcmask 261312  }
   0xb   :  { %vm87_vm14 = vcmask 195712   ;;  %vm93_vm15 = vcmask 130112  }
   0xe   :  { %43 = vrot.lane.b32.xlu0 %v109_v7, %s139_s30  ;;  %49 = vrot.lane.b32.xlu1 %v110_v8, %s140_s2 }
  0x12   :  { %55 = vrot.lane.b32.xlu0 %v111_v9, %s141_s7  ;;  %61 = vrot.lane.b32.xlu1 %v112_v10, %s142_s8 }
  0x16   :  { %67 = vrot.lane.b32.xlu0 %v113_v11, %s143_s13  ;;  %73 = vrot.lane.b32.xlu1 %v114_v12, %s144_s14 }
  0x1a   :  { %79 = vrot.lane.b32.xlu0 %v115_v13, %s145_s19  ;;  %85 = vrot.lane.b32.xlu1 %v116_v14, %s146_s20 }
  0x1e   :  { %91 = vrot.lane.b32.xlu0 %v117_v15, %s147_s0 }
  0x74   :  { %v8_v16 = vpop.permute.xlu0 %7   ;;  %v20_v17 = vpop.permute.xlu1 %19  }
  0x75   :  { %10 = vst.msk [vmem:[#allocation0] sm:$0x1] %vm9_vm1, %v8_v16  }
  0x78   :  { %v14_v18 = vpop.permute.xlu0 %13   ;;  %v26_v19 = vpop.permute.xlu1 %25  }
  0x79   :  { %16 = vst.msk [vmem:[#allocation0] sm:$0x1] %vm15_vm2, %v14_v18  }
  0x7a   :  { %22 = vst.msk [vmem:[#allocation0] sm:$0x1] %vm21_vm3, %v20_v17  }
  0x7b   :  { %28 = vst.msk [vmem:[#allocation0] sm:$0x1] %vm27_vm4, %v26_v19  }
  0x7c   :  { %v32_v20 = vpop.permute.xlu0 %31   ;;  %v38_v21 = vpop.permute.xlu1 %37  }
  0x7d   :  { %34 = vst.msk [vmem:[#allocation0] sm:$0x1] %vm33_vm5, %v32_v20  }
  0x7e   :  { %40 = vst.msk [vmem:[#allocation0] sm:$0x1] %vm39_vm6, %v38_v21  }
  0x80   :  { %v44_v22 = vpop.permute.xlu0 %43   ;;  %v50_v23 = vpop.permute.xlu1 %49  }
  0x81   :  { %46 = vst.msk [vmem:[#allocation0] sm:$0x1] %vm45_vm7, %v44_v22  }
  0x82   :  { %52 = vst.msk [vmem:[#allocation0] sm:$0x1] %vm51_vm8, %v50_v23  }
  0x84   :  { %v56_v24 = vpop.permute.xlu0 %55   ;;  %v62_v25 = vpop.permute.xlu1 %61  }
  0x85   :  { %58 = vst.msk [vmem:[#allocation0] sm:$0x1] %vm57_vm9, %v56_v24  }
  0x86   :  { %64 = vst.msk [vmem:[#allocation0] sm:$0x1] %vm63_vm10, %v62_v25  }
  0x88   :  { %v68_v26 = vpop.permute.xlu0 %67   ;;  %v74_v27 = vpop.permute.xlu1 %73  }
  0x89   :  { %70 = vst.msk [vmem:[#allocation0] sm:$0x1] %vm69_vm11, %v68_v26  }
  0x8a   :  { %76 = vst.msk [vmem:[#allocation0] sm:$0x1] %vm75_vm12, %v74_v27  }
  0x8c   :  { %v80_v28 = vpop.permute.xlu0 %79   ;;  %v86_v29 = vpop.permute.xlu1 %85  }
  0x8d   :  { %82 = vst.msk [vmem:[#allocation0] sm:$0x1] %vm81_vm13, %v80_v28  }
  0x8e   :  { %88 = vst.msk [vmem:[#allocation0] sm:$0x1] %vm87_vm14, %v86_v29  }
  0x90   :  { %v92_v30 = vpop.permute.xlu0 %91  }
  0x91   :  { %94 = vst.msk [vmem:[#allocation0] sm:$0x1] %vm93_vm15, %v92_v30  }
  0x98   :  { %v99_v31 = vld [vmem:[#allocation0] sm:$0x1] }
  0x99   :  { %102 = vst [vmem:[%s210_s1] sm:$0x1] %v99_v31 }

// kernel: basic_encoder_forward.27
= control target key start
LH: loop header
LB: loop body
LE: loop exit
PB: predicated region body
PF: predicated region fallthrough
CT: control target
= control target key end

     0   :  { %v152_v0 = vmov 0   ;;  %s217_s1 = inlined_call_operand.vmem [shape: f32[32,1], index: 1, kind: input, shape index: {}]   ;;  %s218_s2 = inlined_call_operand.vmem [shape: f32[32,1], index: 2, kind: input, shape index: {}]   ;;  %s219_s0 = inlined_call_operand.vmem [shape: bf16[32,128], index: 0, kind: input, shape index: {}]   ;;  %s220_s3 = inlined_call_operand.vmem [shape: f32[1,128], index: 3, kind: input, shape index: {}]   ;;  %s221_s4 = inlined_call_operand.vmem [shape: bf16[32,128], index: 4, kind: output, shape index: {}]  }
   0x1   :  { %151 = vset.pattern.permute.xlu1 %v152_v0  ;;  %150 = vset.pattern.permute.xlu0 %v152_v0  ;;  %v27_v1 = vld [vmem:[%s217_s1 + $0x10] sm:$0xff]  ;;  %v25_v2 = vld [vmem:[%s217_s1] sm:$0xff]  ;;  %v28_v3 = vld [vmem:[%s217_s1 + $0x18] sm:$0xff] }
   0x2   :  { %41 = vperm.xlu1 %151, %v27_v1   ;;  %31 = vperm.xlu0 %150, %v25_v2   ;;  %v26_v4 = vld [vmem:[%s217_s1 + $0x8] sm:$0xff]  ;;  %v53_v6 = vld [vmem:[%s218_s2] sm:$0xff]  ;;  %v56_v7 = vld [vmem:[%s218_s2 + $0x18] sm:$0xff] }
   0x3   :  { %v54_v5 = vld [vmem:[%s218_s2 + $0x8] sm:$0xff]  ;;  %v55_v8 = vld [vmem:[%s218_s2 + $0x10] sm:$0xff]  ;;  %v130_v11 = vld [vmem:[%s219_s0] sm:$0xff]  }
   0x4   :  { %v131_v12 = vunpack.c.l.bf16 %v130_v11  ;;  %v132_v13 = vunpack.c.h.bf16 %v130_v11  ;;  %v147_v14 = vld [vmem:[%s219_s0 + $0x8] sm:$0xff]   ;;  %v120_v25 = vld [vmem:[%s220_s3] ss:$0 sm:$0xff] }
   0x5   :  { %v135_v17 = vunpack.c.l.bf16 %v147_v14  ;;  %v136_v19 = vunpack.c.h.bf16 %v147_v14 }
   0x6   :  { %46 = vperm.xlu1 %151, %v28_v3   ;;  %36 = vperm.xlu0 %150, %v26_v4  }
   0xa   :  { %64 = vperm.xlu1 %151, %v54_v5   ;;  %59 = vperm.xlu0 %150, %v53_v6  }
   0xe   :  { %74 = vperm.xlu1 %151, %v56_v7   ;;  %69 = vperm.xlu0 %150, %v55_v8  }
  0x7d   :  { %v42_v9 = vpop.permute.xlu1 %41  ;;  %v32_v10 = vpop.permute.xlu0 %31 }
  0x7e   :  { %v49_v18 = vmul.f32 %v131_v12, %v32_v10  ;;  %v51_v26 = vmul.f32 %v135_v17, %v42_v9 }
  0x81   :  { %v47_v15 = vpop.permute.xlu1 %46  ;;  %v37_v16 = vpop.permute.xlu0 %36 }
  0x82   :  { %v50_v20 = vmul.f32 %v132_v13, %v37_v16  ;;  %v52_v27 = vmul.f32 %v136_v19, %v47_v15 }
  0x85   :  { %v65_v21 = vpop.permute.xlu1 %64  ;;  %v60_v22 = vpop.permute.xlu0 %59 }
  0x86   :  { %v78_v23 = vadd.f32 %v65_v21, %v50_v20  ;;  %v77_v24 = vadd.f32 %v60_v22, %v49_v18 }
  0x88   :  { %v82_v28 = vmax.f32 %v78_v23, 0.0  ;;  %v81_v29 = vmax.f32 %v77_v24, 0.0 }
  0x89   :  { %v75_v30 = vpop.permute.xlu1 %74  ;;  %v70_v31 = vpop.permute.xlu0 %69 }
  0x8a   :  { %v93_v32 = vmul.f32 %v120_v25, %v82_v28  ;;  %v92_v33 = vmul.f32 %v120_v25, %v81_v29  ;;  %v80_v34 = vadd.f32 %v75_v30, %v52_v27  ;;  %v79_v35 = vadd.f32 %v70_v31, %v51_v26 }
  0x8c   :  { %v140_v36 = vpack.c.bf16 %v93_v32, %v92_v33  ;;  %v84_v37 = vmax.f32 %v80_v34, 0.0  ;;  %v83_v38 = vmax.f32 %v79_v35, 0.0 }
  0x8e   :  { %141 = vst [vmem:[%s221_s4] sm:$0xff] %v140_v36   ;;  %v95_v39 = vmul.f32 %v120_v25, %v84_v37  ;;  %v94_v40 = vmul.f32 %v120_v25, %v83_v38 }
  0x90   :  { %v145_v41 = vpack.c.bf16 %v95_v39, %v94_v40 }
  0x92   :  { %148 = vst [vmem:[%s221_s4 + $0x8] sm:$0xff] %v145_v41  }

// kernel: basic_encoder_forward.26
= control target key start
LH: loop header
LB: loop body
LE: loop exit
PB: predicated region body
PF: predicated region fallthrough
CT: control target
= control target key end

     0   :  { %v712_v1 = vmov 0   ;;  %s713_s13 = smov 111   ;;  %s714_s18 = smov 112   ;;  %vm221_vm0 = vcmask 130048   ;;  %vm74_vm1 = vcmask 908288   ;;  %vm67_vm2 = vcmask 916480   ;;  %s909_s0 = inlined_call_operand.vmem [shape: bf16[64,256], index: 0, kind: input, shape index: {}]   ;;  %s910_s1 = inlined_call_operand.vmem [shape: bf16[32,400], index: 1, kind: input, shape index: {}]   ;;  %s911_s2 = inlined_call_operand.vmem [shape: bf16[32,128], index: 2, kind: output, shape index: {}]  }
   0x1   :  { %v741_v0 = vld [vmem:[%s909_s0 + $0x10] ss:$8 sps:$4 sm:$0xff]   ;;  %228 = vmatprep.subr.bf16.mxu1 %v712_v1  ;;  %v747_v2 = vld [vmem:[%s909_s0] ss:$8 sps:$4 sm:$0xff]   ;;  %v684_v3 = vld [vmem:[%s909_s0 + $0x14] ss:$8 sps:$4 sm:$0xff]  }
   0x2   :  { %123 = vrot.lane.b32.xlu1 %v741_v0, %s713_s13  ;;  %70 = vrot.lane.b32.xlu0 %v747_v2, %s713_s13  ;;  %v685_v4 = vld [vmem:[%s909_s0 + $0x4] ss:$8 sps:$4 sm:$0xff]   ;;  %s715_s19 = smov 118   ;;  %s716_s20 = smov 119   ;;  %v789_v6 = vld [vmem:[%s909_s0 + $0x20] ss:$8 sps:$4 sm:$0xff]  }
   0x3   :  { %s717_s21 = smov 120   ;;  %s718_s22 = smov 127   ;;  %v688_v5 = vld [vmem:[%s909_s0 + $0x24] ss:$8 sps:$4 sm:$0xff]   ;;  %v693_v10 = vld [vmem:[%s909_s0 + $0x34] ss:$8 sps:$4 sm:$0xff]  }
   0x4   :  { %s719_s23 = smov 126   ;;  %v689_v7 = vld [vmem:[%s910_s1 + $0x24] ss:$16 sps:$4 sm:$0xff]   ;;  %s720_s6 = smov 110   ;;  %v817_v11 = vld [vmem:[%s909_s0 + $0x30] ss:$8 sps:$4 sm:$0xff]  }
   0x5   :  { %v690_v8 = vld [vmem:[%s910_s1 + $0x4] ss:$16 sps:$4 sm:$0xff]   ;;  %v694_v12 = vld [vmem:[%s910_s1 + $0x8] ss:$16 sps:$4 sm:$0xff]   ;;  %s721_s14 = smov 16   ;;  %vm60_vm3 = vcmask 965632  }
   0x6   :  { %125 = vrot.lane.b32.xlu1 %v684_v3, %s713_s13  ;;  %72 = vrot.lane.b32.xlu0 %v685_v4, %s713_s13  ;;  %v708_v9 = vld [vmem:[%s910_s1 + $0x4] ss:$16 sps:$4 sm:$0xff]   ;;  %v697_v14 = vld [vmem:[%s910_s1 + $0x28] ss:$16 sps:$4 sm:$0xff]   ;;  %vm53_vm4 = vcmask 973824   ;;  %vm46_vm5 = vcmask 982016  }
   0x7   :  { %566 = vmatprep.mubr.msk.bf16.mxu1 %vm221_vm0, %v708_v9  ;;  %v696_v13 = vld [vmem:[%s910_s1 + $0x4] ss:$16 sps:$4 sm:$0xff]   ;;  %v700_v16 = vld [vmem:[%s910_s1 + $0xc] ss:$16 sps:$4 sm:$0xff]   ;;  %v702_v17 = vld [vmem:[%s910_s1 + $0x8] ss:$16 sps:$4 sm:$0xff]  }
   0x8   :  { %v699_v15 = vld [vmem:[%s910_s1 + $0x24] ss:$16 sps:$4 sm:$0xff]   ;;  %v703_v18 = vld [vmem:[%s910_s1 + $0x2c] ss:$16 sps:$4 sm:$0xff]   ;;  %v705_v19 = vld [vmem:[%s910_s1 + $0x28] ss:$16 sps:$4 sm:$0xff]  }
   0x9   :  { %vm32_vm6 = vcmask 1039360   ;;  %vm39_vm7 = vcmask 1031168   ;;  %vm147_vm8 = vcmask 785408   ;;  %vm81_vm9 = vcmask 900096  }
   0xa   :  { %65 = vrot.lane.b32.xlu1 %v685_v4, %s714_s18  ;;  %63 = vrot.lane.b32.xlu0 %v747_v2, %s714_s18  ;;  %vm465_vm10 = vcmask 392192   ;;  %vm468_vm11 = vcmask 523264  }
   0xe   :  { %119 = vrot.lane.b32.xlu1 %v684_v3, %s714_s18  ;;  %117 = vrot.lane.b32.xlu0 %v741_v0, %s714_s18 }
  0x12   :  { %58 = vrot.lane.b32.xlu1 %v685_v4, %s715_s19  ;;  %56 = vrot.lane.b32.xlu0 %v747_v2, %s715_s19 }
  0x16   :  { %113 = vrot.lane.b32.xlu1 %v684_v3, %s716_s20  ;;  %111 = vrot.lane.b32.xlu0 %v741_v0, %s716_s20 }
  0x1a   :  { %51 = vrot.lane.b32.xlu1 %v685_v4, %s716_s20  ;;  %49 = vrot.lane.b32.xlu0 %v747_v2, %s716_s20 }
  0x1e   :  { %107 = vrot.lane.b32.xlu1 %v684_v3, %s717_s21  ;;  %105 = vrot.lane.b32.xlu0 %v741_v0, %s717_s21 }
  0x22   :  { %44 = vrot.lane.b32.xlu1 %v685_v4, %s717_s21  ;;  %42 = vrot.lane.b32.xlu0 %v747_v2, %s717_s21 }
  0x26   :  { %101 = vrot.lane.b32.xlu1 %v684_v3, %s718_s22  ;;  %99 = vrot.lane.b32.xlu0 %v741_v0, %s718_s22 }
  0x2a   :  { %37 = vrot.lane.b32.xlu1 %v685_v4, %s719_s23  ;;  %35 = vrot.lane.b32.xlu0 %v747_v2, %s719_s23 }
  0x2e   :  { %30 = vrot.lane.b32.xlu1 %v685_v4, %s718_s22  ;;  %28 = vrot.lane.b32.xlu0 %v747_v2, %s718_s22 }
  0x32   :  { %314 = vrot.lane.b32.xlu1 %v688_v5, %s715_s19  ;;  %312 = vrot.lane.b32.xlu0 %v789_v6, %s715_s19 }
  0x36   :  { %145 = vrot.lane.b32.xlu1 %v689_v7, %s714_s18  ;;  %143 = vrot.lane.b32.xlu0 %v690_v8, %s714_s18 }
  0x3a   :  { %308 = vrot.lane.b32.xlu1 %v688_v5, %s716_s20  ;;  %306 = vrot.lane.b32.xlu0 %v789_v6, %s716_s20 }
  0x3e   :  { %79 = vrot.lane.b32.xlu1 %v685_v4, %s720_s6  ;;  %77 = vrot.lane.b32.xlu0 %v747_v2, %s720_s6 }
  0x42   :  { %302 = vrot.lane.b32.xlu1 %v688_v5, %s717_s21  ;;  %300 = vrot.lane.b32.xlu0 %v789_v6, %s717_s21 }
  0x46   :  { %433 = vrot.lane.b32.xlu1 %v693_v10, %s716_s20  ;;  %431 = vrot.lane.b32.xlu0 %v817_v11, %s716_s20 }
  0x4a   :  { %296 = vrot.lane.b32.xlu1 %v688_v5, %s719_s23  ;;  %294 = vrot.lane.b32.xlu0 %v789_v6, %s719_s23  ;;  %s722_s23 = smov 48  }
  0x4e   :  { %427 = vrot.lane.b32.xlu1 %v693_v10, %s717_s21  ;;  %425 = vrot.lane.b32.xlu0 %v817_v11, %s717_s21 }
  0x52   :  { %290 = vrot.lane.b32.xlu1 %v688_v5, %s718_s22  ;;  %288 = vrot.lane.b32.xlu0 %v789_v6, %s718_s22 }
  0x56   :  { %421 = vrot.lane.b32.xlu1 %v693_v10, %s718_s22  ;;  %419 = vrot.lane.b32.xlu0 %v817_v11, %s718_s22 }
  0x5a   :  { %340 = vrot.lane.b32.xlu1 %v694_v12, %s721_s14  ;;  %338 = vrot.lane.b32.xlu0 %v696_v13, %s721_s14  ;;  %v711_v13 = vld [vmem:[%s910_s1 + $0x20] ss:$16 sps:$4 sm:$0xff]  }
  0x5e   :  { %344 = vrot.lane.b32.xlu1 %v697_v14, %s721_s14  ;;  %342 = vrot.lane.b32.xlu0 %v699_v15, %s721_s14 }
  0x62   :  { %459 = vrot.lane.b32.xlu1 %v700_v16, %s722_s23  ;;  %457 = vrot.lane.b32.xlu0 %v702_v17, %s722_s23 }
  0x66   :  { %463 = vrot.lane.b32.xlu1 %v703_v18, %s722_s23  ;;  %461 = vrot.lane.b32.xlu0 %v705_v19, %s722_s23 }
  0x74   :  { %v124_v20 = vpop.permute.xlu1 %123  ;;  %v71_v21 = vpop.permute.xlu0 %70 }
  0x78   :  { %v126_v22 = vpop.permute.xlu1 %125  ;;  %v73_v23 = vpop.permute.xlu0 %72 }
  0x79   :  { %v127_v24 = vsel %vm74_vm1, %v124_v20, %v126_v22  ;;  %v75_v25 = vsel %vm74_vm1, %v71_v21, %v73_v23 }
  0x7a   :  { %625 = vmatprep.subr.bf16.mxu0 %v127_v24  ;;  %229 = vmatpush1.bf16.msra.mxu1 %v75_v25 }
  0x7b   :  { %626 = vmatpush3.bf16.msra.mxu0 %v127_v24  ;;  %230 = vmatprep.subr.bf16.mxu1 %v712_v1 }
  0x7c   :  { %v66_v26 = vpop.permute.xlu1 %65  ;;  %v64_v27 = vpop.permute.xlu0 %63 }
  0x7d   :  { %v68_v28 = vsel %vm67_vm2, %v64_v27, %v66_v26 }
  0x7e   :  { %231 = vmatpush1.bf16.msra.mxu1 %v68_v28 }
  0x7f   :  { %232 = vmatprep.subr.bf16.mxu1 %v712_v1 }
  0x80   :  { %v120_v29 = vpop.permute.xlu1 %119  ;;  %v118_v30 = vpop.permute.xlu0 %117 }
  0x81   :  { %v121_v31 = vsel %vm67_vm2, %v118_v30, %v120_v29 }
  0x82   :  { %627 = vmatprep.subr.bf16.mxu0 %v121_v31 }
  0x83   :  { %628 = vmatpush3.bf16.msra.mxu0 %v121_v31 }
  0x84   :  { %v59_v32 = vpop.permute.xlu1 %58  ;;  %v57_v33 = vpop.permute.xlu0 %56 }
  0x85   :  { %v61_v34 = vsel %vm60_vm3, %v57_v33, %v59_v32 }
  0x86   :  { %233 = vmatpush1.bf16.msra.mxu1 %v61_v34 }
  0x87   :  { %234 = vmatprep.subr.bf16.mxu1 %v712_v1 }
  0x88   :  { %v114_v35 = vpop.permute.xlu1 %113  ;;  %v112_v36 = vpop.permute.xlu0 %111 }
  0x89   :  { %v115_v37 = vsel %vm53_vm4, %v112_v36, %v114_v35 }
  0x8a   :  { %629 = vmatprep.subr.bf16.mxu0 %v115_v37 }
  0x8b   :  { %630 = vmatpush3.bf16.msra.mxu0 %v115_v37 }
  0x8c   :  { %v52_v38 = vpop.permute.xlu1 %51  ;;  %v50_v39 = vpop.permute.xlu0 %49 }
  0x8d   :  { %v54_v40 = vsel %vm53_vm4, %v50_v39, %v52_v38 }
  0x8e   :  { %235 = vmatpush1.bf16.msra.mxu1 %v54_v40 }
  0x8f   :  { %236 = vmatprep.subr.bf16.mxu1 %v712_v1 }
  0x90   :  { %v108_v41 = vpop.permute.xlu1 %107  ;;  %v106_v42 = vpop.permute.xlu0 %105 }
  0x91   :  { %v109_v43 = vsel %vm46_vm5, %v106_v42, %v108_v41 }
  0x92   :  { %631 = vmatprep.subr.bf16.mxu0 %v109_v43 }
  0x93   :  { %632 = vmatpush3.bf16.msra.mxu0 %v109_v43 }
  0x94   :  { %v45_v44 = vpop.permute.xlu1 %44  ;;  %v43_v45 = vpop.permute.xlu0 %42 }
  0x95   :  { %v47_v46 = vsel %vm46_vm5, %v43_v45, %v45_v44 }
  0x96   :  { %237 = vmatpush1.bf16.msra.mxu1 %v47_v46 }
  0x97   :  { %238 = vmatprep.subr.bf16.mxu1 %v712_v1 }
  0x98   :  { %v102_v47 = vpop.permute.xlu1 %101  ;;  %v100_v48 = vpop.permute.xlu0 %99 }
  0x99   :  { %v103_v49 = vsel %vm32_vm6, %v100_v48, %v102_v47 }
  0x9a   :  { %633 = vmatprep.subr.bf16.mxu0 %v103_v49 }
  0x9b   :  { %634 = vmatpush3.bf16.msra.mxu0 %v103_v49 }
  0x9c   :  { %v38_v50 = vpop.permute.xlu1 %37  ;;  %v36_v51 = vpop.permute.xlu0 %35  ;;  %635 = vmatprep.subr.bf16.mxu0 %v741_v0 }
  0x9d   :  { %v40_v52 = vsel %vm39_vm7, %v36_v51, %v38_v50 }
  0x9e   :  { %239 = vmatpush1.bf16.msra.mxu1 %v40_v52 }
  0x9f   :  { %240 = vmatprep.subr.bf16.mxu1 %v712_v1  ;;  %636 = vmatpush3.bf16.msra.mxu0 %v741_v0 }
  0xa0   :  { %v31_v53 = vpop.permute.xlu1 %30  ;;  %v29_v54 = vpop.permute.xlu0 %28 }
  0xa1   :  { %v33_v55 = vsel %vm32_vm6, %v29_v54, %v31_v53 }
  0xa2   :  { %241 = vmatpush1.bf16.msra.mxu1 %v33_v55 }
  0xa3   :  { %242 = vmatprep.subr.bf16.mxu1 %v712_v1 }
  0xa4   :  { %v315_v56 = vpop.permute.xlu1 %314  ;;  %v313_v57 = vpop.permute.xlu0 %312 }
  0xa5   :  { %v316_v58 = vsel %vm60_vm3, %v313_v57, %v315_v56 }
  0xa6   :  { %641 = vmatprep.subr.bf16.mxu0 %v316_v58  ;;  %243 = vmatpush1.bf16.msra.mxu1 %v747_v2  ;;  %v709_v2 = vld [vmem:[%s910_s1 + $0x24] ss:$16 sps:$4 sm:$0xff]  }
  0xa7   :  { %258 = vmatprep.subr.bf16.mxu1 %v712_v1  ;;  %v706_v1 = vld [vmem:[%s910_s1] ss:$16 sps:$4 sm:$0xff]  }
  0xa8   :  { %v146_v59 = vpop.permute.xlu1 %145  ;;  %v144_v60 = vpop.permute.xlu0 %143 }
  0xa9   :  { %637 = vmatprep.mubr.msk.bf16.mxu0 %vm147_vm8, %v144_v60 }
  0xaa   :  { %638 = vmatmul.mubr.msk.bf16.vlgmr.msra.gmra.mxu0 %vm147_vm8, %v146_v59 }
  0xab   :  { %642 = vmatpush3.bf16.msra.mxu0 %v316_v58 }
  0xac   :  { %v309_v61 = vpop.permute.xlu1 %308  ;;  %v307_v62 = vpop.permute.xlu0 %306 }
  0xad   :  { %v310_v63 = vsel %vm53_vm4, %v307_v62, %v309_v61 }
  0xae   :  { %643 = vmatprep.subr.bf16.mxu0 %v310_v63 }
  0xaf   :  { %644 = vmatpush3.bf16.msra.mxu0 %v310_v63 }
  0xb0   :  { %v80_v0 = vpop.permute.xlu1 %79  ;;  %v78_v3 = vpop.permute.xlu0 %77 }
  0xb1   :  { %v82_v4 = vsel %vm81_vm9, %v78_v3, %v80_v0 }
  0xb2   :  { %259 = vmatpush2.bf16.msra.mxu1 %v82_v4 }
  0xb4   :  { %v303_v5 = vpop.permute.xlu1 %302  ;;  %v301_v7 = vpop.permute.xlu0 %300 }
  0xb5   :  { %261 = vmatmul.mubr.bf16.vlgmr.msra.gmra.mxu1 %v706_v1  ;;  %v304_v8 = vsel %vm46_vm5, %v301_v7, %v303_v5 }
  0xb6   :  { %645 = vmatprep.subr.bf16.mxu0 %v304_v8  ;;  %567 = vmatprep.mubr.msk.bf16.mxu1 %vm221_vm0, %v709_v2 }
  0xb7   :  { %646 = vmatpush3.bf16.msra.mxu0 %v304_v8 }
  0xb8   :  { %v434_v9 = vpop.permute.xlu1 %433  ;;  %v432_v10 = vpop.permute.xlu0 %431 }
  0xb9   :  { %v435_v12 = vsel %vm53_vm4, %v432_v10, %v434_v9 }
  0xba   :  { %657 = vmatprep.subr.bf16.mxu1 %v435_v12 }
  0xbb   :  { %658 = vmatpush3.bf16.msra.mxu1 %v435_v12 }
  0xbc   :  { %v297_v14 = vpop.permute.xlu1 %296  ;;  %v295_v15 = vpop.permute.xlu0 %294 }
  0xbd   :  { %269 = vmatmul.mubr.bf16.gmra.mxu1 %v711_v13  ;;  %v298_v16 = vsel %vm39_vm7, %v295_v15, %v297_v14 }
  0xbe   :  { %647 = vmatprep.subr.bf16.mxu0 %v298_v16 }
  0xbf   :  { %648 = vmatpush3.bf16.msra.mxu0 %v298_v16 }
  0xc0   :  { %v428_v17 = vpop.permute.xlu1 %427  ;;  %v426_v18 = vpop.permute.xlu0 %425 }
  0xc1   :  { %v429_v19 = vsel %vm46_vm5, %v426_v18, %v428_v17 }
  0xc2   :  { %659 = vmatprep.subr.bf16.mxu1 %v429_v19 }
  0xc3   :  { %660 = vmatpush3.bf16.msra.mxu1 %v429_v19 }
  0xc4   :  { %v291_v20 = vpop.permute.xlu1 %290  ;;  %v289_v21 = vpop.permute.xlu0 %288 }
  0xc5   :  { %v292_v22 = vsel %vm32_vm6, %v289_v21, %v291_v20 }
  0xc6   :  { %649 = vmatprep.subr.bf16.mxu0 %v292_v22 }
  0xc7   :  { %650 = vmatpush3.bf16.msra.mxu0 %v292_v22 }
  0xc8   :  { %v422_v23 = vpop.permute.xlu1 %421  ;;  %v420_v24 = vpop.permute.xlu0 %419  ;;  %651 = vmatprep.subr.bf16.mxu0 %v789_v6 }
  0xc9   :  { %v423_v25 = vsel %vm32_vm6, %v420_v24, %v422_v23 }
  0xca   :  { %661 = vmatprep.subr.bf16.mxu1 %v423_v25 }
  0xcb   :  { %662 = vmatpush3.bf16.msra.mxu1 %v423_v25  ;;  %652 = vmatpush3.bf16.msra.mxu0 %v789_v6 }
  0xcc   :  { %v341_v26 = vpop.permute.xlu1 %340  ;;  %v339_v27 = vpop.permute.xlu0 %338  ;;  %663 = vmatprep.subr.bf16.mxu1 %v817_v11 }
  0xcd   :  { %v347_v28 = vsel %vm221_vm0, %v339_v27, %v341_v26 }
  0xce   :  { %653 = vmatprep.mubr.msk.bf16.mxu0 %vm147_vm8, %v347_v28 }
  0xcf   :  { %664 = vmatpush3.bf16.msra.mxu1 %v817_v11 }
  0xd0   :  { %v345_v29 = vpop.permute.xlu1 %344  ;;  %v343_v30 = vpop.permute.xlu0 %342 }
  0xd1   :  { %v348_v31 = vsel %vm221_vm0, %v343_v30, %v345_v29 }
  0xd2   :  { %654 = vmatmul.mubr.msk.bf16.vlgmr.msra.gmra.mxu0 %vm147_vm8, %v348_v31 }
  0xd4   :  { %v460_v32 = vpop.permute.xlu1 %459  ;;  %v458_v33 = vpop.permute.xlu0 %457 }
  0xd5   :  { %v466_v6 = vsel %vm465_vm10, %v458_v33, %v460_v32 }
  0xd6   :  { %665 = vmatprep.mubr.msk.bf16.mxu1 %vm468_vm11, %v466_v6 }
  0xd8   :  { %v464_v34 = vpop.permute.xlu1 %463  ;;  %v462_v35 = vpop.permute.xlu0 %461 }
  0xd9   :  { %v467_v36 = vsel %vm465_vm10, %v462_v35, %v464_v34 }
  0xda   :  { %666 = vmatmul.mubr.msk.bf16.vlgmr.msra.gmra.mxu1 %vm468_vm11, %v467_v36 }
 0x16a   :  { %v639_v44 = vpop.f32.mrf.mxu0 }
 0x16c   :  { %v188_v45 = vpop.f32.mrf.mxu0 }
 0x16e   :  { %v640_v46 = vpop.f32.mrf.mxu0 }
 0x170   :  { %v191_v47 = vpop.f32.mrf.mxu0 }
 0x175   :  { %v262_v37 = vpop.f32.mrf.mxu1 }
 0x176   :  { %v263_v56 = vadd.f32 %v262_v37, %v188_v45 }
 0x177   :  { %v264_v38 = vpop.f32.mrf.mxu1 }
 0x179   :  { %v265_v39 = vpop.f32.mrf.mxu1 }
 0x17a   :  { %v266_v57 = vadd.f32 %v265_v39, %v191_v47 }
 0x17b   :  { %v267_v40 = vpop.f32.mrf.mxu1 }
 0x17d   :  { %v270_v11 = vpop.f32.mrf.mxu1 }
 0x17e   :  { %v271_v52 = vadd.f32 %v639_v44, %v270_v11 }
 0x17f   :  { %v272_v41 = vpop.f32.mrf.mxu1 }
 0x181   :  { %v273_v42 = vpop.f32.mrf.mxu1 }
 0x182   :  { %v274_v53 = vadd.f32 %v640_v46, %v273_v42 }
 0x183   :  { %v275_v43 = vpop.f32.mrf.mxu1 }
 0x192   :  { %v655_v48 = vpop.f32.mrf.mxu0 }
 0x193   :  { %v406_v58 = vadd.f32 %v655_v48, %v271_v52 }
 0x194   :  { %v389_v49 = vpop.f32.mrf.mxu0 }
 0x195   :  { %v404_v61 = vadd.f32 %v389_v49, %v263_v56 }
 0x196   :  { %v656_v50 = vpop.f32.mrf.mxu0 }
 0x197   :  { %v407_v59 = vadd.f32 %v656_v50, %v274_v53 }
 0x198   :  { %v392_v54 = vpop.f32.mrf.mxu0 }
 0x199   :  { %v405_v62 = vadd.f32 %v392_v54, %v266_v57 }
 0x19a   :  { %v667_v51 = vpop.f32.mrf.mxu1 }
 0x19b   :  { %v526_v63 = vadd.f32 %v667_v51, %v406_v58 }
 0x19c   :  { %v509_v55 = vpop.f32.mrf.mxu1 }
 0x19d   :  { %v524_v4 = vadd.f32 %v509_v55, %v404_v61 }
 0x19e   :  { %v668_v60 = vpop.f32.mrf.mxu1 }
 0x19f   :  { %v527_v0 = vadd.f32 %v668_v60, %v407_v59 }
 0x1a0   :  { %v512_v3 = vpop.f32.mrf.mxu1 }
 0x1a1   :  { %v600_v1 = vpack.c.bf16 %v527_v0, %v526_v63  ;;  %v525_v2 = vadd.f32 %v512_v3, %v405_v62 }
 0x1a3   :  { %602 = vst [vmem:[%s911_s2 + $0x8] sm:$0xff] %v600_v1   ;;  %v595_v5 = vpack.c.bf16 %v525_v2, %v524_v4 }
 0x1a5   :  { %596 = vst [vmem:[%s911_s2] sm:$0xff] %v595_v5  }

// kernel: basic_encoder_forward.31
= control target key start
LH: loop header
LB: loop body
LE: loop exit
PB: predicated region body
PF: predicated region fallthrough
CT: control target
= control target key end

     0   :  { %v206_v0 = vmov 0   ;;  %v207_v9 = vmov 0.0   ;;  %vm208_vm0 = vmmov 0   ;;  %vm124_vm1 = vcmask 261120   ;;  %s292_s2 = inlined_call_operand.vmem [shape: f32[32,1], index: 2, kind: input, shape index: {}]   ;;  %s293_s1 = inlined_call_operand.vmem [shape: f32[32,1], index: 1, kind: input, shape index: {}]   ;;  %s294_s5 = inlined_call_operand.vmem [shape: f32[16,1], index: 5, kind: input, shape index: {}]   ;;  %s295_s4 = inlined_call_operand.vmem [shape: bf16[16,32], index: 4, kind: input, shape index: {}]   ;;  %s296_s0 = inlined_call_operand.vmem [shape: bf16[32,128], index: 0, kind: input, shape index: {}]   ;;  %s297_s3 = inlined_call_operand.vmem [shape: f32[1,128], index: 3, kind: input, shape index: {}]   ;;  %s298_s6 = inlined_call_operand.vmem [shape: f32[16,128], index: 6, kind: output, shape index: {}]  }
   0x1   :  { %204 = vset.pattern.permute.xlu1 %v206_v0  ;;  %203 = vset.pattern.permute.xlu0 %v206_v0  ;;  %v62_v1 = vld [vmem:[%s292_s2 + $0x10] sm:$0xff]  ;;  %v63_v3 = vld [vmem:[%s292_s2 + $0x18] sm:$0xff]  ;;  %v33_v5 = vld [vmem:[%s293_s1 + $0x8] sm:$0xff] }
   0x2   :  { %v34_v2 = vld [vmem:[%s293_s1 + $0x10] sm:$0xff]  ;;  %76 = vperm.xlu1 %204, %v62_v1   ;;  %v35_v4 = vld [vmem:[%s293_s1 + $0x18] sm:$0xff]  ;;  %v32_v6 = vld [vmem:[%s293_s1] sm:$0xff]  ;;  %192 = vmatprep.subr.bf16.mxu0 %v207_v9 }
   0x3   :  { %48 = vperm.xlu0 %203, %v34_v2   ;;  %v61_v7 = vld [vmem:[%s292_s2 + $0x8] sm:$0xff]  ;;  %v60_v8 = vld [vmem:[%s292_s2] sm:$0xff]  ;;  %196 = vmatprep.mubr.msk.bf16.mxu0 %vm208_vm0, %v207_v9 }
   0x4   :  { %v108_v10 = vld [vmem:[%s294_s5 + $0x8] sm:$0xff]  ;;  %v107_v11 = vld [vmem:[%s294_s5] sm:$0xff] }
   0x5   :  { %v188_v12 = vld [vmem:[%s296_s0 + $0x8] sm:$0xff]   ;;  %v181_v21 = vld [vmem:[%s296_s0] sm:$0xff]  }
   0x6   :  { %81 = vperm.xlu1 %204, %v63_v3   ;;  %v186_v13 = vunpack.c.l.bf16 %v188_v12  ;;  %v187_v17 = vunpack.c.h.bf16 %v188_v12  ;;  %v183_v25 = vunpack.c.h.bf16 %v181_v21  ;;  %v182_v26 = vunpack.c.l.bf16 %v181_v21  ;;  %v177_v29 = vld [vmem:[%s297_s3] ss:$0 sm:$0xff] }
   0x7   :  { %53 = vperm.xlu0 %203, %v35_v4   ;;  %v205_v45 = vld [vmem:[%s295_s4] sm:$0xff]  }
   0xa   :  { %43 = vperm.xlu1 %204, %v33_v5  }
   0xb   :  { %38 = vperm.xlu0 %203, %v32_v6  }
   0xe   :  { %71 = vperm.xlu1 %204, %v61_v7  }
   0xf   :  { %66 = vperm.xlu0 %203, %v60_v8  }
  0x12   :  { %116 = vperm.xlu1 %204, %v108_v10  }
  0x13   :  { %111 = vperm.xlu0 %203, %v107_v11  }
  0x7d   :  { %v77_v14 = vpop.permute.xlu1 %76 }
  0x7e   :  { %v49_v15 = vpop.permute.xlu0 %48 }
  0x7f   :  { %v58_v16 = vmul.f32 %v186_v13, %v49_v15 }
  0x81   :  { %v86_v18 = vadd.f32 %v77_v14, %v58_v16  ;;  %v82_v19 = vpop.permute.xlu1 %81 }
  0x82   :  { %v54_v20 = vpop.permute.xlu0 %53 }
  0x83   :  { %v59_v22 = vmul.f32 %v187_v17, %v54_v20  ;;  %v90_v23 = vmax.f32 %v86_v18, 0.0 }
  0x85   :  { %v87_v24 = vadd.f32 %v82_v19, %v59_v22  ;;  %v44_v27 = vpop.permute.xlu1 %43  ;;  %v101_v33 = vmul.f32 %v177_v29, %v90_v23 }
  0x86   :  { %v39_v28 = vpop.permute.xlu0 %38  ;;  %v57_v31 = vmul.f32 %v183_v25, %v44_v27 }
  0x87   :  { %v91_v30 = vmax.f32 %v87_v24, 0.0  ;;  %v56_v32 = vmul.f32 %v182_v26, %v39_v28 }
  0x89   :  { %v102_v34 = vmul.f32 %v177_v29, %v91_v30  ;;  %v72_v35 = vpop.permute.xlu1 %71 }
  0x8a   :  { %v67_v36 = vpop.permute.xlu0 %66  ;;  %v85_v37 = vadd.f32 %v72_v35, %v57_v31 }
  0x8b   :  { %v84_v38 = vadd.f32 %v67_v36, %v56_v32  ;;  %v106_v39 = vpack.c.bf16 %v102_v34, %v101_v33 }
  0x8c   :  { %v89_v40 = vmax.f32 %v85_v37, 0.0 }
  0x8d   :  { %v88_v41 = vmax.f32 %v84_v38, 0.0  ;;  %193 = vmatpush3.bf16.msra.mxu0 %v106_v39  ;;  %v117_v51 = vpop.permute.xlu1 %116 }
  0x8e   :  { %194 = vmatprep.subr.bf16.mxu0 %v207_v9  ;;  %v100_v42 = vmul.f32 %v177_v29, %v89_v40  ;;  %v112_v46 = vpop.permute.xlu0 %111 }
  0x8f   :  { %v99_v43 = vmul.f32 %v177_v29, %v88_v41 }
  0x91   :  { %v105_v44 = vpack.c.bf16 %v100_v42, %v99_v43 }
  0x93   :  { %195 = vmatpush3.bf16.msra.mxu0 %v105_v44 }
  0x96   :  { %197 = vmatmul.mubr.msk.bf16.vlgmr.msra.gmra.mxu0 %vm124_vm1, %v205_v45 }
 0x156   :  { %v162_v47 = vpop.f32.mrf.mxu0 }
 0x157   :  { %v163_v48 = vadd.f32 %v162_v47, %v112_v46 }
 0x158   :  { %v198_v49 = vpop.f32.mrf.mxu0 }
 0x159   :  { %v169_v50 = vmul.f32 %v177_v29, %v163_v48 }
 0x15a   :  { %v165_v52 = vpop.f32.mrf.mxu0 }
 0x15b   :  { %171 = vst [vmem:[%s298_s6] sm:$0xff] %v169_v50  ;;  %v166_v53 = vadd.f32 %v165_v52, %v117_v51 }
 0x15c   :  { %v199_v54 = vpop.f32.mrf.mxu0 }
 0x15d   :  { %v170_v55 = vmul.f32 %v177_v29, %v166_v53 }
 0x15f   :  { %172 = vst [vmem:[%s298_s6 + $0x8] sm:$0xff] %v170_v55 }

// kernel: basic_encoder_forward.28
= control target key start
LH: loop header
LB: loop body
LE: loop exit
PB: predicated region body
PF: predicated region fallthrough
CT: control target
= control target key end

     0   :  { %s405_s11 = smov 120   ;;  %s406_s12 = smov 111   ;;  %vm181_vm0 = vcmask 261120   ;;  %vm125_vm1 = vcmask 908288   ;;  %vm73_vm2 = vcmask 982016   ;;  %vm112_vm3 = vcmask 916480   ;;  %s488_s0 = inlined_call_operand.vmem [shape: bf16[32,256], index: 0, kind: input, shape index: {}]   ;;  %s489_s1 = inlined_call_operand.vmem [shape: bf16[32,288], index: 1, kind: input, shape index: {}]   ;;  %s490_s2 = inlined_call_operand.vmem [shape: bf16[32,128], index: 2, kind: output, shape index: {}]  }
   0x1   :  { %v431_v0 = vld [vmem:[%s488_s0 + $0x10] ss:$8 sps:$4 sm:$0xff]   ;;  %v393_v1 = vld [vmem:[%s488_s0 + $0x14] ss:$8 sps:$4 sm:$0xff]   ;;  %v394_v2 = vld [vmem:[%s488_s0 + $0x4] ss:$8 sps:$4 sm:$0xff]  }
   0x2   :  { %69 = vrot.lane.b32.xlu1 %v431_v0, %s405_s11  ;;  %121 = vrot.lane.b32.xlu0 %v431_v0, %s406_s12  ;;  %v444_v3 = vld [vmem:[%s488_s0] ss:$8 sps:$4 sm:$0xff]   ;;  %s407_s19 = smov 112   ;;  %s408_s20 = smov 126   ;;  %v399_v4 = vld [vmem:[%s489_s1 + $0x4] ss:$12 sps:$4 sm:$0xff]  }
   0x3   :  { %s409_s0 = smov 118   ;;  %s410_s21 = smov 127   ;;  %220 = vmatprep.mubr.bf16.mxu0 %v399_v4  ;;  %v402_v5 = vld [vmem:[%s489_s1 + $0x8] ss:$12 sps:$4 sm:$0xff]   ;;  %vm60_vm4 = vcmask 1031168   ;;  %vm99_vm5 = vcmask 965632  }
   0x4   :  { %s411_s24 = smov 119   ;;  %379 = vmatprep.mubr.msk.bf16.mxu1 %vm181_vm0, %v402_v5  ;;  %s412_s27 = smov 110   ;;  %vm47_vm6 = vcmask 1039360   ;;  %vm86_vm7 = vcmask 973824   ;;  %v397_v48 = vld [vmem:[%s489_s1] ss:$12 sps:$4 sm:$0xff]  }
   0x5   :  { %vm138_vm8 = vcmask 900096   ;;  %v400_v49 = vld [vmem:[%s489_s1 + $0x1c] ss:$12 sps:$4 sm:$0xff]   ;;  %v403_v56 = vld [vmem:[%s489_s1 + $0x18] ss:$12 sps:$4 sm:$0xff]  }
   0x6   :  { %71 = vrot.lane.b32.xlu1 %v393_v1, %s405_s11  ;;  %123 = vrot.lane.b32.xlu0 %v393_v1, %s406_s12  ;;  %v404_v57 = vld [vmem:[%s489_s1 + $0x20] ss:$12 sps:$4 sm:$0xff]  }
   0xa   :  { %119 = vrot.lane.b32.xlu1 %v394_v2, %s406_s12  ;;  %117 = vrot.lane.b32.xlu0 %v444_v3, %s406_s12 }
   0xe   :  { %67 = vrot.lane.b32.xlu1 %v394_v2, %s405_s11  ;;  %65 = vrot.lane.b32.xlu0 %v444_v3, %s405_s11 }
  0x12   :  { %110 = vrot.lane.b32.xlu1 %v393_v1, %s407_s19  ;;  %108 = vrot.lane.b32.xlu0 %v431_v0, %s407_s19 }
  0x16   :  { %58 = vrot.lane.b32.xlu1 %v393_v1, %s408_s20  ;;  %56 = vrot.lane.b32.xlu0 %v431_v0, %s408_s20 }
  0x1a   :  { %106 = vrot.lane.b32.xlu1 %v394_v2, %s407_s19  ;;  %104 = vrot.lane.b32.xlu0 %v444_v3, %s407_s19 }
  0x1e   :  { %54 = vrot.lane.b32.xlu1 %v394_v2, %s408_s20  ;;  %52 = vrot.lane.b32.xlu0 %v444_v3, %s408_s20 }
  0x22   :  { %97 = vrot.lane.b32.xlu1 %v393_v1, %s409_s0  ;;  %95 = vrot.lane.b32.xlu0 %v431_v0, %s409_s0 }
  0x26   :  { %45 = vrot.lane.b32.xlu1 %v393_v1, %s410_s21  ;;  %43 = vrot.lane.b32.xlu0 %v431_v0, %s410_s21 }
  0x2a   :  { %93 = vrot.lane.b32.xlu1 %v394_v2, %s409_s0  ;;  %91 = vrot.lane.b32.xlu0 %v444_v3, %s409_s0 }
  0x2e   :  { %41 = vrot.lane.b32.xlu1 %v394_v2, %s410_s21  ;;  %39 = vrot.lane.b32.xlu0 %v444_v3, %s410_s21 }
  0x32   :  { %84 = vrot.lane.b32.xlu1 %v393_v1, %s411_s24  ;;  %82 = vrot.lane.b32.xlu0 %v431_v0, %s411_s24 }
  0x36   :  { %80 = vrot.lane.b32.xlu1 %v394_v2, %s411_s24  ;;  %78 = vrot.lane.b32.xlu0 %v444_v3, %s411_s24 }
  0x3a   :  { %136 = vrot.lane.b32.xlu1 %v393_v1, %s412_s27  ;;  %134 = vrot.lane.b32.xlu0 %v431_v0, %s412_s27 }
  0x3e   :  { %132 = vrot.lane.b32.xlu1 %v394_v2, %s412_s27  ;;  %130 = vrot.lane.b32.xlu0 %v444_v3, %s412_s27 }
  0x74   :  { %v70_v6 = vpop.permute.xlu1 %69  ;;  %v122_v7 = vpop.permute.xlu0 %121 }
  0x78   :  { %v72_v8 = vpop.permute.xlu1 %71  ;;  %v124_v9 = vpop.permute.xlu0 %123 }
  0x79   :  { %v127_v10 = vsel %vm125_vm1, %v122_v7, %v124_v9  ;;  %v75_v11 = vsel %vm73_vm2, %v70_v6, %v72_v8 }
  0x7a   :  { %343 = vmatprep.subr.bf16.mxu0 %v127_v10 }
  0x7b   :  { %344 = vmatpush3.bf16.msra.mxu0 %v75_v11 }
  0x7c   :  { %v120_v12 = vpop.permute.xlu1 %119  ;;  %v118_v13 = vpop.permute.xlu0 %117 }
  0x7d   :  { %v126_v14 = vsel %vm125_vm1, %v118_v13, %v120_v12 }
  0x7e   :  { %345 = vmatprep.subr.bf16.mxu0 %v126_v14 }
  0x80   :  { %v68_v15 = vpop.permute.xlu1 %67  ;;  %v66_v16 = vpop.permute.xlu0 %65 }
  0x81   :  { %v74_v17 = vsel %vm73_vm2, %v66_v16, %v68_v15 }
  0x82   :  { %346 = vmatpush3.bf16.msra.mxu0 %v74_v17 }
  0x84   :  { %v111_v18 = vpop.permute.xlu1 %110  ;;  %v109_v19 = vpop.permute.xlu0 %108 }
  0x85   :  { %v114_v20 = vsel %vm112_vm3, %v109_v19, %v111_v18 }
  0x86   :  { %347 = vmatprep.subr.bf16.mxu0 %v114_v20 }
  0x88   :  { %v59_v21 = vpop.permute.xlu1 %58  ;;  %v57_v22 = vpop.permute.xlu0 %56 }
  0x89   :  { %v62_v23 = vsel %vm60_vm4, %v57_v22, %v59_v21 }
  0x8a   :  { %348 = vmatpush3.bf16.msra.mxu0 %v62_v23 }
  0x8c   :  { %v107_v24 = vpop.permute.xlu1 %106  ;;  %v105_v25 = vpop.permute.xlu0 %104 }
  0x8d   :  { %v113_v26 = vsel %vm112_vm3, %v105_v25, %v107_v24 }
  0x8e   :  { %349 = vmatprep.subr.bf16.mxu0 %v113_v26 }
  0x90   :  { %v55_v27 = vpop.permute.xlu1 %54  ;;  %v53_v28 = vpop.permute.xlu0 %52 }
  0x91   :  { %v61_v29 = vsel %vm60_vm4, %v53_v28, %v55_v27 }
  0x92   :  { %350 = vmatpush3.bf16.msra.mxu0 %v61_v29 }
  0x94   :  { %v98_v30 = vpop.permute.xlu1 %97  ;;  %v96_v31 = vpop.permute.xlu0 %95 }
  0x95   :  { %v101_v32 = vsel %vm99_vm5, %v96_v31, %v98_v30 }
  0x96   :  { %351 = vmatprep.subr.bf16.mxu0 %v101_v32 }
  0x98   :  { %v46_v33 = vpop.permute.xlu1 %45  ;;  %v44_v34 = vpop.permute.xlu0 %43 }
  0x99   :  { %v49_v35 = vsel %vm47_vm6, %v44_v34, %v46_v33 }
  0x9a   :  { %352 = vmatpush3.bf16.msra.mxu0 %v49_v35 }
  0x9c   :  { %v94_v36 = vpop.permute.xlu1 %93  ;;  %v92_v37 = vpop.permute.xlu0 %91 }
  0x9d   :  { %v100_v38 = vsel %vm99_vm5, %v92_v37, %v94_v36 }
  0x9e   :  { %353 = vmatprep.subr.bf16.mxu0 %v100_v38 }
  0xa0   :  { %v42_v39 = vpop.permute.xlu1 %41  ;;  %v40_v40 = vpop.permute.xlu0 %39 }
  0xa1   :  { %v48_v41 = vsel %vm47_vm6, %v40_v40, %v42_v39 }
  0xa2   :  { %354 = vmatpush3.bf16.msra.mxu0 %v48_v41 }
  0xa4   :  { %v85_v42 = vpop.permute.xlu1 %84  ;;  %v83_v43 = vpop.permute.xlu0 %82 }
  0xa5   :  { %v88_v44 = vsel %vm86_vm7, %v83_v43, %v85_v42 }
  0xa6   :  { %355 = vmatprep.subr.bf16.mxu0 %v88_v44 }
  0xa7   :  { %356 = vmatpush3.bf16.msra.mxu0 %v431_v0 }
  0xa8   :  { %v81_v45 = vpop.permute.xlu1 %80  ;;  %v79_v46 = vpop.permute.xlu0 %78 }
  0xa9   :  { %v87_v47 = vsel %vm86_vm7, %v79_v46, %v81_v45 }
  0xaa   :  { %357 = vmatprep.subr.bf16.mxu0 %v87_v47 }
  0xab   :  { %358 = vmatpush3.bf16.msra.mxu0 %v444_v3 }
  0xac   :  { %v137_v50 = vpop.permute.xlu1 %136  ;;  %v135_v51 = vpop.permute.xlu0 %134 }
  0xad   :  { %v140_v52 = vsel %vm138_vm8, %v135_v51, %v137_v50 }
  0xae   :  { %221 = vmatmul.mubr.bf16.vlgmr.msra.gmra.mxu0 %v397_v48  ;;  %375 = vmatprep.subr.bf16.mxu1 %v140_v52 }
  0xaf   :  { %376 = vmatpush3.bf16.msra.mxu1 %v140_v52  ;;  %228 = vmatprep.mubr.bf16.mxu0 %v400_v49 }
  0xb0   :  { %v133_v53 = vpop.permute.xlu1 %132  ;;  %v131_v54 = vpop.permute.xlu0 %130 }
  0xb1   :  { %v139_v55 = vsel %vm138_vm8, %v131_v54, %v133_v53 }
  0xb2   :  { %377 = vmatprep.subr.bf16.mxu1 %v139_v55 }
  0xb3   :  { %378 = vmatpush3.bf16.msra.mxu1 %v139_v55 }
  0xb6   :  { %229 = vmatmul.mubr.bf16.gmra.mxu0 %v403_v56  ;;  %380 = vmatmul.mubr.msk.bf16.vlgmr.msra.gmra.mxu1 %vm181_vm0, %v404_v57 }
 0x16e   :  { %v359_v58 = vpop.f32.mrf.mxu0 }
 0x170   :  { %v360_v59 = vpop.f32.mrf.mxu0 }
 0x171   :  { %v361_v4 = vadd.f32 %v360_v59, %v359_v58 }
 0x172   :  { %v362_v60 = vpop.f32.mrf.mxu0 }
 0x174   :  { %v363_v61 = vpop.f32.mrf.mxu0 }
 0x175   :  { %v364_v5 = vadd.f32 %v363_v61, %v362_v60 }
 0x176   :  { %v365_v62 = vpop.f32.mrf.mxu0  ;;  %v381_v63 = vpop.f32.mrf.mxu1 }
 0x178   :  { %v366_v0 = vpop.f32.mrf.mxu0  ;;  %v271_v1 = vpop.f32.mrf.mxu1 }
 0x179   :  { %v367_v6 = vadd.f32 %v366_v0, %v365_v62  ;;  %v272_v9 = vadd.f32 %v361_v4, %v271_v1 }
 0x17a   :  { %v368_v2 = vpop.f32.mrf.mxu0  ;;  %v382_v3 = vpop.f32.mrf.mxu1 }
 0x17b   :  { %v280_v12 = vadd.f32 %v381_v63, %v367_v6 }
 0x17c   :  { %v369_v7 = vpop.f32.mrf.mxu0  ;;  %v274_v8 = vpop.f32.mrf.mxu1 }
 0x17d   :  { %v370_v10 = vadd.f32 %v369_v7, %v368_v2  ;;  %v275_v11 = vadd.f32 %v364_v5, %v274_v8 }
 0x17f   :  { %v283_v13 = vadd.f32 %v382_v3, %v370_v10  ;;  %v335_v14 = vpack.c.bf16 %v275_v11, %v272_v9 }
 0x181   :  { %v340_v15 = vpack.c.bf16 %v283_v13, %v280_v12  ;;  %336 = vst [vmem:[%s490_s2] sm:$0xff] %v335_v14  }
 0x183   :  { %342 = vst [vmem:[%s490_s2 + $0x8] sm:$0xff] %v340_v15  }

</bundles_post_ra>
